<compile_context>
chip_gen: v6e
topology: v6e:2x2x1
jax: 0.10.0
libtpu: 0.0.40
codegen_flags: <defaults>
</compile_context>

<pallas_src>
import functools

import jax
import jax.numpy as jnp
from jax.experimental import pallas as pl
from jax.experimental.pallas import tpu as pltpu


# --------------------------------------------------------------------------
# In-kernel math helpers (operate on values / refs already in VMEM)
# --------------------------------------------------------------------------
def _mxu_dot(a, b):
    """MXU matmul: bf16 operands, f32 accumulation."""
    return jnp.dot(a.astype(jnp.bfloat16), b.astype(jnp.bfloat16),
                   preferred_element_type=jnp.float32)


def _layernorm(x, g, b, eps=1e-5):
    x = x.astype(jnp.float32)
    mu = jnp.mean(x, axis=-1, keepdims=True)
    var = jnp.mean(jnp.square(x - mu), axis=-1, keepdims=True)
    return (x - mu) * jax.lax.rsqrt(var + eps) * g + b


def _quickgelu(x):
    return x * jax.nn.sigmoid(1.702 * x)


def _l2_normalize(x, eps=1e-12):
    return x * jax.lax.rsqrt(jnp.sum(x * x, axis=-1, keepdims=True) + eps)


def _round_up(x, m):
    return (x + m - 1) // m * m


def _transformer_block(x_ref, blk, heads, mask):
    """CLIP ResidualAttentionBlock, in place on a (NB, S_pad, D) VMEM scratch.

    blk: tuple of 12 per-layer refs, each carrying a leading block dim of 1.
    Attention is batched over NB (single batch-dim dot_general); heads are a
    small static unroll with per-head accumulated out-projection (wo pre-split
    on the host into (heads, Dh, D)) to avoid sub-lane concatenates.
    """
    ln1g, ln1b, wqkv, bqkv, woh, bo, ln2g, ln2b, w1, b1, w2, b2 = blk
    NB, S, D = x_ref.shape
    Dh = D // heads
    scale = 1.0 / float(Dh) ** 0.5

    x = x_ref[...]                                           # (NB, S, D) f32
    h = _layernorm(x, ln1g[0], ln1b[0])
    h2 = h.reshape(NB * S, D).astype(jnp.bfloat16)
    qkv = jnp.dot(h2, wqkv[0],
                  preferred_element_type=jnp.float32) + bqkv[0]   # (NB*S, 3D)

    # TODO(synk): at real CLIP widths, write qkv into a (3, heads, NB*S,
    # Dh_pad) lane-aligned scratch and slice the ref instead of the value.
    attn = jnp.zeros((NB * S, D), jnp.float32)
    for hh in range(heads):
        q = qkv[:, hh * Dh:(hh + 1) * Dh].reshape(NB, S, Dh)
        k = qkv[:, D + hh * Dh:D + (hh + 1) * Dh].reshape(NB, S, Dh)
        v = qkv[:, 2 * D + hh * Dh:2 * D + (hh + 1) * Dh].reshape(NB, S, Dh)
        s = jax.lax.dot_general(
            q.astype(jnp.bfloat16), k.astype(jnp.bfloat16),
            (((2,), (2,)), ((0,), (0,))),
            preferred_element_type=jnp.float32) * scale           # (NB, S, S)
        s = s + mask
        s = s - jnp.max(s, axis=-1, keepdims=True)
        p = jnp.exp(s)
        p = p * pl.reciprocal(jnp.sum(p, axis=-1, keepdims=True), approx=True)
        o = jax.lax.dot_general(
            p.astype(jnp.bfloat16), v.astype(jnp.bfloat16),
            (((2,), (1,)), ((0,), (0,))),
            preferred_element_type=jnp.float32)                   # (NB, S, Dh)
        attn = attn + jnp.dot(o.reshape(NB * S, Dh).astype(jnp.bfloat16),
                              woh[0, hh],
                              preferred_element_type=jnp.float32)

    x = x + (attn + bo[0]).reshape(NB, S, D)
    x_ref[...] = x

    h = _layernorm(x, ln2g[0], ln2b[0]).reshape(NB * S, D).astype(jnp.bfloat16)
    m = jnp.dot(h, w1[0], preferred_element_type=jnp.float32) + b1[0]
    m = _quickgelu(m)
    m = jnp.dot(m.astype(jnp.bfloat16), w2[0],
                preferred_element_type=jnp.float32) + b2[0]
    x_ref[...] = x + m.reshape(NB, S, D)


# --------------------------------------------------------------------------
# Encoder kernels (grid = (num_layers,); activations live in a VMEM scratch)
# --------------------------------------------------------------------------
def _text_encoder_kernel(eot_ref,                               # SMEM (n_cls,)
                         prefix_ref, ctx_ref, suffix_ref, pos_ref,
                         deep_ref,
                         ln1g, ln1b, wqkv, bqkv, woh, bo,
                         ln2g, ln2b, w1, b1, w2, b2,
                         lnf_g, lnf_b, tproj_ref,
                         out_ref, x_ref,
                         *, n_cls, n_ctx, seq, seq_pad, heads, depth):
    i = pl.program_id(0)
    D = x_ref.shape[-1]
    blk = (ln1g, ln1b, wqkv, bqkv, woh, bo, ln2g, ln2b, w1, b1, w2, b2)

    # ---- prompt assembly: [prefix | ctx | suffix] + positional embedding
    @pl.when(i == 0)
    def _prologue():
        for c in range(n_cls):
            x_ref[c, 0:1, :] = prefix_ref[c] + pos_ref[0:1, :]
            x_ref[c, 1:1 + n_ctx, :] = ctx_ref[...] + pos_ref[1:1 + n_ctx, :]
            x_ref[c, 1 + n_ctx:seq, :] = (suffix_ref[c]
                                          + pos_ref[1 + n_ctx:seq, :])
            if seq_pad > seq:
                x_ref[c, seq:, :] = jnp.zeros((seq_pad - seq, D), jnp.float32)

    # ---- MaPLe deep text-prompt injection (replace ctx tokens)
    @pl.when(jnp.logical_and(i >= 1, i < depth))
    def _inject():
        for c in range(n_cls):
            x_ref[c, 1:1 + n_ctx, :] = deep_ref[0]

    # ---- causal (+ pad) mask built in-kernel
    row = jax.lax.broadcasted_iota(jnp.int32, (seq_pad, seq_pad), 0)
    col = jax.lax.broadcasted_iota(jnp.int32, (seq_pad, seq_pad), 1)
    mask = jnp.where(jnp.logical_or(col > row, col >= seq),
                     jnp.float32(-1e9), jnp.float32(0.0))

    _transformer_block(x_ref, blk, heads, mask)

    # ---- epilogue: EOT gather (scalar-prefetched indices), ln_final,
    #      text projection, L2 normalisation
    @pl.when(i == pl.num_programs(0) - 1)
    def _epilogue():
        pos_i = jax.lax.broadcasted_iota(jnp.int32, (seq_pad, 1), 0)
        rows = []
        for c in range(n_cls):
            sel = (pos_i == eot_ref[c]).astype(jnp.float32)     # (seq_pad, 1)
            rows.append(jnp.sum(x_ref[c] * sel, axis=0, keepdims=True))
        feats = jnp.concatenate(rows, axis=0)                    # (n_cls, D)
        feats = _layernorm(feats, lnf_g[...], lnf_b[...])
        tf = _mxu_dot(feats, tproj_ref[...])
        out_ref[...] = _l2_normalize(tf).astype(out_ref.dtype)


def _image_encoder_kernel(xp_ref, convw_ref, cls_ref, pos_ref, ctx_ref,
                          projw_ref, projb_ref, lnpre_g, lnpre_b,
                          deep_ref, cpw_ref, cpb_ref,
                          ln1g, ln1b, wqkv, bqkv, woh, bo,
                          ln2g, ln2b, w1, b1, w2, b2,
                          lnpost_g, lnpost_b, vproj_ref,
                          out_ref, x_ref,
                          *, batch, n_patches, n_ctx, seq, seq_pad,
                          heads, depth):
    i = pl.program_id(0)
    Dv = x_ref.shape[-1]
    P = n_patches
    blk = (ln1g, ln1b, wqkv, bqkv, woh, bo, ln2g, ln2b, w1, b1, w2, b2)

    # ---- patch embed + token assembly + shared visual prompt + ln_pre
    @pl.when(i == 0)
    def _prologue():
        patches = _mxu_dot(xp_ref[...], convw_ref[...])          # (B*P, Dv)
        shared = _mxu_dot(ctx_ref[...], projw_ref[...]) + projb_ref[...]
        for b in range(batch):
            x_ref[b, 0:1, :] = cls_ref[...] + pos_ref[0:1, :]
            x_ref[b, 1:1 + P, :] = (patches[b * P:(b + 1) * P, :]
                                    + pos_ref[1:, :])
            x_ref[b, 1 + P:1 + P + n_ctx, :] = shared
            if seq_pad > seq:
                x_ref[b, seq:, :] = jnp.zeros((seq_pad - seq, Dv), jnp.float32)
        x_ref[...] = _layernorm(x_ref[...], lnpre_g[...], lnpre_b[...])

    # ---- MaPLe deep visual-prompt injection (project text prompt per layer)
    @pl.when(jnp.logical_and(i >= 1, i < depth))
    def _inject():
        vctx = _mxu_dot(deep_ref[0], cpw_ref[0]) + cpb_ref[0]    # (n_ctx, Dv)
        for b in range(batch):
            x_ref[b, 1 + P:1 + P + n_ctx, :] = vctx

    # ---- mask out padded key positions (no causal mask for ViT)
    col = jax.lax.broadcasted_iota(jnp.int32, (seq_pad, seq_pad), 1)
    mask = jnp.where(col >= seq, jnp.float32(-1e9), jnp.float32(0.0))

    _transformer_block(x_ref, blk, heads, mask)

    # ---- epilogue: CLS row, ln_post, visual projection, L2 normalisation
    @pl.when(i == pl.num_programs(0) - 1)
    def _epilogue():
        x0 = jnp.concatenate([x_ref[b, 0:1, :] for b in range(batch)], axis=0)
        x0 = _layernorm(x0, lnpost_g[...], lnpost_b[...])
        feat = _mxu_dot(x0, vproj_ref[...])
        out_ref[...] = _l2_normalize(feat).astype(out_ref.dtype)


def _logits_kernel(scale_ref, img_ref, txt_ref, o_ref):
    s = jnp.exp(scale_ref[0, 0])
    sim = jax.lax.dot_general(img_ref[...], txt_ref[...],
                              (((1,), (1,)), ((), ())),
                              preferred_element_type=jnp.float32)
    o_ref[...] = (s * sim).astype(o_ref.dtype)


# --------------------------------------------------------------------------
# Wrappers (pallas_call plumbing + layout-only glue)
# --------------------------------------------------------------------------
def _const_spec(a):
    nd = a.ndim
    return pl.BlockSpec(a.shape, lambda i, *_: (0,) * nd)


def _layer_spec(a):
    nd = a.ndim
    return pl.BlockSpec((1,) + tuple(a.shape[1:]),
                        lambda i, *_: (i,) + (0,) * (nd - 1))


def _stack_blocks(blocks, heads):
    """Stack per-layer params; weights → bf16, wo pre-split per head."""
    L = len(blocks)
    D = blocks[0]["wo"].shape[0]
    Dh = D // heads

    def stk(name, dtype):
        return jnp.stack([b[name] for b in blocks]).astype(dtype)

    f32, bf16 = jnp.float32, jnp.bfloat16
    return (
        stk("ln1_g", f32)[:, None, :], stk("ln1_b", f32)[:, None, :],
        stk("wqkv", bf16), stk("bqkv", f32)[:, None, :],
        stk("wo", bf16).reshape(L, heads, Dh, D), stk("bo", f32)[:, None, :],
        stk("ln2_g", f32)[:, None, :], stk("ln2_b", f32)[:, None, :],
        stk("w1", bf16), stk("b1", f32)[:, None, :],
        stk("w2", bf16), stk("b2", f32)[:, None, :],
    )


_COMPILER_PARAMS = pltpu.CompilerParams(
    dimension_semantics=("arbitrary",),          # sequential layer axis
    vmem_limit_bytes=32 * 1024 * 1024,
)


def text_encoder_forward(p, eot_idx, cfg):
    n_cls, E = cfg["n_cls"], cfg["embed_dim"]
    D, n_ctx, L = cfg["ctx_dim"], cfg["n_ctx"], cfg["text_len"]
    Lt, heads, depth = cfg["text_layers"], cfg["text_heads"], cfg["prompt_depth"]
    L_pad = _round_up(L, 8)

    blocks = _stack_blocks(p["text_blocks"], heads)
    deep_all = jnp.zeros((Lt, n_ctx, D), jnp.float32)
    if depth > 1:
        deep_all = deep_all.at[1:depth].set(jnp.stack(p["compound_prompts_text"]))

    const_head = (p["token_prefix"], p["ctx"], p["token_suffix"], p["text_pos"])
    per_layer = (deep_all,) + blocks
    const_tail = (p["ln_final_g"].reshape(1, D), p["ln_final_b"].reshape(1, D),
                  p["text_projection"].astype(jnp.bfloat16))
    inputs = const_head + per_layer + const_tail
    in_specs = ([_const_spec(a) for a in const_head]
                + [_layer_spec(a) for a in per_layer]
                + [_const_spec(a) for a in const_tail])

    kernel = functools.partial(_text_encoder_kernel, n_cls=n_cls, n_ctx=n_ctx,
                               seq=L, seq_pad=L_pad, heads=heads, depth=depth)
    return pl.pallas_call(
        kernel,
        out_shape=jax.ShapeDtypeStruct((n_cls, E), jnp.float32),
        grid_spec=pltpu.PrefetchScalarGridSpec(
            num_scalar_prefetch=1, grid=(Lt,),
            in_specs=in_specs,
            out_specs=pl.BlockSpec((n_cls, E), lambda i, *_: (0, 0)),
            scratch_shapes=[pltpu.VMEM((n_cls, L_pad, D), jnp.float32)]),
        compiler_params=_COMPILER_PARAMS,
    )(eot_idx, *inputs)


def image_encoder_forward(p, image, cfg):
    B, C, H, W = image.shape
    patch, Dv, E = cfg["patch"], cfg["vis_width"], cfg["embed_dim"]
    n_ctx, Dt = cfg["n_ctx"], cfg["ctx_dim"]
    Lv, heads, depth = cfg["vis_layers"], cfg["vis_heads"], cfg["prompt_depth"]
    gh, gw = H // patch, W // patch
    P = gh * gw
    S = 1 + P + n_ctx
    S_pad = _round_up(S, 8)

    # patchify: layout glue for Conv2d(kernel=stride=patch, no bias) as matmul
    xp = image.reshape(B, C, gh, patch, gw, patch).transpose(0, 2, 4, 1, 3, 5)
    xp = xp.reshape(B * P, C * patch * patch)
    convw = p["conv1_w"].reshape(Dv, C * patch * patch).T.astype(jnp.bfloat16)

    blocks = _stack_blocks(p["vis_blocks"], heads)
    deep_all = jnp.zeros((Lv, n_ctx, Dt), jnp.float32)
    cpw_all = jnp.zeros((Lv, Dt, Dv), jnp.float32)
    cpb_all = jnp.zeros((Lv, 1, Dv), jnp.float32)
    if depth > 1:
        deep_all = deep_all.at[1:depth].set(jnp.stack(p["compound_prompts_text"]))
        cpw_all = cpw_all.at[1:depth].set(
            jnp.stack([c["w"] for c in p["compound_proj"]]))
        cpb_all = cpb_all.at[1:depth].set(
            jnp.stack([c["b"] for c in p["compound_proj"]])[:, None, :])
    cpw_all = cpw_all.astype(jnp.bfloat16)

    const_head = (xp, convw, p["class_emb"].reshape(1, Dv), p["vis_pos"],
                  p["ctx"], p["proj_w"].astype(jnp.bfloat16),
                  p["proj_b"].reshape(1, Dv),
                  p["ln_pre_g"].reshape(1, Dv), p["ln_pre_b"].reshape(1, Dv))
    per_layer = (deep_all, cpw_all, cpb_all) + blocks
    const_tail = (p["ln_post_g"].reshape(1, Dv), p["ln_post_b"].reshape(1, Dv),
                  p["visual_proj"].astype(jnp.bfloat16))
    inputs = const_head + per_layer + const_tail
    in_specs = ([_const_spec(a) for a in const_head]
                + [_layer_spec(a) for a in per_layer]
                + [_const_spec(a) for a in const_tail])

    kernel = functools.partial(_image_encoder_kernel, batch=B, n_patches=P,
                               n_ctx=n_ctx, seq=S, seq_pad=S_pad,
                               heads=heads, depth=depth)
    return pl.pallas_call(
        kernel,
        out_shape=jax.ShapeDtypeStruct((B, E), jnp.float32),
        grid_spec=pltpu.PrefetchScalarGridSpec(
            num_scalar_prefetch=0, grid=(Lv,),
            in_specs=in_specs,
            out_specs=pl.BlockSpec((B, E), lambda i, *_: (0, 0)),
            scratch_shapes=[pltpu.VMEM((B, S_pad, Dv), jnp.float32)]),
        compiler_params=_COMPILER_PARAMS,
    )(*inputs)


def pallas_clip_logits(image_features, text_features, logit_scale):
    B = image_features.shape[0]
    n_cls = text_features.shape[0]
    return pl.pallas_call(
        _logits_kernel,
        out_shape=jax.ShapeDtypeStruct((B, n_cls), jnp.float32),
    )(jnp.asarray(logit_scale, jnp.float32).reshape(1, 1),
      image_features, text_features)


def custom_clip_forward(p, image, tokenized_prompts, cfg):
    # EOT index = argmax of token ids (host glue, mirrors the reference).
    eot_idx = jnp.argmax(tokenized_prompts, axis=-1).astype(jnp.int32)
    text_features = text_encoder_forward(p, eot_idx, cfg)
    # TODO(synk): on v7x the two encoders could run concurrently on the two
    # TensorCores via pl.core_map; here they run back-to-back on one TC.
    image_features = image_encoder_forward(p, image, cfg)
    return pallas_clip_logits(image_features, text_features, p["logit_scale"])


# --------------------------------------------------------------------------
# Model configuration & deterministic parameter init (synthetic CLIP weights)
# --------------------------------------------------------------------------
CFG = dict(
    n_cls=3, n_ctx=2, ctx_dim=32, text_len=8, text_layers=2, text_heads=4,
    vis_width=48, vis_layers=2, vis_heads=4, patch=8, image_size=16,
    channels=3, embed_dim=16, prompt_depth=2, batch=2,
)


def _init_block(key, D):
    ks = jax.random.split(key, 4)
    s = 0.02
    return dict(
        ln1_g=jnp.ones((D,), jnp.float32), ln1_b=jnp.zeros((D,), jnp.float32),
        wqkv=jax.random.normal(ks[0], (D, 3 * D), jnp.float32) * s,
        bqkv=jnp.zeros((3 * D,), jnp.float32),
        wo=jax.random.normal(ks[1], (D, D), jnp.float32) * s,
        bo=jnp.zeros((D,), jnp.float32),
        ln2_g=jnp.ones((D,), jnp.float32), ln2_b=jnp.zeros((D,), jnp.float32),
        w1=jax.random.normal(ks[2], (D, 4 * D), jnp.float32) * s,
        b1=jnp.zeros((4 * D,), jnp.float32),
        w2=jax.random.normal(ks[3], (4 * D, D), jnp.float32) * s,
        b2=jnp.zeros((D,), jnp.float32),
    )


def init_params(key, cfg):
    # TODO(synk): tokenizer + CLIP token_embedding are host-side lookups; the
    # prefix/suffix embeddings are modeled as precomputed synthetic buffers.
    n_patches = (cfg["image_size"] // cfg["patch"]) ** 2
    depth = cfg["prompt_depth"]
    keys = iter(jax.random.split(key, 64))
    nrm = lambda shape, s=0.02: jax.random.normal(next(keys), shape,
                                                  jnp.float32) * s
    return dict(
        # ---- MultiModalPromptLearner ----
        ctx=nrm((cfg["n_ctx"], cfg["ctx_dim"])),
        proj_w=nrm((cfg["ctx_dim"], cfg["vis_width"])),
        proj_b=jnp.zeros((cfg["vis_width"],), jnp.float32),
        compound_prompts_text=[nrm((cfg["n_ctx"], cfg["ctx_dim"]))
                               for _ in range(depth - 1)],
        compound_proj=[dict(w=nrm((cfg["ctx_dim"], cfg["vis_width"])),
                            b=jnp.zeros((cfg["vis_width"],), jnp.float32))
                       for _ in range(depth - 1)],
        token_prefix=nrm((cfg["n_cls"], 1, cfg["ctx_dim"])),
        token_suffix=nrm((cfg["n_cls"],
                          cfg["text_len"] - 1 - cfg["n_ctx"],
                          cfg["ctx_dim"])),
        # ---- TextEncoder ----
        text_pos=nrm((cfg["text_len"], cfg["ctx_dim"]), 0.01),
        text_blocks=[_init_block(next(keys), cfg["ctx_dim"])
                     for _ in range(cfg["text_layers"])],
        ln_final_g=jnp.ones((cfg["ctx_dim"],), jnp.float32),
        ln_final_b=jnp.zeros((cfg["ctx_dim"],), jnp.float32),
        text_projection=nrm((cfg["ctx_dim"], cfg["embed_dim"]),
                            cfg["ctx_dim"] ** -0.5),
        # ---- Image encoder (ViT) ----
        conv1_w=nrm((cfg["vis_width"], cfg["channels"],
                     cfg["patch"], cfg["patch"])),
        class_emb=nrm((cfg["vis_width"],)),
        vis_pos=nrm((1 + n_patches, cfg["vis_width"]), 0.01),
        ln_pre_g=jnp.ones((cfg["vis_width"],), jnp.float32),
        ln_pre_b=jnp.zeros((cfg["vis_width"],), jnp.float32),
        vis_blocks=[_init_block(next(keys), cfg["vis_width"])
                    for _ in range(cfg["vis_layers"])],
        ln_post_g=jnp.ones((cfg["vis_width"],), jnp.float32),
        ln_post_b=jnp.zeros((cfg["vis_width"],), jnp.float32),
        visual_proj=nrm((cfg["vis_width"], cfg["embed_dim"]),
                        cfg["vis_width"] ** -0.5),
        logit_scale=jnp.asarray(jnp.log(1.0 / 0.07), jnp.float32),
    )


# --------------------------------------------------------------------------
if __name__ == "__main__":
    key = jax.random.PRNGKey(0)
    kp, ki = jax.random.split(key)
    params = init_params(kp, CFG)

    image = jax.random.normal(
        ki, (CFG["batch"], CFG["channels"],
             CFG["image_size"], CFG["image_size"]), jnp.float32)

    # synthetic tokenized prompts: EOT token (argmax) at position 1+n_ctx+1
    tokenized_prompts = jnp.zeros((CFG["n_cls"], CFG["text_len"]), jnp.int32)
    tokenized_prompts = tokenized_prompts.at[:, 1 + CFG["n_ctx"] + 1].set(49407)

    @jax.jit
    def forward(p, img, tok):
        return custom_clip_forward(p, img, tok, CFG)

    logits = jax.block_until_ready(forward(params, image, tokenized_prompts))

    assert logits.shape == (CFG["batch"], CFG["n_cls"]), logits.shape
    assert bool(jnp.all(jnp.isfinite(logits)))
    print("KERNEL_OK")
</pallas_src>

<mosaic_0001>
module attributes {stable_mosaic.version = 11 : i64} {
  func.func @_text_encoder_kernel(%arg0: i32, %arg1: memref<3xi32, #tpu.memory_space<smem>>, %arg2: memref<3x1x32xf32, #tpu.memory_space<vmem>>, %arg3: memref<2x32xf32, #tpu.memory_space<vmem>>, %arg4: memref<3x5x32xf32, #tpu.memory_space<vmem>>, %arg5: memref<8x32xf32, #tpu.memory_space<vmem>>, %arg6: memref<1x2x32xf32, #tpu.memory_space<vmem>>, %arg7: memref<1x1x32xf32, #tpu.memory_space<vmem>>, %arg8: memref<1x1x32xf32, #tpu.memory_space<vmem>>, %arg9: memref<1x32x96xbf16, #tpu.memory_space<vmem>>, %arg10: memref<1x1x96xf32, #tpu.memory_space<vmem>>, %arg11: memref<1x4x8x32xbf16, #tpu.memory_space<vmem>>, %arg12: memref<1x1x32xf32, #tpu.memory_space<vmem>>, %arg13: memref<1x1x32xf32, #tpu.memory_space<vmem>>, %arg14: memref<1x1x32xf32, #tpu.memory_space<vmem>>, %arg15: memref<1x32x128xbf16, #tpu.memory_space<vmem>>, %arg16: memref<1x1x128xf32, #tpu.memory_space<vmem>>, %arg17: memref<1x128x32xbf16, #tpu.memory_space<vmem>>, %arg18: memref<1x1x32xf32, #tpu.memory_space<vmem>>, %arg19: memref<1x32xf32, #tpu.memory_space<vmem>>, %arg20: memref<1x32xf32, #tpu.memory_space<vmem>>, %arg21: memref<32x16xbf16, #tpu.memory_space<vmem>>, %arg22: memref<3x16xf32, #tpu.memory_space<vmem>>, %arg23: memref<3x8x32xf32, #tpu.memory_space<vmem>>) attributes {dimension_semantics = [#tpu.dimension_semantics<arbitrary>], iteration_bounds = array<i64: 2>, scalar_prefetch = 1 : i64, scratch_operands = 1 : i64, tpu.core_type = #tpu.core_type<tc>, window_params = [{pipeline_mode = #tpu.pipeline_mode<synchronous>, transform_indices = @transform_0, window_bounds = array<i64: 3, 1, 32>}, {pipeline_mode = #tpu.pipeline_mode<synchronous>, transform_indices = @transform_1, window_bounds = array<i64: 2, 32>}, {pipeline_mode = #tpu.pipeline_mode<synchronous>, transform_indices = @transform_2, window_bounds = array<i64: 3, 5, 32>}, {pipeline_mode = #tpu.pipeline_mode<synchronous>, transform_indices = @transform_3, window_bounds = array<i64: 8, 32>}, {transform_indices = @transform_4, window_bounds = array<i64: 1, 2, 32>}, {transform_indices = @transform_5, window_bounds = array<i64: 1, 1, 32>}, {transform_indices = @transform_6, window_bounds = array<i64: 1, 1, 32>}, {transform_indices = @transform_7, window_bounds = array<i64: 1, 32, 96>}, {transform_indices = @transform_8, window_bounds = array<i64: 1, 1, 96>}, {transform_indices = @transform_9, window_bounds = array<i64: 1, 4, 8, 32>}, {transform_indices = @transform_10, window_bounds = array<i64: 1, 1, 32>}, {transform_indices = @transform_11, window_bounds = array<i64: 1, 1, 32>}, {transform_indices = @transform_12, window_bounds = array<i64: 1, 1, 32>}, {transform_indices = @transform_13, window_bounds = array<i64: 1, 32, 128>}, {transform_indices = @transform_14, window_bounds = array<i64: 1, 1, 128>}, {transform_indices = @transform_15, window_bounds = array<i64: 1, 128, 32>}, {transform_indices = @transform_16, window_bounds = array<i64: 1, 1, 32>}, {pipeline_mode = #tpu.pipeline_mode<synchronous>, transform_indices = @transform_17, window_bounds = array<i64: 1, 32>}, {pipeline_mode = #tpu.pipeline_mode<synchronous>, transform_indices = @transform_18, window_bounds = array<i64: 1, 32>}, {pipeline_mode = #tpu.pipeline_mode<synchronous>, transform_indices = @transform_19, window_bounds = array<i64: 32, 16>}, {pipeline_mode = #tpu.pipeline_mode<synchronous>, transform_indices = @transform_20, window_bounds = array<i64: 3, 16>}]} {
    %c0_i32 = arith.constant 0 : i32
    %0 = arith.cmpi eq, %arg0, %c0_i32 : i32
    %1 = arith.extui %0 : i1 to i32
    %c0_i32_0 = arith.constant 0 : i32
    %2 = arith.cmpi ne, %1, %c0_i32_0 : i32
    scf.if %2 {
      %c0_99 = arith.constant 0 : index
      %c0_100 = arith.constant 0 : index
      %c0_101 = arith.constant 0 : index
      %254 = vector.load %arg2[%c0_99, %c0_100, %c0_101] : memref<3x1x32xf32, #tpu.memory_space<vmem>>, vector<1x1x32xf32>
      %255 = vector.shape_cast %254 : vector<1x1x32xf32> to vector<1x32xf32>
      %c0_102 = arith.constant 0 : index
      %c0_103 = arith.constant 0 : index
      %256 = vector.load %arg5[%c0_102, %c0_103] : memref<8x32xf32, #tpu.memory_space<vmem>>, vector<1x32xf32>
      %257 = arith.addf %255, %256 : vector<1x32xf32>
      %c0_104 = arith.constant 0 : index
      %c0_105 = arith.constant 0 : index
      %c0_106 = arith.constant 0 : index
      %258 = vector.load %arg23[%c0_104, %c0_105, %c0_106] : memref<3x8x32xf32, #tpu.memory_space<vmem>>, vector<1x1x32xf32>
      %259 = vector.shape_cast %258 : vector<1x1x32xf32> to vector<1x32xf32>
      %260 = vector.shape_cast %257 : vector<1x32xf32> to vector<1x1x32xf32>
      tpu.vector_store %arg23[%c0_104, %c0_105, %c0_106], %260 {strides = array<i32>} : memref<3x8x32xf32, #tpu.memory_space<vmem>>, vector<1x1x32xf32>,
      %c0_107 = arith.constant 0 : index
      %c0_108 = arith.constant 0 : index
      %261 = vector.load %arg3[%c0_107, %c0_108] : memref<2x32xf32, #tpu.memory_space<vmem>>, vector<2x32xf32>
      %c1_109 = arith.constant 1 : index
      %c0_110 = arith.constant 0 : index
      %262 = vector.load %arg5[%c1_109, %c0_110] : memref<8x32xf32, #tpu.memory_space<vmem>>, vector<2x32xf32>
      %263 = arith.addf %261, %262 : vector<2x32xf32>
      %c0_111 = arith.constant 0 : index
      %c1_112 = arith.constant 1 : index
      %c0_113 = arith.constant 0 : index
      %264 = vector.load %arg23[%c0_111, %c1_112, %c0_113] : memref<3x8x32xf32, #tpu.memory_space<vmem>>, vector<1x2x32xf32>
      %265 = vector.shape_cast %264 : vector<1x2x32xf32> to vector<2x32xf32>
      %266 = vector.shape_cast %263 : vector<2x32xf32> to vector<1x2x32xf32>
      tpu.vector_store %arg23[%c0_111, %c1_112, %c0_113], %266 {strides = array<i32>} : memref<3x8x32xf32, #tpu.memory_space<vmem>>, vector<1x2x32xf32>,
      %c0_114 = arith.constant 0 : index
      %c0_115 = arith.constant 0 : index
      %c0_116 = arith.constant 0 : index
      %267 = vector.load %arg4[%c0_114, %c0_115, %c0_116] : memref<3x5x32xf32, #tpu.memory_space<vmem>>, vector<1x5x32xf32>
      %268 = vector.shape_cast %267 : vector<1x5x32xf32> to vector<5x32xf32>
      %c3_117 = arith.constant 3 : index
      %c0_118 = arith.constant 0 : index
      %269 = vector.load %arg5[%c3_117, %c0_118] : memref<8x32xf32, #tpu.memory_space<vmem>>, vector<5x32xf32>
      %270 = arith.addf %268, %269 : vector<5x32xf32>
      %c0_119 = arith.constant 0 : index
      %c3_120 = arith.constant 3 : index
      %c0_121 = arith.constant 0 : index
      %271 = vector.load %arg23[%c0_119, %c3_120, %c0_121] : memref<3x8x32xf32, #tpu.memory_space<vmem>>, vector<1x5x32xf32>
      %272 = vector.shape_cast %271 : vector<1x5x32xf32> to vector<5x32xf32>
      %273 = vector.shape_cast %270 : vector<5x32xf32> to vector<1x5x32xf32>
      tpu.vector_store %arg23[%c0_119, %c3_120, %c0_121], %273 {strides = array<i32>} : memref<3x8x32xf32, #tpu.memory_space<vmem>>, vector<1x5x32xf32>,
      %c1_122 = arith.constant 1 : index
      %c0_123 = arith.constant 0 : index
      %c0_124 = arith.constant 0 : index
      %274 = vector.load %arg2[%c1_122, %c0_123, %c0_124] : memref<3x1x32xf32, #tpu.memory_space<vmem>>, vector<1x1x32xf32>
      %275 = vector.shape_cast %274 : vector<1x1x32xf32> to vector<1x32xf32>
      %c0_125 = arith.constant 0 : index
      %c0_126 = arith.constant 0 : index
      %276 = vector.load %arg5[%c0_125, %c0_126] : memref<8x32xf32, #tpu.memory_space<vmem>>, vector<1x32xf32>
      %277 = arith.addf %275, %276 : vector<1x32xf32>
      %c1_127 = arith.constant 1 : index
      %c0_128 = arith.constant 0 : index
      %c0_129 = arith.constant 0 : index
      %278 = vector.load %arg23[%c1_127, %c0_128, %c0_129] : memref<3x8x32xf32, #tpu.memory_space<vmem>>, vector<1x1x32xf32>
      %279 = vector.shape_cast %278 : vector<1x1x32xf32> to vector<1x32xf32>
      %280 = vector.shape_cast %277 : vector<1x32xf32> to vector<1x1x32xf32>
      tpu.vector_store %arg23[%c1_127, %c0_128, %c0_129], %280 {strides = array<i32>} : memref<3x8x32xf32, #tpu.memory_space<vmem>>, vector<1x1x32xf32>,
      %c0_130 = arith.constant 0 : index
      %c0_131 = arith.constant 0 : index
      %281 = vector.load %arg3[%c0_130, %c0_131] : memref<2x32xf32, #tpu.memory_space<vmem>>, vector<2x32xf32>
      %c1_132 = arith.constant 1 : index
      %c0_133 = arith.constant 0 : index
      %282 = vector.load %arg5[%c1_132, %c0_133] : memref<8x32xf32, #tpu.memory_space<vmem>>, vector<2x32xf32>
      %283 = arith.addf %281, %282 : vector<2x32xf32>
      %c1_134 = arith.constant 1 : index
      %c1_135 = arith.constant 1 : index
      %c0_136 = arith.constant 0 : index
      %284 = vector.load %arg23[%c1_134, %c1_135, %c0_136] : memref<3x8x32xf32, #tpu.memory_space<vmem>>, vector<1x2x32xf32>
      %285 = vector.shape_cast %284 : vector<1x2x32xf32> to vector<2x32xf32>
      %286 = vector.shape_cast %283 : vector<2x32xf32> to vector<1x2x32xf32>
      tpu.vector_store %arg23[%c1_134, %c1_135, %c0_136], %286 {strides = array<i32>} : memref<3x8x32xf32, #tpu.memory_space<vmem>>, vector<1x2x32xf32>,
      %c1_137 = arith.constant 1 : index
      %c0_138 = arith.constant 0 : index
      %c0_139 = arith.constant 0 : index
      %287 = vector.load %arg4[%c1_137, %c0_138, %c0_139] : memref<3x5x32xf32, #tpu.memory_space<vmem>>, vector<1x5x32xf32>
      %288 = vector.shape_cast %287 : vector<1x5x32xf32> to vector<5x32xf32>
      %c3_140 = arith.constant 3 : index
      %c0_141 = arith.constant 0 : index
      %289 = vector.load %arg5[%c3_140, %c0_141] : memref<8x32xf32, #tpu.memory_space<vmem>>, vector<5x32xf32>
      %290 = arith.addf %288, %289 : vector<5x32xf32>
      %c1_142 = arith.constant 1 : index
      %c3_143 = arith.constant 3 : index
      %c0_144 = arith.constant 0 : index
      %291 = vector.load %arg23[%c1_142, %c3_143, %c0_144] : memref<3x8x32xf32, #tpu.memory_space<vmem>>, vector<1x5x32xf32>
      %292 = vector.shape_cast %291 : vector<1x5x32xf32> to vector<5x32xf32>
      %293 = vector.shape_cast %290 : vector<5x32xf32> to vector<1x5x32xf32>
      tpu.vector_store %arg23[%c1_142, %c3_143, %c0_144], %293 {strides = array<i32>} : memref<3x8x32xf32, #tpu.memory_space<vmem>>, vector<1x5x32xf32>,
      %c2_145 = arith.constant 2 : index
      %c0_146 = arith.constant 0 : index
      %c0_147 = arith.constant 0 : index
      %294 = vector.load %arg2[%c2_145, %c0_146, %c0_147] : memref<3x1x32xf32, #tpu.memory_space<vmem>>, vector<1x1x32xf32>
      %295 = vector.shape_cast %294 : vector<1x1x32xf32> to vector<1x32xf32>
      %c0_148 = arith.constant 0 : index
      %c0_149 = arith.constant 0 : index
      %296 = vector.load %arg5[%c0_148, %c0_149] : memref<8x32xf32, #tpu.memory_space<vmem>>, vector<1x32xf32>
      %297 = arith.addf %295, %296 : vector<1x32xf32>
      %c2_150 = arith.constant 2 : index
      %c0_151 = arith.constant 0 : index
      %c0_152 = arith.constant 0 : index
      %298 = vector.load %arg23[%c2_150, %c0_151, %c0_152] : memref<3x8x32xf32, #tpu.memory_space<vmem>>, vector<1x1x32xf32>
      %299 = vector.shape_cast %298 : vector<1x1x32xf32> to vector<1x32xf32>
      %300 = vector.shape_cast %297 : vector<1x32xf32> to vector<1x1x32xf32>
      tpu.vector_store %arg23[%c2_150, %c0_151, %c0_152], %300 {strides = array<i32>} : memref<3x8x32xf32, #tpu.memory_space<vmem>>, vector<1x1x32xf32>,
      %c0_153 = arith.constant 0 : index
      %c0_154 = arith.constant 0 : index
      %301 = vector.load %arg3[%c0_153, %c0_154] : memref<2x32xf32, #tpu.memory_space<vmem>>, vector<2x32xf32>
      %c1_155 = arith.constant 1 : index
      %c0_156 = arith.constant 0 : index
      %302 = vector.load %arg5[%c1_155, %c0_156] : memref<8x32xf32, #tpu.memory_space<vmem>>, vector<2x32xf32>
      %303 = arith.addf %301, %302 : vector<2x32xf32>
      %c2_157 = arith.constant 2 : index
      %c1_158 = arith.constant 1 : index
      %c0_159 = arith.constant 0 : index
      %304 = vector.load %arg23[%c2_157, %c1_158, %c0_159] : memref<3x8x32xf32, #tpu.memory_space<vmem>>, vector<1x2x32xf32>
      %305 = vector.shape_cast %304 : vector<1x2x32xf32> to vector<2x32xf32>
      %306 = vector.shape_cast %303 : vector<2x32xf32> to vector<1x2x32xf32>
      tpu.vector_store %arg23[%c2_157, %c1_158, %c0_159], %306 {strides = array<i32>} : memref<3x8x32xf32, #tpu.memory_space<vmem>>, vector<1x2x32xf32>,
      %c2_160 = arith.constant 2 : index
      %c0_161 = arith.constant 0 : index
      %c0_162 = arith.constant 0 : index
      %307 = vector.load %arg4[%c2_160, %c0_161, %c0_162] : memref<3x5x32xf32, #tpu.memory_space<vmem>>, vector<1x5x32xf32>
      %308 = vector.shape_cast %307 : vector<1x5x32xf32> to vector<5x32xf32>
      %c3_163 = arith.constant 3 : index
      %c0_164 = arith.constant 0 : index
      %309 = vector.load %arg5[%c3_163, %c0_164] : memref<8x32xf32, #tpu.memory_space<vmem>>, vector<5x32xf32>
      %310 = arith.addf %308, %309 : vector<5x32xf32>
      %c2_165 = arith.constant 2 : index
      %c3_166 = arith.constant 3 : index
      %c0_167 = arith.constant 0 : index
      %311 = vector.load %arg23[%c2_165, %c3_166, %c0_167] : memref<3x8x32xf32, #tpu.memory_space<vmem>>, vector<1x5x32xf32>
      %312 = vector.shape_cast %311 : vector<1x5x32xf32> to vector<5x32xf32>
      %313 = vector.shape_cast %310 : vector<5x32xf32> to vector<1x5x32xf32>
      tpu.vector_store %arg23[%c2_165, %c3_166, %c0_167], %313 {strides = array<i32>} : memref<3x8x32xf32, #tpu.memory_space<vmem>>, vector<1x5x32xf32>,
    } else {
    }
    %c1_i32 = arith.constant 1 : i32
    %3 = arith.cmpi sge, %arg0, %c1_i32 : i32
    %c2_i32 = arith.constant 2 : i32
    %4 = arith.cmpi slt, %arg0, %c2_i32 : i32
    %5 = arith.andi %3, %4 : i1
    %6 = arith.extui %5 : i1 to i32
    %c0_i32_1 = arith.constant 0 : i32
    %7 = arith.cmpi ne, %6, %c0_i32_1 : i32
    scf.if %7 {
      %c0_99 = arith.constant 0 : index
      %c0_100 = arith.constant 0 : index
      %c0_101 = arith.constant 0 : index
      %254 = vector.load %arg6[%c0_99, %c0_100, %c0_101] : memref<1x2x32xf32, #tpu.memory_space<vmem>>, vector<1x2x32xf32>
      %255 = vector.shape_cast %254 : vector<1x2x32xf32> to vector<2x32xf32>
      %c0_102 = arith.constant 0 : index
      %c1_103 = arith.constant 1 : index
      %c0_104 = arith.constant 0 : index
      %256 = vector.load %arg23[%c0_102, %c1_103, %c0_104] : memref<3x8x32xf32, #tpu.memory_space<vmem>>, vector<1x2x32xf32>
      %257 = vector.shape_cast %256 : vector<1x2x32xf32> to vector<2x32xf32>
      %258 = vector.shape_cast %255 : vector<2x32xf32> to vector<1x2x32xf32>
      tpu.vector_store %arg23[%c0_102, %c1_103, %c0_104], %258 {strides = array<i32>} : memref<3x8x32xf32, #tpu.memory_space<vmem>>, vector<1x2x32xf32>,
      %c0_105 = arith.constant 0 : index
      %c0_106 = arith.constant 0 : index
      %c0_107 = arith.constant 0 : index
      %259 = vector.load %arg6[%c0_105, %c0_106, %c0_107] : memref<1x2x32xf32, #tpu.memory_space<vmem>>, vector<1x2x32xf32>
      %260 = vector.shape_cast %259 : vector<1x2x32xf32> to vector<2x32xf32>
      %c1_108 = arith.constant 1 : index
      %c1_109 = arith.constant 1 : index
      %c0_110 = arith.constant 0 : index
      %261 = vector.load %arg23[%c1_108, %c1_109, %c0_110] : memref<3x8x32xf32, #tpu.memory_space<vmem>>, vector<1x2x32xf32>
      %262 = vector.shape_cast %261 : vector<1x2x32xf32> to vector<2x32xf32>
      %263 = vector.shape_cast %260 : vector<2x32xf32> to vector<1x2x32xf32>
      tpu.vector_store %arg23[%c1_108, %c1_109, %c0_110], %263 {strides = array<i32>} : memref<3x8x32xf32, #tpu.memory_space<vmem>>, vector<1x2x32xf32>,
      %c0_111 = arith.constant 0 : index
      %c0_112 = arith.constant 0 : index
      %c0_113 = arith.constant 0 : index
      %264 = vector.load %arg6[%c0_111, %c0_112, %c0_113] : memref<1x2x32xf32, #tpu.memory_space<vmem>>, vector<1x2x32xf32>
      %265 = vector.shape_cast %264 : vector<1x2x32xf32> to vector<2x32xf32>
      %c2_114 = arith.constant 2 : index
      %c1_115 = arith.constant 1 : index
      %c0_116 = arith.constant 0 : index
      %266 = vector.load %arg23[%c2_114, %c1_115, %c0_116] : memref<3x8x32xf32, #tpu.memory_space<vmem>>, vector<1x2x32xf32>
      %267 = vector.shape_cast %266 : vector<1x2x32xf32> to vector<2x32xf32>
      %268 = vector.shape_cast %265 : vector<2x32xf32> to vector<1x2x32xf32>
      tpu.vector_store %arg23[%c2_114, %c1_115, %c0_116], %268 {strides = array<i32>} : memref<3x8x32xf32, #tpu.memory_space<vmem>>, vector<1x2x32xf32>,
    } else {
    }
    %8 = tpu.iota {dimensions = array<i32: 0>} : vector<8x8xi32>
    %9 = tpu.iota {dimensions = array<i32: 1>} : vector<8x8xi32>
    %10 = arith.cmpi sgt, %9, %8 : vector<8x8xi32>
    %c8_i32 = arith.constant 8 : i32
    %11 = vector.broadcast %c8_i32 : i32 to vector<8x8xi32>
    %12 = arith.cmpi sge, %9, %11 : vector<8x8xi32>
    %13 = arith.ori %10, %12 : vector<8x8xi1>
    %cst = arith.constant -1.000000e+09 : f32
    %cst_2 = arith.constant 0.000000e+00 : f32
    %14 = vector.broadcast %cst : f32 to vector<8x8xf32>
    %15 = vector.broadcast %cst_2 : f32 to vector<8x8xf32>
    %16 = arith.select %13, %14, %15 : vector<8x8xi1>, vector<8x8xf32>
    %c0 = arith.constant 0 : index
    %c0_3 = arith.constant 0 : index
    %c0_4 = arith.constant 0 : index
    %17 = vector.load %arg23[%c0, %c0_3, %c0_4] : memref<3x8x32xf32, #tpu.memory_space<vmem>>, vector<3x8x32xf32>
    %c0_5 = arith.constant 0 : index
    %c0_6 = arith.constant 0 : index
    %c0_7 = arith.constant 0 : index
    %18 = vector.load %arg7[%c0_5, %c0_6, %c0_7] : memref<1x1x32xf32, #tpu.memory_space<vmem>>, vector<1x1x32xf32>
    %19 = vector.shape_cast %18 : vector<1x1x32xf32> to vector<1x32xf32>
    %c0_8 = arith.constant 0 : index
    %c0_9 = arith.constant 0 : index
    %c0_10 = arith.constant 0 : index
    %20 = vector.load %arg8[%c0_8, %c0_9, %c0_10] : memref<1x1x32xf32, #tpu.memory_space<vmem>>, vector<1x1x32xf32>
    %21 = vector.shape_cast %20 : vector<1x1x32xf32> to vector<1x32xf32>
    %cst_11 = arith.constant dense<0.000000e+00> : vector<3x8xf32>
    %22 = vector.multi_reduction <add>, %17, %cst_11 [2] : vector<3x8x32xf32> to vector<3x8xf32>
    %23 = vector.shape_cast %22 : vector<3x8xf32> to vector<3x8x1xf32>
    %cst_12 = arith.constant 3.200000e+01 : f32
    %24 = vector.broadcast %cst_12 : f32 to vector<3x8x1xf32>
    %25 = arith.divf %23, %24 : vector<3x8x1xf32>
    %26 = vector.broadcast %25 : vector<3x8x1xf32> to vector<3x8x32xf32>
    %27 = arith.subf %17, %26 : vector<3x8x32xf32>
    %28 = arith.mulf %27, %27 : vector<3x8x32xf32>
    %cst_13 = arith.constant dense<0.000000e+00> : vector<3x8xf32>
    %29 = vector.multi_reduction <add>, %28, %cst_13 [2] : vector<3x8x32xf32> to vector<3x8xf32>
    %30 = vector.shape_cast %29 : vector<3x8xf32> to vector<3x8x1xf32>
    %cst_14 = arith.constant 3.200000e+01 : f32
    %31 = vector.broadcast %cst_14 : f32 to vector<3x8x1xf32>
    %32 = arith.divf %30, %31 : vector<3x8x1xf32>
    %33 = vector.broadcast %25 : vector<3x8x1xf32> to vector<3x8x32xf32>
    %34 = arith.subf %17, %33 : vector<3x8x32xf32>
    %cst_15 = arith.constant 9.99999974E-6 : f32
    %35 = vector.broadcast %cst_15 : f32 to vector<3x8x1xf32>
    %36 = arith.addf %32, %35 : vector<3x8x1xf32>
    %37 = math.rsqrt %36 : vector<3x8x1xf32>
    %38 = vector.broadcast %37 : vector<3x8x1xf32> to vector<3x8x32xf32>
    %39 = arith.mulf %34, %38 : vector<3x8x32xf32>
    %40 = vector.shape_cast %19 : vector<1x32xf32> to vector<1x1x32xf32>
    %41 = vector.broadcast %40 : vector<1x1x32xf32> to vector<3x8x32xf32>
    %42 = arith.mulf %39, %41 : vector<3x8x32xf32>
    %43 = vector.shape_cast %21 : vector<1x32xf32> to vector<1x1x32xf32>
    %44 = vector.broadcast %43 : vector<1x1x32xf32> to vector<3x8x32xf32>
    %45 = arith.addf %42, %44 : vector<3x8x32xf32>
    %46 = vector.shape_cast %45 : vector<3x8x32xf32> to vector<24x32xf32>
    %47 = arith.truncf %46 : vector<24x32xf32> to vector<24x32xbf16>
    %c0_16 = arith.constant 0 : index
    %c0_17 = arith.constant 0 : index
    %c0_18 = arith.constant 0 : index
    %48 = vector.load %arg9[%c0_16, %c0_17, %c0_18] : memref<1x32x96xbf16, #tpu.memory_space<vmem>>, vector<1x32x96xbf16>
    %49 = vector.shape_cast %48 : vector<1x32x96xbf16> to vector<32x96xbf16>
    %cst_19 = arith.constant dense<0.000000e+00> : vector<24x96xf32>
    %50 = tpu.matmul %47, %49, %cst_19 {dimension_numbers = #tpu.dot_dimension_numbers<[1], [0], [0], [1], [0, 0, 1, 1], [], []>} : vector<24x32xbf16>, vector<32x96xbf16>, vector<24x96xf32> -> vector<24x96xf32>
    %c0_20 = arith.constant 0 : index
    %c0_21 = arith.constant 0 : index
    %c0_22 = arith.constant 0 : index
    %51 = vector.load %arg10[%c0_20, %c0_21, %c0_22] : memref<1x1x96xf32, #tpu.memory_space<vmem>>, vector<1x1x96xf32>
    %52 = vector.shape_cast %51 : vector<1x1x96xf32> to vector<1x96xf32>
    %53 = vector.broadcast %52 : vector<1x96xf32> to vector<24x96xf32>
    %54 = arith.addf %50, %53 : vector<24x96xf32>
    %cst_23 = arith.constant 0.000000e+00 : f32
    %55 = vector.broadcast %cst_23 : f32 to vector<24x32xf32>
    %56 = vector.extract_strided_slice %54 {offsets = [0, 0], sizes = [24, 8], strides = [1, 1]} : vector<24x96xf32> to vector<24x8xf32>
    %57 = vector.shape_cast %56 : vector<24x8xf32> to vector<3x8x8xf32>
    %58 = vector.extract_strided_slice %54 {offsets = [0, 32], sizes = [24, 8], strides = [1, 1]} : vector<24x96xf32> to vector<24x8xf32>
    %59 = vector.shape_cast %58 : vector<24x8xf32> to vector<3x8x8xf32>
    %60 = vector.extract_strided_slice %54 {offsets = [0, 64], sizes = [24, 8], strides = [1, 1]} : vector<24x96xf32> to vector<24x8xf32>
    %61 = vector.shape_cast %60 : vector<24x8xf32> to vector<3x8x8xf32>
    %62 = arith.truncf %57 : vector<3x8x8xf32> to vector<3x8x8xbf16>
    %63 = arith.truncf %59 : vector<3x8x8xf32> to vector<3x8x8xbf16>
    %cst_24 = arith.constant dense<0.000000e+00> : vector<3x8x8xf32>
    %64 = tpu.matmul %62, %63, %cst_24 {dimension_numbers = #tpu.dot_dimension_numbers<[2], [2], [1], [1], [0, 0, 0, 1, 1, 1], [0], [0]>} : vector<3x8x8xbf16>, vector<3x8x8xbf16>, vector<3x8x8xf32> -> vector<3x8x8xf32>
    %cst_25 = arith.constant 0.353553385 : f32
    %65 = vector.broadcast %cst_25 : f32 to vector<3x8x8xf32>
    %66 = arith.mulf %64, %65 : vector<3x8x8xf32>
    %67 = vector.shape_cast %16 : vector<8x8xf32> to vector<1x8x8xf32>
    %68 = vector.broadcast %67 : vector<1x8x8xf32> to vector<3x8x8xf32>
    %69 = arith.addf %66, %68 : vector<3x8x8xf32>
    %cst_26 = arith.constant dense<0xFF800000> : vector<3x8xf32>
    %70 = vector.multi_reduction <maximumf>, %69, %cst_26 [2] : vector<3x8x8xf32> to vector<3x8xf32>
    %71 = vector.shape_cast %70 : vector<3x8xf32> to vector<3x8x1xf32>
    %72 = vector.broadcast %71 : vector<3x8x1xf32> to vector<3x8x8xf32>
    %73 = arith.subf %69, %72 : vector<3x8x8xf32>
    %74 = math.exp %73 : vector<3x8x8xf32>
    %cst_27 = arith.constant dense<0.000000e+00> : vector<3x8xf32>
    %75 = vector.multi_reduction <add>, %74, %cst_27 [2] : vector<3x8x8xf32> to vector<3x8xf32>
    %76 = vector.shape_cast %75 : vector<3x8xf32> to vector<3x8x1xf32>
    %77 = tpu.reciprocal %76 {approx = true} : vector<3x8x1xf32> -> vector<3x8x1xf32>
    %78 = vector.broadcast %77 : vector<3x8x1xf32> to vector<3x8x8xf32>
    %79 = arith.mulf %74, %78 : vector<3x8x8xf32>
    %80 = arith.truncf %79 : vector<3x8x8xf32> to vector<3x8x8xbf16>
    %81 = arith.truncf %61 : vector<3x8x8xf32> to vector<3x8x8xbf16>
    %cst_28 = arith.constant dense<0.000000e+00> : vector<3x8x8xf32>
    %82 = tpu.matmul %80, %81, %cst_28 {dimension_numbers = #tpu.dot_dimension_numbers<[2], [1], [1], [2], [0, 0, 0, 1, 1, 2], [0], [0]>} : vector<3x8x8xbf16>, vector<3x8x8xbf16>, vector<3x8x8xf32> -> vector<3x8x8xf32>
    %83 = vector.shape_cast %82 : vector<3x8x8xf32> to vector<24x8xf32>
    %84 = arith.truncf %83 : vector<24x8xf32> to vector<24x8xbf16>
    %c0_29 = arith.constant 0 : index
    %c0_30 = arith.constant 0 : index
    %c0_31 = arith.constant 0 : index
    %c0_32 = arith.constant 0 : index
    %85 = vector.load %arg11[%c0_29, %c0_30, %c0_31, %c0_32] : memref<1x4x8x32xbf16, #tpu.memory_space<vmem>>, vector<1x1x8x32xbf16>
    %86 = vector.shape_cast %85 : vector<1x1x8x32xbf16> to vector<8x32xbf16>
    %cst_33 = arith.constant dense<0.000000e+00> : vector<24x32xf32>
    %87 = tpu.matmul %84, %86, %cst_33 {dimension_numbers = #tpu.dot_dimension_numbers<[1], [0], [0], [1], [0, 0, 1, 1], [], []>} : vector<24x8xbf16>, vector<8x32xbf16>, vector<24x32xf32> -> vector<24x32xf32>
    %88 = arith.addf %55, %87 : vector<24x32xf32>
    %89 = vector.extract_strided_slice %54 {offsets = [0, 8], sizes = [24, 8], strides = [1, 1]} : vector<24x96xf32> to vector<24x8xf32>
    %90 = vector.shape_cast %89 : vector<24x8xf32> to vector<3x8x8xf32>
    %91 = vector.extract_strided_slice %54 {offsets = [0, 40], sizes = [24, 8], strides = [1, 1]} : vector<24x96xf32> to vector<24x8xf32>
    %92 = vector.shape_cast %91 : vector<24x8xf32> to vector<3x8x8xf32>
    %93 = vector.extract_strided_slice %54 {offsets = [0, 72], sizes = [24, 8], strides = [1, 1]} : vector<24x96xf32> to vector<24x8xf32>
    %94 = vector.shape_cast %93 : vector<24x8xf32> to vector<3x8x8xf32>
    %95 = arith.truncf %90 : vector<3x8x8xf32> to vector<3x8x8xbf16>
    %96 = arith.truncf %92 : vector<3x8x8xf32> to vector<3x8x8xbf16>
    %cst_34 = arith.constant dense<0.000000e+00> : vector<3x8x8xf32>
    %97 = tpu.matmul %95, %96, %cst_34 {dimension_numbers = #tpu.dot_dimension_numbers<[2], [2], [1], [1], [0, 0, 0, 1, 1, 1], [0], [0]>} : vector<3x8x8xbf16>, vector<3x8x8xbf16>, vector<3x8x8xf32> -> vector<3x8x8xf32>
    %cst_35 = arith.constant 0.353553385 : f32
    %98 = vector.broadcast %cst_35 : f32 to vector<3x8x8xf32>
    %99 = arith.mulf %97, %98 : vector<3x8x8xf32>
    %100 = vector.shape_cast %16 : vector<8x8xf32> to vector<1x8x8xf32>
    %101 = vector.broadcast %100 : vector<1x8x8xf32> to vector<3x8x8xf32>
    %102 = arith.addf %99, %101 : vector<3x8x8xf32>
    %cst_36 = arith.constant dense<0xFF800000> : vector<3x8xf32>
    %103 = vector.multi_reduction <maximumf>, %102, %cst_36 [2] : vector<3x8x8xf32> to vector<3x8xf32>
    %104 = vector.shape_cast %103 : vector<3x8xf32> to vector<3x8x1xf32>
    %105 = vector.broadcast %104 : vector<3x8x1xf32> to vector<3x8x8xf32>
    %106 = arith.subf %102, %105 : vector<3x8x8xf32>
    %107 = math.exp %106 : vector<3x8x8xf32>
    %cst_37 = arith.constant dense<0.000000e+00> : vector<3x8xf32>
    %108 = vector.multi_reduction <add>, %107, %cst_37 [2] : vector<3x8x8xf32> to vector<3x8xf32>
    %109 = vector.shape_cast %108 : vector<3x8xf32> to vector<3x8x1xf32>
    %110 = tpu.reciprocal %109 {approx = true} : vector<3x8x1xf32> -> vector<3x8x1xf32>
    %111 = vector.broadcast %110 : vector<3x8x1xf32> to vector<3x8x8xf32>
    %112 = arith.mulf %107, %111 : vector<3x8x8xf32>
    %113 = arith.truncf %112 : vector<3x8x8xf32> to vector<3x8x8xbf16>
    %114 = arith.truncf %94 : vector<3x8x8xf32> to vector<3x8x8xbf16>
    %cst_38 = arith.constant dense<0.000000e+00> : vector<3x8x8xf32>
    %115 = tpu.matmul %113, %114, %cst_38 {dimension_numbers = #tpu.dot_dimension_numbers<[2], [1], [1], [2], [0, 0, 0, 1, 1, 2], [0], [0]>} : vector<3x8x8xbf16>, vector<3x8x8xbf16>, vector<3x8x8xf32> -> vector<3x8x8xf32>
    %116 = vector.shape_cast %115 : vector<3x8x8xf32> to vector<24x8xf32>
    %117 = arith.truncf %116 : vector<24x8xf32> to vector<24x8xbf16>
    %c0_39 = arith.constant 0 : index
    %c1 = arith.constant 1 : index
    %c0_40 = arith.constant 0 : index
    %c0_41 = arith.constant 0 : index
    %118 = vector.load %arg11[%c0_39, %c1, %c0_40, %c0_41] : memref<1x4x8x32xbf16, #tpu.memory_space<vmem>>, vector<1x1x8x32xbf16>
    %119 = vector.shape_cast %118 : vector<1x1x8x32xbf16> to vector<8x32xbf16>
    %cst_42 = arith.constant dense<0.000000e+00> : vector<24x32xf32>
    %120 = tpu.matmul %117, %119, %cst_42 {dimension_numbers = #tpu.dot_dimension_numbers<[1], [0], [0], [1], [0, 0, 1, 1], [], []>} : vector<24x8xbf16>, vector<8x32xbf16>, vector<24x32xf32> -> vector<24x32xf32>
    %121 = arith.addf %88, %120 : vector<24x32xf32>
    %122 = vector.extract_strided_slice %54 {offsets = [0, 16], sizes = [24, 8], strides = [1, 1]} : vector<24x96xf32> to vector<24x8xf32>
    %123 = vector.shape_cast %122 : vector<24x8xf32> to vector<3x8x8xf32>
    %124 = vector.extract_strided_slice %54 {offsets = [0, 48], sizes = [24, 8], strides = [1, 1]} : vector<24x96xf32> to vector<24x8xf32>
    %125 = vector.shape_cast %124 : vector<24x8xf32> to vector<3x8x8xf32>
    %126 = vector.extract_strided_slice %54 {offsets = [0, 80], sizes = [24, 8], strides = [1, 1]} : vector<24x96xf32> to vector<24x8xf32>
    %127 = vector.shape_cast %126 : vector<24x8xf32> to vector<3x8x8xf32>
    %128 = arith.truncf %123 : vector<3x8x8xf32> to vector<3x8x8xbf16>
    %129 = arith.truncf %125 : vector<3x8x8xf32> to vector<3x8x8xbf16>
    %cst_43 = arith.constant dense<0.000000e+00> : vector<3x8x8xf32>
    %130 = tpu.matmul %128, %129, %cst_43 {dimension_numbers = #tpu.dot_dimension_numbers<[2], [2], [1], [1], [0, 0, 0, 1, 1, 1], [0], [0]>} : vector<3x8x8xbf16>, vector<3x8x8xbf16>, vector<3x8x8xf32> -> vector<3x8x8xf32>
    %cst_44 = arith.constant 0.353553385 : f32
    %131 = vector.broadcast %cst_44 : f32 to vector<3x8x8xf32>
    %132 = arith.mulf %130, %131 : vector<3x8x8xf32>
    %133 = vector.shape_cast %16 : vector<8x8xf32> to vector<1x8x8xf32>
    %134 = vector.broadcast %133 : vector<1x8x8xf32> to vector<3x8x8xf32>
    %135 = arith.addf %132, %134 : vector<3x8x8xf32>
    %cst_45 = arith.constant dense<0xFF800000> : vector<3x8xf32>
    %136 = vector.multi_reduction <maximumf>, %135, %cst_45 [2] : vector<3x8x8xf32> to vector<3x8xf32>
    %137 = vector.shape_cast %136 : vector<3x8xf32> to vector<3x8x1xf32>
    %138 = vector.broadcast %137 : vector<3x8x1xf32> to vector<3x8x8xf32>
    %139 = arith.subf %135, %138 : vector<3x8x8xf32>
    %140 = math.exp %139 : vector<3x8x8xf32>
    %cst_46 = arith.constant dense<0.000000e+00> : vector<3x8xf32>
    %141 = vector.multi_reduction <add>, %140, %cst_46 [2] : vector<3x8x8xf32> to vector<3x8xf32>
    %142 = vector.shape_cast %141 : vector<3x8xf32> to vector<3x8x1xf32>
    %143 = tpu.reciprocal %142 {approx = true} : vector<3x8x1xf32> -> vector<3x8x1xf32>
    %144 = vector.broadcast %143 : vector<3x8x1xf32> to vector<3x8x8xf32>
    %145 = arith.mulf %140, %144 : vector<3x8x8xf32>
    %146 = arith.truncf %145 : vector<3x8x8xf32> to vector<3x8x8xbf16>
    %147 = arith.truncf %127 : vector<3x8x8xf32> to vector<3x8x8xbf16>
    %cst_47 = arith.constant dense<0.000000e+00> : vector<3x8x8xf32>
    %148 = tpu.matmul %146, %147, %cst_47 {dimension_numbers = #tpu.dot_dimension_numbers<[2], [1], [1], [2], [0, 0, 0, 1, 1, 2], [0], [0]>} : vector<3x8x8xbf16>, vector<3x8x8xbf16>, vector<3x8x8xf32> -> vector<3x8x8xf32>
    %149 = vector.shape_cast %148 : vector<3x8x8xf32> to vector<24x8xf32>
    %150 = arith.truncf %149 : vector<24x8xf32> to vector<24x8xbf16>
    %c0_48 = arith.constant 0 : index
    %c2 = arith.constant 2 : index
    %c0_49 = arith.constant 0 : index
    %c0_50 = arith.constant 0 : index
    %151 = vector.load %arg11[%c0_48, %c2, %c0_49, %c0_50] : memref<1x4x8x32xbf16, #tpu.memory_space<vmem>>, vector<1x1x8x32xbf16>
    %152 = vector.shape_cast %151 : vector<1x1x8x32xbf16> to vector<8x32xbf16>
    %cst_51 = arith.constant dense<0.000000e+00> : vector<24x32xf32>
    %153 = tpu.matmul %150, %152, %cst_51 {dimension_numbers = #tpu.dot_dimension_numbers<[1], [0], [0], [1], [0, 0, 1, 1], [], []>} : vector<24x8xbf16>, vector<8x32xbf16>, vector<24x32xf32> -> vector<24x32xf32>
    %154 = arith.addf %121, %153 : vector<24x32xf32>
    %155 = vector.extract_strided_slice %54 {offsets = [0, 24], sizes = [24, 8], strides = [1, 1]} : vector<24x96xf32> to vector<24x8xf32>
    %156 = vector.shape_cast %155 : vector<24x8xf32> to vector<3x8x8xf32>
    %157 = vector.extract_strided_slice %54 {offsets = [0, 56], sizes = [24, 8], strides = [1, 1]} : vector<24x96xf32> to vector<24x8xf32>
    %158 = vector.shape_cast %157 : vector<24x8xf32> to vector<3x8x8xf32>
    %159 = vector.extract_strided_slice %54 {offsets = [0, 88], sizes = [24, 8], strides = [1, 1]} : vector<24x96xf32> to vector<24x8xf32>
    %160 = vector.shape_cast %159 : vector<24x8xf32> to vector<3x8x8xf32>
    %161 = arith.truncf %156 : vector<3x8x8xf32> to vector<3x8x8xbf16>
    %162 = arith.truncf %158 : vector<3x8x8xf32> to vector<3x8x8xbf16>
    %cst_52 = arith.constant dense<0.000000e+00> : vector<3x8x8xf32>
    %163 = tpu.matmul %161, %162, %cst_52 {dimension_numbers = #tpu.dot_dimension_numbers<[2], [2], [1], [1], [0, 0, 0, 1, 1, 1], [0], [0]>} : vector<3x8x8xbf16>, vector<3x8x8xbf16>, vector<3x8x8xf32> -> vector<3x8x8xf32>
    %cst_53 = arith.constant 0.353553385 : f32
    %164 = vector.broadcast %cst_53 : f32 to vector<3x8x8xf32>
    %165 = arith.mulf %163, %164 : vector<3x8x8xf32>
    %166 = vector.shape_cast %16 : vector<8x8xf32> to vector<1x8x8xf32>
    %167 = vector.broadcast %166 : vector<1x8x8xf32> to vector<3x8x8xf32>
    %168 = arith.addf %165, %167 : vector<3x8x8xf32>
    %cst_54 = arith.constant dense<0xFF800000> : vector<3x8xf32>
    %169 = vector.multi_reduction <maximumf>, %168, %cst_54 [2] : vector<3x8x8xf32> to vector<3x8xf32>
    %170 = vector.shape_cast %169 : vector<3x8xf32> to vector<3x8x1xf32>
    %171 = vector.broadcast %170 : vector<3x8x1xf32> to vector<3x8x8xf32>
    %172 = arith.subf %168, %171 : vector<3x8x8xf32>
    %173 = math.exp %172 : vector<3x8x8xf32>
    %cst_55 = arith.constant dense<0.000000e+00> : vector<3x8xf32>
    %174 = vector.multi_reduction <add>, %173, %cst_55 [2] : vector<3x8x8xf32> to vector<3x8xf32>
    %175 = vector.shape_cast %174 : vector<3x8xf32> to vector<3x8x1xf32>
    %176 = tpu.reciprocal %175 {approx = true} : vector<3x8x1xf32> -> vector<3x8x1xf32>
    %177 = vector.broadcast %176 : vector<3x8x1xf32> to vector<3x8x8xf32>
    %178 = arith.mulf %173, %177 : vector<3x8x8xf32>
    %179 = arith.truncf %178 : vector<3x8x8xf32> to vector<3x8x8xbf16>
    %180 = arith.truncf %160 : vector<3x8x8xf32> to vector<3x8x8xbf16>
    %cst_56 = arith.constant dense<0.000000e+00> : vector<3x8x8xf32>
    %181 = tpu.matmul %179, %180, %cst_56 {dimension_numbers = #tpu.dot_dimension_numbers<[2], [1], [1], [2], [0, 0, 0, 1, 1, 2], [0], [0]>} : vector<3x8x8xbf16>, vector<3x8x8xbf16>, vector<3x8x8xf32> -> vector<3x8x8xf32>
    %182 = vector.shape_cast %181 : vector<3x8x8xf32> to vector<24x8xf32>
    %183 = arith.truncf %182 : vector<24x8xf32> to vector<24x8xbf16>
    %c0_57 = arith.constant 0 : index
    %c3 = arith.constant 3 : index
    %c0_58 = arith.constant 0 : index
    %c0_59 = arith.constant 0 : index
    %184 = vector.load %arg11[%c0_57, %c3, %c0_58, %c0_59] : memref<1x4x8x32xbf16, #tpu.memory_space<vmem>>, vector<1x1x8x32xbf16>
    %185 = vector.shape_cast %184 : vector<1x1x8x32xbf16> to vector<8x32xbf16>
    %cst_60 = arith.constant dense<0.000000e+00> : vector<24x32xf32>
    %186 = tpu.matmul %183, %185, %cst_60 {dimension_numbers = #tpu.dot_dimension_numbers<[1], [0], [0], [1], [0, 0, 1, 1], [], []>} : vector<24x8xbf16>, vector<8x32xbf16>, vector<24x32xf32> -> vector<24x32xf32>
    %187 = arith.addf %154, %186 : vector<24x32xf32>
    %c0_61 = arith.constant 0 : index
    %c0_62 = arith.constant 0 : index
    %c0_63 = arith.constant 0 : index
    %188 = vector.load %arg12[%c0_61, %c0_62, %c0_63] : memref<1x1x32xf32, #tpu.memory_space<vmem>>, vector<1x1x32xf32>
    %189 = vector.shape_cast %188 : vector<1x1x32xf32> to vector<1x32xf32>
    %190 = vector.broadcast %189 : vector<1x32xf32> to vector<24x32xf32>
    %191 = arith.addf %187, %190 : vector<24x32xf32>
    %192 = vector.shape_cast %191 : vector<24x32xf32> to vector<3x8x32xf32>
    %193 = arith.addf %17, %192 : vector<3x8x32xf32>
    %c0_64 = arith.constant 0 : index
    %c0_65 = arith.constant 0 : index
    %c0_66 = arith.constant 0 : index
    %194 = vector.load %arg23[%c0_64, %c0_65, %c0_66] : memref<3x8x32xf32, #tpu.memory_space<vmem>>, vector<3x8x32xf32>
    tpu.vector_store %arg23[%c0_64, %c0_65, %c0_66], %193 {strides = array<i32>} : memref<3x8x32xf32, #tpu.memory_space<vmem>>, vector<3x8x32xf32>,
    %c0_67 = arith.constant 0 : index
    %c0_68 = arith.constant 0 : index
    %c0_69 = arith.constant 0 : index
    %195 = vector.load %arg13[%c0_67, %c0_68, %c0_69] : memref<1x1x32xf32, #tpu.memory_space<vmem>>, vector<1x1x32xf32>
    %196 = vector.shape_cast %195 : vector<1x1x32xf32> to vector<1x32xf32>
    %c0_70 = arith.constant 0 : index
    %c0_71 = arith.constant 0 : index
    %c0_72 = arith.constant 0 : index
    %197 = vector.load %arg14[%c0_70, %c0_71, %c0_72] : memref<1x1x32xf32, #tpu.memory_space<vmem>>, vector<1x1x32xf32>
    %198 = vector.shape_cast %197 : vector<1x1x32xf32> to vector<1x32xf32>
    %cst_73 = arith.constant dense<0.000000e+00> : vector<3x8xf32>
    %199 = vector.multi_reduction <add>, %193, %cst_73 [2] : vector<3x8x32xf32> to vector<3x8xf32>
    %200 = vector.shape_cast %199 : vector<3x8xf32> to vector<3x8x1xf32>
    %cst_74 = arith.constant 3.200000e+01 : f32
    %201 = vector.broadcast %cst_74 : f32 to vector<3x8x1xf32>
    %202 = arith.divf %200, %201 : vector<3x8x1xf32>
    %203 = vector.broadcast %202 : vector<3x8x1xf32> to vector<3x8x32xf32>
    %204 = arith.subf %193, %203 : vector<3x8x32xf32>
    %205 = arith.mulf %204, %204 : vector<3x8x32xf32>
    %cst_75 = arith.constant dense<0.000000e+00> : vector<3x8xf32>
    %206 = vector.multi_reduction <add>, %205, %cst_75 [2] : vector<3x8x32xf32> to vector<3x8xf32>
    %207 = vector.shape_cast %206 : vector<3x8xf32> to vector<3x8x1xf32>
    %cst_76 = arith.constant 3.200000e+01 : f32
    %208 = vector.broadcast %cst_76 : f32 to vector<3x8x1xf32>
    %209 = arith.divf %207, %208 : vector<3x8x1xf32>
    %210 = vector.broadcast %202 : vector<3x8x1xf32> to vector<3x8x32xf32>
    %211 = arith.subf %193, %210 : vector<3x8x32xf32>
    %cst_77 = arith.constant 9.99999974E-6 : f32
    %212 = vector.broadcast %cst_77 : f32 to vector<3x8x1xf32>
    %213 = arith.addf %209, %212 : vector<3x8x1xf32>
    %214 = math.rsqrt %213 : vector<3x8x1xf32>
    %215 = vector.broadcast %214 : vector<3x8x1xf32> to vector<3x8x32xf32>
    %216 = arith.mulf %211, %215 : vector<3x8x32xf32>
    %217 = vector.shape_cast %196 : vector<1x32xf32> to vector<1x1x32xf32>
    %218 = vector.broadcast %217 : vector<1x1x32xf32> to vector<3x8x32xf32>
    %219 = arith.mulf %216, %218 : vector<3x8x32xf32>
    %220 = vector.shape_cast %198 : vector<1x32xf32> to vector<1x1x32xf32>
    %221 = vector.broadcast %220 : vector<1x1x32xf32> to vector<3x8x32xf32>
    %222 = arith.addf %219, %221 : vector<3x8x32xf32>
    %223 = vector.shape_cast %222 : vector<3x8x32xf32> to vector<24x32xf32>
    %224 = arith.truncf %223 : vector<24x32xf32> to vector<24x32xbf16>
    %c0_78 = arith.constant 0 : index
    %c0_79 = arith.constant 0 : index
    %c0_80 = arith.constant 0 : index
    %225 = vector.load %arg15[%c0_78, %c0_79, %c0_80] : memref<1x32x128xbf16, #tpu.memory_space<vmem>>, vector<1x32x128xbf16>
    %226 = vector.shape_cast %225 : vector<1x32x128xbf16> to vector<32x128xbf16>
    %cst_81 = arith.constant dense<0.000000e+00> : vector<24x128xf32>
    %227 = tpu.matmul %224, %226, %cst_81 {dimension_numbers = #tpu.dot_dimension_numbers<[1], [0], [0], [1], [0, 0, 1, 1], [], []>} : vector<24x32xbf16>, vector<32x128xbf16>, vector<24x128xf32> -> vector<24x128xf32>
    %c0_82 = arith.constant 0 : index
    %c0_83 = arith.constant 0 : index
    %c0_84 = arith.constant 0 : index
    %228 = vector.load %arg16[%c0_82, %c0_83, %c0_84] : memref<1x1x128xf32, #tpu.memory_space<vmem>>, vector<1x1x128xf32>
    %229 = vector.shape_cast %228 : vector<1x1x128xf32> to vector<1x128xf32>
    %230 = vector.broadcast %229 : vector<1x128xf32> to vector<24x128xf32>
    %231 = arith.addf %227, %230 : vector<24x128xf32>
    %cst_85 = arith.constant 1.702000e+00 : f32
    %232 = vector.broadcast %cst_85 : f32 to vector<24x128xf32>
    %233 = arith.mulf %232, %231 : vector<24x128xf32>
    %234 = arith.negf %233 : vector<24x128xf32>
    %235 = math.exp %234 : vector<24x128xf32>
    %cst_86 = arith.constant 1.000000e+00 : f32
    %236 = vector.broadcast %cst_86 : f32 to vector<24x128xf32>
    %237 = arith.addf %236, %235 : vector<24x128xf32>
    %238 = arith.divf %236, %237 : vector<24x128xf32>
    %239 = arith.mulf %231, %238 : vector<24x128xf32>
    %240 = arith.truncf %239 : vector<24x128xf32> to vector<24x128xbf16>
    %c0_87 = arith.constant 0 : index
    %c0_88 = arith.constant 0 : index
    %c0_89 = arith.constant 0 : index
    %241 = vector.load %arg17[%c0_87, %c0_88, %c0_89] : memref<1x128x32xbf16, #tpu.memory_space<vmem>>, vector<1x128x32xbf16>
    %242 = vector.shape_cast %241 : vector<1x128x32xbf16> to vector<128x32xbf16>
    %cst_90 = arith.constant dense<0.000000e+00> : vector<24x32xf32>
    %243 = tpu.matmul %240, %242, %cst_90 {dimension_numbers = #tpu.dot_dimension_numbers<[1], [0], [0], [1], [0, 0, 1, 1], [], []>} : vector<24x128xbf16>, vector<128x32xbf16>, vector<24x32xf32> -> vector<24x32xf32>
    %c0_91 = arith.constant 0 : index
    %c0_92 = arith.constant 0 : index
    %c0_93 = arith.constant 0 : index
    %244 = vector.load %arg18[%c0_91, %c0_92, %c0_93] : memref<1x1x32xf32, #tpu.memory_space<vmem>>, vector<1x1x32xf32>
    %245 = vector.shape_cast %244 : vector<1x1x32xf32> to vector<1x32xf32>
    %246 = vector.broadcast %245 : vector<1x32xf32> to vector<24x32xf32>
    %247 = arith.addf %243, %246 : vector<24x32xf32>
    %248 = vector.shape_cast %247 : vector<24x32xf32> to vector<3x8x32xf32>
    %249 = arith.addf %193, %248 : vector<3x8x32xf32>
    %c0_94 = arith.constant 0 : index
    %c0_95 = arith.constant 0 : index
    %c0_96 = arith.constant 0 : index
    %250 = vector.load %arg23[%c0_94, %c0_95, %c0_96] : memref<3x8x32xf32, #tpu.memory_space<vmem>>, vector<3x8x32xf32>
    tpu.vector_store %arg23[%c0_94, %c0_95, %c0_96], %249 {strides = array<i32>} : memref<3x8x32xf32, #tpu.memory_space<vmem>>, vector<3x8x32xf32>,
    %c1_i32_97 = arith.constant 1 : i32
    %251 = arith.cmpi eq, %arg0, %c1_i32_97 : i32
    %252 = arith.extui %251 : i1 to i32
    %c0_i32_98 = arith.constant 0 : i32
    %253 = arith.cmpi ne, %252, %c0_i32_98 : i32
    scf.if %253 {
      %254 = tpu.iota {dimensions = array<i32: 0>} : vector<8x1xi32>
      %c0_99 = arith.constant 0 : index
      %255 = memref.load %arg1[%c0_99] : memref<3xi32, #tpu.memory_space<smem>>
      %256 = vector.broadcast %255 : i32 to vector<8x1xi32>
      %257 = arith.cmpi eq, %254, %256 : vector<8x1xi32>
      %258 = arith.extui %257 : vector<8x1xi1> to vector<8x1xi32>
      %259 = arith.sitofp %258 : vector<8x1xi32> to vector<8x1xf32>
      %c0_100 = arith.constant 0 : index
      %c0_101 = arith.constant 0 : index
      %c0_102 = arith.constant 0 : index
      %260 = vector.load %arg23[%c0_100, %c0_101, %c0_102] : memref<3x8x32xf32, #tpu.memory_space<vmem>>, vector<1x8x32xf32>
      %261 = vector.shape_cast %260 : vector<1x8x32xf32> to vector<8x32xf32>
      %262 = vector.broadcast %259 : vector<8x1xf32> to vector<8x32xf32>
      %263 = arith.mulf %261, %262 : vector<8x32xf32>
      %cst_103 = arith.constant dense<0.000000e+00> : vector<32xf32>
      %264 = vector.multi_reduction <add>, %263, %cst_103 [0] : vector<8x32xf32> to vector<32xf32>
      %265 = vector.shape_cast %264 : vector<32xf32> to vector<1x32xf32>
      %c1_104 = arith.constant 1 : index
      %266 = memref.load %arg1[%c1_104] : memref<3xi32, #tpu.memory_space<smem>>
      %267 = vector.broadcast %266 : i32 to vector<8x1xi32>
      %268 = arith.cmpi eq, %254, %267 : vector<8x1xi32>
      %269 = arith.extui %268 : vector<8x1xi1> to vector<8x1xi32>
      %270 = arith.sitofp %269 : vector<8x1xi32> to vector<8x1xf32>
      %c1_105 = arith.constant 1 : index
      %c0_106 = arith.constant 0 : index
      %c0_107 = arith.constant 0 : index
      %271 = vector.load %arg23[%c1_105, %c0_106, %c0_107] : memref<3x8x32xf32, #tpu.memory_space<vmem>>, vector<1x8x32xf32>
      %272 = vector.shape_cast %271 : vector<1x8x32xf32> to vector<8x32xf32>
      %273 = vector.broadcast %270 : vector<8x1xf32> to vector<8x32xf32>
      %274 = arith.mulf %272, %273 : vector<8x32xf32>
      %cst_108 = arith.constant dense<0.000000e+00> : vector<32xf32>
      %275 = vector.multi_reduction <add>, %274, %cst_108 [0] : vector<8x32xf32> to vector<32xf32>
      %276 = vector.shape_cast %275 : vector<32xf32> to vector<1x32xf32>
      %c2_109 = arith.constant 2 : index
      %277 = memref.load %arg1[%c2_109] : memref<3xi32, #tpu.memory_space<smem>>
      %278 = vector.broadcast %277 : i32 to vector<8x1xi32>
      %279 = arith.cmpi eq, %254, %278 : vector<8x1xi32>
      %280 = arith.extui %279 : vector<8x1xi1> to vector<8x1xi32>
      %281 = arith.sitofp %280 : vector<8x1xi32> to vector<8x1xf32>
      %c2_110 = arith.constant 2 : index
      %c0_111 = arith.constant 0 : index
      %c0_112 = arith.constant 0 : index
      %282 = vector.load %arg23[%c2_110, %c0_111, %c0_112] : memref<3x8x32xf32, #tpu.memory_space<vmem>>, vector<1x8x32xf32>
      %283 = vector.shape_cast %282 : vector<1x8x32xf32> to vector<8x32xf32>
      %284 = vector.broadcast %281 : vector<8x1xf32> to vector<8x32xf32>
      %285 = arith.mulf %283, %284 : vector<8x32xf32>
      %cst_113 = arith.constant dense<0.000000e+00> : vector<32xf32>
      %286 = vector.multi_reduction <add>, %285, %cst_113 [0] : vector<8x32xf32> to vector<32xf32>
      %287 = vector.shape_cast %286 : vector<32xf32> to vector<1x32xf32>
      %288 = tpu.concatenate %265, %276, %287 in 0 : vector<1x32xf32>, vector<1x32xf32>, vector<1x32xf32> -> vector<3x32xf32>
      %c0_114 = arith.constant 0 : index
      %c0_115 = arith.constant 0 : index
      %289 = vector.load %arg19[%c0_114, %c0_115] : memref<1x32xf32, #tpu.memory_space<vmem>>, vector<1x32xf32>
      %c0_116 = arith.constant 0 : index
      %c0_117 = arith.constant 0 : index
      %290 = vector.load %arg20[%c0_116, %c0_117] : memref<1x32xf32, #tpu.memory_space<vmem>>, vector<1x32xf32>
      %cst_118 = arith.constant dense<0.000000e+00> : vector<3xf32>
      %291 = vector.multi_reduction <add>, %288, %cst_118 [1] : vector<3x32xf32> to vector<3xf32>
      %292 = vector.shape_cast %291 : vector<3xf32> to vector<3x1xf32>
      %cst_119 = arith.constant 3.200000e+01 : f32
      %293 = vector.broadcast %cst_119 : f32 to vector<3x1xf32>
      %294 = arith.divf %292, %293 : vector<3x1xf32>
      %295 = vector.broadcast %294 : vector<3x1xf32> to vector<3x32xf32>
      %296 = arith.subf %288, %295 : vector<3x32xf32>
      %297 = arith.mulf %296, %296 : vector<3x32xf32>
      %cst_120 = arith.constant dense<0.000000e+00> : vector<3xf32>
      %298 = vector.multi_reduction <add>, %297, %cst_120 [1] : vector<3x32xf32> to vector<3xf32>
      %299 = vector.shape_cast %298 : vector<3xf32> to vector<3x1xf32>
      %cst_121 = arith.constant 3.200000e+01 : f32
      %300 = vector.broadcast %cst_121 : f32 to vector<3x1xf32>
      %301 = arith.divf %299, %300 : vector<3x1xf32>
      %302 = vector.broadcast %294 : vector<3x1xf32> to vector<3x32xf32>
      %303 = arith.subf %288, %302 : vector<3x32xf32>
      %cst_122 = arith.constant 9.99999974E-6 : f32
      %304 = vector.broadcast %cst_122 : f32 to vector<3x1xf32>
      %305 = arith.addf %301, %304 : vector<3x1xf32>
      %306 = math.rsqrt %305 : vector<3x1xf32>
      %307 = vector.broadcast %306 : vector<3x1xf32> to vector<3x32xf32>
      %308 = arith.mulf %303, %307 : vector<3x32xf32>
      %309 = vector.broadcast %289 : vector<1x32xf32> to vector<3x32xf32>
      %310 = arith.mulf %308, %309 : vector<3x32xf32>
      %311 = vector.broadcast %290 : vector<1x32xf32> to vector<3x32xf32>
      %312 = arith.addf %310, %311 : vector<3x32xf32>
      %c0_123 = arith.constant 0 : index
      %c0_124 = arith.constant 0 : index
      %313 = vector.load %arg21[%c0_123, %c0_124] : memref<32x16xbf16, #tpu.memory_space<vmem>>, vector<32x16xbf16>
      %314 = arith.truncf %312 : vector<3x32xf32> to vector<3x32xbf16>
      %cst_125 = arith.constant dense<0.000000e+00> : vector<3x16xf32>
      %315 = tpu.matmul %314, %313, %cst_125 {dimension_numbers = #tpu.dot_dimension_numbers<[1], [0], [0], [1], [0, 0, 1, 1], [], []>} : vector<3x32xbf16>, vector<32x16xbf16>, vector<3x16xf32> -> vector<3x16xf32>
      %316 = arith.mulf %315, %315 : vector<3x16xf32>
      %cst_126 = arith.constant dense<0.000000e+00> : vector<3xf32>
      %317 = vector.multi_reduction <add>, %316, %cst_126 [1] : vector<3x16xf32> to vector<3xf32>
      %318 = vector.shape_cast %317 : vector<3xf32> to vector<3x1xf32>
      %cst_127 = arith.constant 9.99999996E-13 : f32
      %319 = vector.broadcast %cst_127 : f32 to vector<3x1xf32>
      %320 = arith.addf %318, %319 : vector<3x1xf32>
      %321 = math.rsqrt %320 : vector<3x1xf32>
      %322 = vector.broadcast %321 : vector<3x1xf32> to vector<3x16xf32>
      %323 = arith.mulf %315, %322 : vector<3x16xf32>
      %c0_128 = arith.constant 0 : index
      %c0_129 = arith.constant 0 : index
      %324 = vector.load %arg22[%c0_128, %c0_129] : memref<3x16xf32, #tpu.memory_space<vmem>>, vector<3x16xf32>
      tpu.vector_store %arg22[%c0_128, %c0_129], %323 {strides = array<i32>} : memref<3x16xf32, #tpu.memory_space<vmem>>, vector<3x16xf32>,
    } else {
    }
    return
  }
  func.func @transform_0(%arg0: i32, %arg1: memref<3xi32, #tpu.memory_space<smem>>) -> (i32, i32, i32) {
    %c0_i32 = arith.constant 0 : i32
    %c0_i32_0 = arith.constant 0 : i32
    %c0_i32_1 = arith.constant 0 : i32
    %c0_i32_2 = arith.constant 0 : i32
    return %c0_i32, %c0_i32_0, %c0_i32_1 : i32, i32, i32
  }
  func.func @transform_1(%arg0: i32, %arg1: memref<3xi32, #tpu.memory_space<smem>>) -> (i32, i32) {
    %c0_i32 = arith.constant 0 : i32
    %c0_i32_0 = arith.constant 0 : i32
    %c0_i32_1 = arith.constant 0 : i32
    return %c0_i32, %c0_i32_0 : i32, i32
  }
  func.func @transform_2(%arg0: i32, %arg1: memref<3xi32, #tpu.memory_space<smem>>) -> (i32, i32, i32) {
    %c0_i32 = arith.constant 0 : i32
    %c0_i32_0 = arith.constant 0 : i32
    %c0_i32_1 = arith.constant 0 : i32
    %c0_i32_2 = arith.constant 0 : i32
    return %c0_i32, %c0_i32_0, %c0_i32_1 : i32, i32, i32
  }
  func.func @transform_3(%arg0: i32, %arg1: memref<3xi32, #tpu.memory_space<smem>>) -> (i32, i32) {
    %c0_i32 = arith.constant 0 : i32
    %c0_i32_0 = arith.constant 0 : i32
    %c0_i32_1 = arith.constant 0 : i32
    return %c0_i32, %c0_i32_0 : i32, i32
  }
  func.func @transform_4(%arg0: i32, %arg1: memref<3xi32, #tpu.memory_space<smem>>) -> (i32, i32, i32) {
    %c0_i32 = arith.constant 0 : i32
    %c0_i32_0 = arith.constant 0 : i32
    %c0_i32_1 = arith.constant 0 : i32
    return %arg0, %c0_i32, %c0_i32_0 : i32, i32, i32
  }
  func.func @transform_5(%arg0: i32, %arg1: memref<3xi32, #tpu.memory_space<smem>>) -> (i32, i32, i32) {
    %c0_i32 = arith.constant 0 : i32
    %c0_i32_0 = arith.constant 0 : i32
    %c0_i32_1 = arith.constant 0 : i32
    return %arg0, %c0_i32, %c0_i32_0 : i32, i32, i32
  }
  func.func @transform_6(%arg0: i32, %arg1: memref<3xi32, #tpu.memory_space<smem>>) -> (i32, i32, i32) {
    %c0_i32 = arith.constant 0 : i32
    %c0_i32_0 = arith.constant 0 : i32
    %c0_i32_1 = arith.constant 0 : i32
    return %arg0, %c0_i32, %c0_i32_0 : i32, i32, i32
  }
  func.func @transform_7(%arg0: i32, %arg1: memref<3xi32, #tpu.memory_space<smem>>) -> (i32, i32, i32) {
    %c0_i32 = arith.constant 0 : i32
    %c0_i32_0 = arith.constant 0 : i32
    %c0_i32_1 = arith.constant 0 : i32
    return %arg0, %c0_i32, %c0_i32_0 : i32, i32, i32
  }
  func.func @transform_8(%arg0: i32, %arg1: memref<3xi32, #tpu.memory_space<smem>>) -> (i32, i32, i32) {
    %c0_i32 = arith.constant 0 : i32
    %c0_i32_0 = arith.constant 0 : i32
    %c0_i32_1 = arith.constant 0 : i32
    return %arg0, %c0_i32, %c0_i32_0 : i32, i32, i32
  }
  func.func @transform_9(%arg0: i32, %arg1: memref<3xi32, #tpu.memory_space<smem>>) -> (i32, i32, i32, i32) {
    %c0_i32 = arith.constant 0 : i32
    %c0_i32_0 = arith.constant 0 : i32
    %c0_i32_1 = arith.constant 0 : i32
    %c0_i32_2 = arith.constant 0 : i32
    return %arg0, %c0_i32, %c0_i32_0, %c0_i32_1 : i32, i32, i32, i32
  }
  func.func @transform_10(%arg0: i32, %arg1: memref<3xi32, #tpu.memory_space<smem>>) -> (i32, i32, i32) {
    %c0_i32 = arith.constant 0 : i32
    %c0_i32_0 = arith.constant 0 : i32
    %c0_i32_1 = arith.constant 0 : i32
    return %arg0, %c0_i32, %c0_i32_0 : i32, i32, i32
  }
  func.func @transform_11(%arg0: i32, %arg1: memref<3xi32, #tpu.memory_space<smem>>) -> (i32, i32, i32) {
    %c0_i32 = arith.constant 0 : i32
    %c0_i32_0 = arith.constant 0 : i32
    %c0_i32_1 = arith.constant 0 : i32
    return %arg0, %c0_i32, %c0_i32_0 : i32, i32, i32
  }
  func.func @transform_12(%arg0: i32, %arg1: memref<3xi32, #tpu.memory_space<smem>>) -> (i32, i32, i32) {
    %c0_i32 = arith.constant 0 : i32
    %c0_i32_0 = arith.constant 0 : i32
    %c0_i32_1 = arith.constant 0 : i32
    return %arg0, %c0_i32, %c0_i32_0 : i32, i32, i32
  }
  func.func @transform_13(%arg0: i32, %arg1: memref<3xi32, #tpu.memory_space<smem>>) -> (i32, i32, i32) {
    %c0_i32 = arith.constant 0 : i32
    %c0_i32_0 = arith.constant 0 : i32
    %c0_i32_1 = arith.constant 0 : i32
    return %arg0, %c0_i32, %c0_i32_0 : i32, i32, i32
  }
  func.func @transform_14(%arg0: i32, %arg1: memref<3xi32, #tpu.memory_space<smem>>) -> (i32, i32, i32) {
    %c0_i32 = arith.constant 0 : i32
    %c0_i32_0 = arith.constant 0 : i32
    %c0_i32_1 = arith.constant 0 : i32
    return %arg0, %c0_i32, %c0_i32_0 : i32, i32, i32
  }
  func.func @transform_15(%arg0: i32, %arg1: memref<3xi32, #tpu.memory_space<smem>>) -> (i32, i32, i32) {
    %c0_i32 = arith.constant 0 : i32
    %c0_i32_0 = arith.constant 0 : i32
    %c0_i32_1 = arith.constant 0 : i32
    return %arg0, %c0_i32, %c0_i32_0 : i32, i32, i32
  }
  func.func @transform_16(%arg0: i32, %arg1: memref<3xi32, #tpu.memory_space<smem>>) -> (i32, i32, i32) {
    %c0_i32 = arith.constant 0 : i32
    %c0_i32_0 = arith.constant 0 : i32
    %c0_i32_1 = arith.constant 0 : i32
    return %arg0, %c0_i32, %c0_i32_0 : i32, i32, i32
  }
  func.func @transform_17(%arg0: i32, %arg1: memref<3xi32, #tpu.memory_space<smem>>) -> (i32, i32) {
    %c0_i32 = arith.constant 0 : i32
    %c0_i32_0 = arith.constant 0 : i32
    %c0_i32_1 = arith.constant 0 : i32
    return %c0_i32, %c0_i32_0 : i32, i32
  }
  func.func @transform_18(%arg0: i32, %arg1: memref<3xi32, #tpu.memory_space<smem>>) -> (i32, i32) {
    %c0_i32 = arith.constant 0 : i32
    %c0_i32_0 = arith.constant 0 : i32
    %c0_i32_1 = arith.constant 0 : i32
    return %c0_i32, %c0_i32_0 : i32, i32
  }
  func.func @transform_19(%arg0: i32, %arg1: memref<3xi32, #tpu.memory_space<smem>>) -> (i32, i32) {
    %c0_i32 = arith.constant 0 : i32
    %c0_i32_0 = arith.constant 0 : i32
    %c0_i32_1 = arith.constant 0 : i32
    return %c0_i32, %c0_i32_0 : i32, i32
  }
  func.func @transform_20(%arg0: i32, %arg1: memref<3xi32, #tpu.memory_space<smem>>) -> (i32, i32) {
    %c0_i32 = arith.constant 0 : i32
    %c0_i32_0 = arith.constant 0 : i32
    %c0_i32_1 = arith.constant 0 : i32
    return %c0_i32, %c0_i32_0 : i32, i32
  }
}

module attributes {stable_mosaic.version = 11 : i64} {
  func.func @_logits_kernel(%arg0: memref<1x1xf32, #tpu.memory_space<vmem>>, %arg1: memref<2x16xf32, #tpu.memory_space<vmem>>, %arg2: memref<3x16xf32, #tpu.memory_space<vmem>>, %arg3: memref<2x3xf32, #tpu.memory_space<vmem>>) attributes {dimension_semantics = [], scalar_prefetch = 0 : i64, scratch_operands = 0 : i64, tpu.core_type = #tpu.core_type<tc>} {
    %c0 = arith.constant 0 : index
    %c0_0 = arith.constant 0 : index
    %0 = vector.load %arg0[%c0, %c0_0] : memref<1x1xf32, #tpu.memory_space<vmem>>, vector<1x1xf32>
    %1 = vector.extract %0[0, 0] : f32 from vector<1x1xf32>
    %2 = math.exp %1 : f32
    %c0_1 = arith.constant 0 : index
    %c0_2 = arith.constant 0 : index
    %3 = vector.load %arg1[%c0_1, %c0_2] : memref<2x16xf32, #tpu.memory_space<vmem>>, vector<2x16xf32>
    %c0_3 = arith.constant 0 : index
    %c0_4 = arith.constant 0 : index
    %4 = vector.load %arg2[%c0_3, %c0_4] : memref<3x16xf32, #tpu.memory_space<vmem>>, vector<3x16xf32>
    %cst = arith.constant dense<0.000000e+00> : vector<2x3xf32>
    %5 = tpu.matmul %3, %4, %cst {dimension_numbers = #tpu.dot_dimension_numbers<[1], [1], [0], [0], [0, 0, 1, 0], [], []>} : vector<2x16xf32>, vector<3x16xf32>, vector<2x3xf32> -> vector<2x3xf32>
    %6 = vector.broadcast %2 : f32 to vector<2x3xf32>
    %7 = arith.mulf %6, %5 : vector<2x3xf32>
    %c0_5 = arith.constant 0 : index
    %c0_6 = arith.constant 0 : index
    %8 = vector.load %arg3[%c0_5, %c0_6] : memref<2x3xf32, #tpu.memory_space<vmem>>, vector<2x3xf32>
    tpu.vector_store %arg3[%c0_5, %c0_6], %7 {strides = array<i32>} : memref<2x3xf32, #tpu.memory_space<vmem>>, vector<2x3xf32>,
    return
  }
}

module attributes {stable_mosaic.version = 11 : i64} {
  func.func @_image_encoder_kernel(%arg0: i32, %arg1: memref<8x192xf32, #tpu.memory_space<vmem>>, %arg2: memref<192x48xbf16, #tpu.memory_space<vmem>>, %arg3: memref<1x48xf32, #tpu.memory_space<vmem>>, %arg4: memref<5x48xf32, #tpu.memory_space<vmem>>, %arg5: memref<2x32xf32, #tpu.memory_space<vmem>>, %arg6: memref<32x48xbf16, #tpu.memory_space<vmem>>, %arg7: memref<1x48xf32, #tpu.memory_space<vmem>>, %arg8: memref<1x48xf32, #tpu.memory_space<vmem>>, %arg9: memref<1x48xf32, #tpu.memory_space<vmem>>, %arg10: memref<1x2x32xf32, #tpu.memory_space<vmem>>, %arg11: memref<1x32x48xbf16, #tpu.memory_space<vmem>>, %arg12: memref<1x1x48xf32, #tpu.memory_space<vmem>>, %arg13: memref<1x1x48xf32, #tpu.memory_space<vmem>>, %arg14: memref<1x1x48xf32, #tpu.memory_space<vmem>>, %arg15: memref<1x48x144xbf16, #tpu.memory_space<vmem>>, %arg16: memref<1x1x144xf32, #tpu.memory_space<vmem>>, %arg17: memref<1x4x12x48xbf16, #tpu.memory_space<vmem>>, %arg18: memref<1x1x48xf32, #tpu.memory_space<vmem>>, %arg19: memref<1x1x48xf32, #tpu.memory_space<vmem>>, %arg20: memref<1x1x48xf32, #tpu.memory_space<vmem>>, %arg21: memref<1x48x192xbf16, #tpu.memory_space<vmem>>, %arg22: memref<1x1x192xf32, #tpu.memory_space<vmem>>, %arg23: memref<1x192x48xbf16, #tpu.memory_space<vmem>>, %arg24: memref<1x1x48xf32, #tpu.memory_space<vmem>>, %arg25: memref<1x48xf32, #tpu.memory_space<vmem>>, %arg26: memref<1x48xf32, #tpu.memory_space<vmem>>, %arg27: memref<48x16xbf16, #tpu.memory_space<vmem>>, %arg28: memref<2x16xf32, #tpu.memory_space<vmem>>, %arg29: memref<2x8x48xf32, #tpu.memory_space<vmem>>) attributes {dimension_semantics = [#tpu.dimension_semantics<arbitrary>], iteration_bounds = array<i64: 2>, scalar_prefetch = 0 : i64, scratch_operands = 1 : i64, tpu.core_type = #tpu.core_type<tc>, window_params = [{pipeline_mode = #tpu.pipeline_mode<synchronous>, transform_indices = @transform_0, window_bounds = array<i64: 8, 192>}, {pipeline_mode = #tpu.pipeline_mode<synchronous>, transform_indices = @transform_1, window_bounds = array<i64: 192, 48>}, {pipeline_mode = #tpu.pipeline_mode<synchronous>, transform_indices = @transform_2, window_bounds = array<i64: 1, 48>}, {pipeline_mode = #tpu.pipeline_mode<synchronous>, transform_indices = @transform_3, window_bounds = array<i64: 5, 48>}, {pipeline_mode = #tpu.pipeline_mode<synchronous>, transform_indices = @transform_4, window_bounds = array<i64: 2, 32>}, {pipeline_mode = #tpu.pipeline_mode<synchronous>, transform_indices = @transform_5, window_bounds = array<i64: 32, 48>}, {pipeline_mode = #tpu.pipeline_mode<synchronous>, transform_indices = @transform_6, window_bounds = array<i64: 1, 48>}, {pipeline_mode = #tpu.pipeline_mode<synchronous>, transform_indices = @transform_7, window_bounds = array<i64: 1, 48>}, {pipeline_mode = #tpu.pipeline_mode<synchronous>, transform_indices = @transform_8, window_bounds = array<i64: 1, 48>}, {transform_indices = @transform_9, window_bounds = array<i64: 1, 2, 32>}, {transform_indices = @transform_10, window_bounds = array<i64: 1, 32, 48>}, {transform_indices = @transform_11, window_bounds = array<i64: 1, 1, 48>}, {transform_indices = @transform_12, window_bounds = array<i64: 1, 1, 48>}, {transform_indices = @transform_13, window_bounds = array<i64: 1, 1, 48>}, {transform_indices = @transform_14, window_bounds = array<i64: 1, 48, 144>}, {transform_indices = @transform_15, window_bounds = array<i64: 1, 1, 144>}, {transform_indices = @transform_16, window_bounds = array<i64: 1, 4, 12, 48>}, {transform_indices = @transform_17, window_bounds = array<i64: 1, 1, 48>}, {transform_indices = @transform_18, window_bounds = array<i64: 1, 1, 48>}, {transform_indices = @transform_19, window_bounds = array<i64: 1, 1, 48>}, {transform_indices = @transform_20, window_bounds = array<i64: 1, 48, 192>}, {transform_indices = @transform_21, window_bounds = array<i64: 1, 1, 192>}, {transform_indices = @transform_22, window_bounds = array<i64: 1, 192, 48>}, {transform_indices = @transform_23, window_bounds = array<i64: 1, 1, 48>}, {pipeline_mode = #tpu.pipeline_mode<synchronous>, transform_indices = @transform_24, window_bounds = array<i64: 1, 48>}, {pipeline_mode = #tpu.pipeline_mode<synchronous>, transform_indices = @transform_25, window_bounds = array<i64: 1, 48>}, {pipeline_mode = #tpu.pipeline_mode<synchronous>, transform_indices = @transform_26, window_bounds = array<i64: 48, 16>}, {pipeline_mode = #tpu.pipeline_mode<synchronous>, transform_indices = @transform_27, window_bounds = array<i64: 2, 16>}]} {
    %c0_i32 = arith.constant 0 : i32
    %0 = arith.cmpi eq, %arg0, %c0_i32 : i32
    %1 = arith.extui %0 : i1 to i32
    %c0_i32_0 = arith.constant 0 : i32
    %2 = arith.cmpi ne, %1, %c0_i32_0 : i32
    scf.if %2 {
      %c0_99 = arith.constant 0 : index
      %c0_100 = arith.constant 0 : index
      %251 = vector.load %arg1[%c0_99, %c0_100] : memref<8x192xf32, #tpu.memory_space<vmem>>, vector<8x192xf32>
      %c0_101 = arith.constant 0 : index
      %c0_102 = arith.constant 0 : index
      %252 = vector.load %arg2[%c0_101, %c0_102] : memref<192x48xbf16, #tpu.memory_space<vmem>>, vector<192x48xbf16>
      %253 = arith.truncf %251 : vector<8x192xf32> to vector<8x192xbf16>
      %cst_103 = arith.constant dense<0.000000e+00> : vector<8x48xf32>
      %254 = tpu.matmul %253, %252, %cst_103 {dimension_numbers = #tpu.dot_dimension_numbers<[1], [0], [0], [1], [0, 0, 1, 1], [], []>} : vector<8x192xbf16>, vector<192x48xbf16>, vector<8x48xf32> -> vector<8x48xf32>
      %c0_104 = arith.constant 0 : index
      %c0_105 = arith.constant 0 : index
      %255 = vector.load %arg5[%c0_104, %c0_105] : memref<2x32xf32, #tpu.memory_space<vmem>>, vector<2x32xf32>
      %c0_106 = arith.constant 0 : index
      %c0_107 = arith.constant 0 : index
      %256 = vector.load %arg6[%c0_106, %c0_107] : memref<32x48xbf16, #tpu.memory_space<vmem>>, vector<32x48xbf16>
      %257 = arith.truncf %255 : vector<2x32xf32> to vector<2x32xbf16>
      %cst_108 = arith.constant dense<0.000000e+00> : vector<2x48xf32>
      %258 = tpu.matmul %257, %256, %cst_108 {dimension_numbers = #tpu.dot_dimension_numbers<[1], [0], [0], [1], [0, 0, 1, 1], [], []>} : vector<2x32xbf16>, vector<32x48xbf16>, vector<2x48xf32> -> vector<2x48xf32>
      %c0_109 = arith.constant 0 : index
      %c0_110 = arith.constant 0 : index
      %259 = vector.load %arg7[%c0_109, %c0_110] : memref<1x48xf32, #tpu.memory_space<vmem>>, vector<1x48xf32>
      %260 = vector.broadcast %259 : vector<1x48xf32> to vector<2x48xf32>
      %261 = arith.addf %258, %260 : vector<2x48xf32>
      %c0_111 = arith.constant 0 : index
      %c0_112 = arith.constant 0 : index
      %262 = vector.load %arg3[%c0_111, %c0_112] : memref<1x48xf32, #tpu.memory_space<vmem>>, vector<1x48xf32>
      %c0_113 = arith.constant 0 : index
      %c0_114 = arith.constant 0 : index
      %263 = vector.load %arg4[%c0_113, %c0_114] : memref<5x48xf32, #tpu.memory_space<vmem>>, vector<1x48xf32>
      %264 = arith.addf %262, %263 : vector<1x48xf32>
      %c0_115 = arith.constant 0 : index
      %c0_116 = arith.constant 0 : index
      %c0_117 = arith.constant 0 : index
      %265 = vector.load %arg29[%c0_115, %c0_116, %c0_117] : memref<2x8x48xf32, #tpu.memory_space<vmem>>, vector<1x1x48xf32>
      %266 = vector.shape_cast %265 : vector<1x1x48xf32> to vector<1x48xf32>
      %267 = vector.shape_cast %264 : vector<1x48xf32> to vector<1x1x48xf32>
      tpu.vector_store %arg29[%c0_115, %c0_116, %c0_117], %267 {strides = array<i32>} : memref<2x8x48xf32, #tpu.memory_space<vmem>>, vector<1x1x48xf32>,
      %268 = vector.extract_strided_slice %254 {offsets = [0, 0], sizes = [4, 48], strides = [1, 1]} : vector<8x48xf32> to vector<4x48xf32>
      %c1_118 = arith.constant 1 : index
      %c0_119 = arith.constant 0 : index
      %269 = vector.load %arg4[%c1_118, %c0_119] : memref<5x48xf32, #tpu.memory_space<vmem>>, vector<4x48xf32>
      %270 = arith.addf %268, %269 : vector<4x48xf32>
      %c0_120 = arith.constant 0 : index
      %c1_121 = arith.constant 1 : index
      %c0_122 = arith.constant 0 : index
      %271 = vector.load %arg29[%c0_120, %c1_121, %c0_122] : memref<2x8x48xf32, #tpu.memory_space<vmem>>, vector<1x4x48xf32>
      %272 = vector.shape_cast %271 : vector<1x4x48xf32> to vector<4x48xf32>
      %273 = vector.shape_cast %270 : vector<4x48xf32> to vector<1x4x48xf32>
      tpu.vector_store %arg29[%c0_120, %c1_121, %c0_122], %273 {strides = array<i32>} : memref<2x8x48xf32, #tpu.memory_space<vmem>>, vector<1x4x48xf32>,
      %c0_123 = arith.constant 0 : index
      %c5 = arith.constant 5 : index
      %c0_124 = arith.constant 0 : index
      %274 = vector.load %arg29[%c0_123, %c5, %c0_124] : memref<2x8x48xf32, #tpu.memory_space<vmem>>, vector<1x2x48xf32>
      %275 = vector.shape_cast %274 : vector<1x2x48xf32> to vector<2x48xf32>
      %276 = vector.shape_cast %261 : vector<2x48xf32> to vector<1x2x48xf32>
      tpu.vector_store %arg29[%c0_123, %c5, %c0_124], %276 {strides = array<i32>} : memref<2x8x48xf32, #tpu.memory_space<vmem>>, vector<1x2x48xf32>,
      %cst_125 = arith.constant 0.000000e+00 : f32
      %277 = vector.broadcast %cst_125 : f32 to vector<1x48xf32>
      %c0_126 = arith.constant 0 : index
      %c7 = arith.constant 7 : index
      %c0_127 = arith.constant 0 : index
      %278 = vector.load %arg29[%c0_126, %c7, %c0_127] : memref<2x8x48xf32, #tpu.memory_space<vmem>>, vector<1x1x48xf32>
      %279 = vector.shape_cast %278 : vector<1x1x48xf32> to vector<1x48xf32>
      %280 = vector.shape_cast %277 : vector<1x48xf32> to vector<1x1x48xf32>
      tpu.vector_store %arg29[%c0_126, %c7, %c0_127], %280 {strides = array<i32>} : memref<2x8x48xf32, #tpu.memory_space<vmem>>, vector<1x1x48xf32>,
      %c0_128 = arith.constant 0 : index
      %c0_129 = arith.constant 0 : index
      %281 = vector.load %arg3[%c0_128, %c0_129] : memref<1x48xf32, #tpu.memory_space<vmem>>, vector<1x48xf32>
      %c0_130 = arith.constant 0 : index
      %c0_131 = arith.constant 0 : index
      %282 = vector.load %arg4[%c0_130, %c0_131] : memref<5x48xf32, #tpu.memory_space<vmem>>, vector<1x48xf32>
      %283 = arith.addf %281, %282 : vector<1x48xf32>
      %c1_132 = arith.constant 1 : index
      %c0_133 = arith.constant 0 : index
      %c0_134 = arith.constant 0 : index
      %284 = vector.load %arg29[%c1_132, %c0_133, %c0_134] : memref<2x8x48xf32, #tpu.memory_space<vmem>>, vector<1x1x48xf32>
      %285 = vector.shape_cast %284 : vector<1x1x48xf32> to vector<1x48xf32>
      %286 = vector.shape_cast %283 : vector<1x48xf32> to vector<1x1x48xf32>
      tpu.vector_store %arg29[%c1_132, %c0_133, %c0_134], %286 {strides = array<i32>} : memref<2x8x48xf32, #tpu.memory_space<vmem>>, vector<1x1x48xf32>,
      %287 = vector.extract_strided_slice %254 {offsets = [4, 0], sizes = [4, 48], strides = [1, 1]} : vector<8x48xf32> to vector<4x48xf32>
      %c1_135 = arith.constant 1 : index
      %c0_136 = arith.constant 0 : index
      %288 = vector.load %arg4[%c1_135, %c0_136] : memref<5x48xf32, #tpu.memory_space<vmem>>, vector<4x48xf32>
      %289 = arith.addf %287, %288 : vector<4x48xf32>
      %c1_137 = arith.constant 1 : index
      %c1_138 = arith.constant 1 : index
      %c0_139 = arith.constant 0 : index
      %290 = vector.load %arg29[%c1_137, %c1_138, %c0_139] : memref<2x8x48xf32, #tpu.memory_space<vmem>>, vector<1x4x48xf32>
      %291 = vector.shape_cast %290 : vector<1x4x48xf32> to vector<4x48xf32>
      %292 = vector.shape_cast %289 : vector<4x48xf32> to vector<1x4x48xf32>
      tpu.vector_store %arg29[%c1_137, %c1_138, %c0_139], %292 {strides = array<i32>} : memref<2x8x48xf32, #tpu.memory_space<vmem>>, vector<1x4x48xf32>,
      %c1_140 = arith.constant 1 : index
      %c5_141 = arith.constant 5 : index
      %c0_142 = arith.constant 0 : index
      %293 = vector.load %arg29[%c1_140, %c5_141, %c0_142] : memref<2x8x48xf32, #tpu.memory_space<vmem>>, vector<1x2x48xf32>
      %294 = vector.shape_cast %293 : vector<1x2x48xf32> to vector<2x48xf32>
      %295 = vector.shape_cast %261 : vector<2x48xf32> to vector<1x2x48xf32>
      tpu.vector_store %arg29[%c1_140, %c5_141, %c0_142], %295 {strides = array<i32>} : memref<2x8x48xf32, #tpu.memory_space<vmem>>, vector<1x2x48xf32>,
      %cst_143 = arith.constant 0.000000e+00 : f32
      %296 = vector.broadcast %cst_143 : f32 to vector<1x48xf32>
      %c1_144 = arith.constant 1 : index
      %c7_145 = arith.constant 7 : index
      %c0_146 = arith.constant 0 : index
      %297 = vector.load %arg29[%c1_144, %c7_145, %c0_146] : memref<2x8x48xf32, #tpu.memory_space<vmem>>, vector<1x1x48xf32>
      %298 = vector.shape_cast %297 : vector<1x1x48xf32> to vector<1x48xf32>
      %299 = vector.shape_cast %296 : vector<1x48xf32> to vector<1x1x48xf32>
      tpu.vector_store %arg29[%c1_144, %c7_145, %c0_146], %299 {strides = array<i32>} : memref<2x8x48xf32, #tpu.memory_space<vmem>>, vector<1x1x48xf32>,
      %c0_147 = arith.constant 0 : index
      %c0_148 = arith.constant 0 : index
      %c0_149 = arith.constant 0 : index
      %300 = vector.load %arg29[%c0_147, %c0_148, %c0_149] : memref<2x8x48xf32, #tpu.memory_space<vmem>>, vector<2x8x48xf32>
      %c0_150 = arith.constant 0 : index
      %c0_151 = arith.constant 0 : index
      %301 = vector.load %arg8[%c0_150, %c0_151] : memref<1x48xf32, #tpu.memory_space<vmem>>, vector<1x48xf32>
      %c0_152 = arith.constant 0 : index
      %c0_153 = arith.constant 0 : index
      %302 = vector.load %arg9[%c0_152, %c0_153] : memref<1x48xf32, #tpu.memory_space<vmem>>, vector<1x48xf32>
      %cst_154 = arith.constant dense<0.000000e+00> : vector<2x8xf32>
      %303 = vector.multi_reduction <add>, %300, %cst_154 [2] : vector<2x8x48xf32> to vector<2x8xf32>
      %304 = vector.shape_cast %303 : vector<2x8xf32> to vector<2x8x1xf32>
      %cst_155 = arith.constant 4.800000e+01 : f32
      %305 = vector.broadcast %cst_155 : f32 to vector<2x8x1xf32>
      %306 = arith.divf %304, %305 : vector<2x8x1xf32>
      %307 = vector.broadcast %306 : vector<2x8x1xf32> to vector<2x8x48xf32>
      %308 = arith.subf %300, %307 : vector<2x8x48xf32>
      %309 = arith.mulf %308, %308 : vector<2x8x48xf32>
      %cst_156 = arith.constant dense<0.000000e+00> : vector<2x8xf32>
      %310 = vector.multi_reduction <add>, %309, %cst_156 [2] : vector<2x8x48xf32> to vector<2x8xf32>
      %311 = vector.shape_cast %310 : vector<2x8xf32> to vector<2x8x1xf32>
      %cst_157 = arith.constant 4.800000e+01 : f32
      %312 = vector.broadcast %cst_157 : f32 to vector<2x8x1xf32>
      %313 = arith.divf %311, %312 : vector<2x8x1xf32>
      %314 = vector.broadcast %306 : vector<2x8x1xf32> to vector<2x8x48xf32>
      %315 = arith.subf %300, %314 : vector<2x8x48xf32>
      %cst_158 = arith.constant 9.99999974E-6 : f32
      %316 = vector.broadcast %cst_158 : f32 to vector<2x8x1xf32>
      %317 = arith.addf %313, %316 : vector<2x8x1xf32>
      %318 = math.rsqrt %317 : vector<2x8x1xf32>
      %319 = vector.broadcast %318 : vector<2x8x1xf32> to vector<2x8x48xf32>
      %320 = arith.mulf %315, %319 : vector<2x8x48xf32>
      %321 = vector.shape_cast %301 : vector<1x48xf32> to vector<1x1x48xf32>
      %322 = vector.broadcast %321 : vector<1x1x48xf32> to vector<2x8x48xf32>
      %323 = arith.mulf %320, %322 : vector<2x8x48xf32>
      %324 = vector.shape_cast %302 : vector<1x48xf32> to vector<1x1x48xf32>
      %325 = vector.broadcast %324 : vector<1x1x48xf32> to vector<2x8x48xf32>
      %326 = arith.addf %323, %325 : vector<2x8x48xf32>
      %c0_159 = arith.constant 0 : index
      %c0_160 = arith.constant 0 : index
      %c0_161 = arith.constant 0 : index
      %327 = vector.load %arg29[%c0_159, %c0_160, %c0_161] : memref<2x8x48xf32, #tpu.memory_space<vmem>>, vector<2x8x48xf32>
      tpu.vector_store %arg29[%c0_159, %c0_160, %c0_161], %326 {strides = array<i32>} : memref<2x8x48xf32, #tpu.memory_space<vmem>>, vector<2x8x48xf32>,
    } else {
    }
    %c1_i32 = arith.constant 1 : i32
    %3 = arith.cmpi sge, %arg0, %c1_i32 : i32
    %c2_i32 = arith.constant 2 : i32
    %4 = arith.cmpi slt, %arg0, %c2_i32 : i32
    %5 = arith.andi %3, %4 : i1
    %6 = arith.extui %5 : i1 to i32
    %c0_i32_1 = arith.constant 0 : i32
    %7 = arith.cmpi ne, %6, %c0_i32_1 : i32
    scf.if %7 {
      %c0_99 = arith.constant 0 : index
      %c0_100 = arith.constant 0 : index
      %c0_101 = arith.constant 0 : index
      %251 = vector.load %arg10[%c0_99, %c0_100, %c0_101] : memref<1x2x32xf32, #tpu.memory_space<vmem>>, vector<1x2x32xf32>
      %252 = vector.shape_cast %251 : vector<1x2x32xf32> to vector<2x32xf32>
      %c0_102 = arith.constant 0 : index
      %c0_103 = arith.constant 0 : index
      %c0_104 = arith.constant 0 : index
      %253 = vector.load %arg11[%c0_102, %c0_103, %c0_104] : memref<1x32x48xbf16, #tpu.memory_space<vmem>>, vector<1x32x48xbf16>
      %254 = vector.shape_cast %253 : vector<1x32x48xbf16> to vector<32x48xbf16>
      %255 = arith.truncf %252 : vector<2x32xf32> to vector<2x32xbf16>
      %cst_105 = arith.constant dense<0.000000e+00> : vector<2x48xf32>
      %256 = tpu.matmul %255, %254, %cst_105 {dimension_numbers = #tpu.dot_dimension_numbers<[1], [0], [0], [1], [0, 0, 1, 1], [], []>} : vector<2x32xbf16>, vector<32x48xbf16>, vector<2x48xf32> -> vector<2x48xf32>
      %c0_106 = arith.constant 0 : index
      %c0_107 = arith.constant 0 : index
      %c0_108 = arith.constant 0 : index
      %257 = vector.load %arg12[%c0_106, %c0_107, %c0_108] : memref<1x1x48xf32, #tpu.memory_space<vmem>>, vector<1x1x48xf32>
      %258 = vector.shape_cast %257 : vector<1x1x48xf32> to vector<1x48xf32>
      %259 = vector.broadcast %258 : vector<1x48xf32> to vector<2x48xf32>
      %260 = arith.addf %256, %259 : vector<2x48xf32>
      %c0_109 = arith.constant 0 : index
      %c5 = arith.constant 5 : index
      %c0_110 = arith.constant 0 : index
      %261 = vector.load %arg29[%c0_109, %c5, %c0_110] : memref<2x8x48xf32, #tpu.memory_space<vmem>>, vector<1x2x48xf32>
      %262 = vector.shape_cast %261 : vector<1x2x48xf32> to vector<2x48xf32>
      %263 = vector.shape_cast %260 : vector<2x48xf32> to vector<1x2x48xf32>
      tpu.vector_store %arg29[%c0_109, %c5, %c0_110], %263 {strides = array<i32>} : memref<2x8x48xf32, #tpu.memory_space<vmem>>, vector<1x2x48xf32>,
      %c1_111 = arith.constant 1 : index
      %c5_112 = arith.constant 5 : index
      %c0_113 = arith.constant 0 : index
      %264 = vector.load %arg29[%c1_111, %c5_112, %c0_113] : memref<2x8x48xf32, #tpu.memory_space<vmem>>, vector<1x2x48xf32>
      %265 = vector.shape_cast %264 : vector<1x2x48xf32> to vector<2x48xf32>
      %266 = vector.shape_cast %260 : vector<2x48xf32> to vector<1x2x48xf32>
      tpu.vector_store %arg29[%c1_111, %c5_112, %c0_113], %266 {strides = array<i32>} : memref<2x8x48xf32, #tpu.memory_space<vmem>>, vector<1x2x48xf32>,
    } else {
    }
    %8 = tpu.iota {dimensions = array<i32: 1>} : vector<8x8xi32>
    %c7_i32 = arith.constant 7 : i32
    %9 = vector.broadcast %c7_i32 : i32 to vector<8x8xi32>
    %10 = arith.cmpi sge, %8, %9 : vector<8x8xi32>
    %cst = arith.constant -1.000000e+09 : f32
    %cst_2 = arith.constant 0.000000e+00 : f32
    %11 = vector.broadcast %cst : f32 to vector<8x8xf32>
    %12 = vector.broadcast %cst_2 : f32 to vector<8x8xf32>
    %13 = arith.select %10, %11, %12 : vector<8x8xi1>, vector<8x8xf32>
    %c0 = arith.constant 0 : index
    %c0_3 = arith.constant 0 : index
    %c0_4 = arith.constant 0 : index
    %14 = vector.load %arg29[%c0, %c0_3, %c0_4] : memref<2x8x48xf32, #tpu.memory_space<vmem>>, vector<2x8x48xf32>
    %c0_5 = arith.constant 0 : index
    %c0_6 = arith.constant 0 : index
    %c0_7 = arith.constant 0 : index
    %15 = vector.load %arg13[%c0_5, %c0_6, %c0_7] : memref<1x1x48xf32, #tpu.memory_space<vmem>>, vector<1x1x48xf32>
    %16 = vector.shape_cast %15 : vector<1x1x48xf32> to vector<1x48xf32>
    %c0_8 = arith.constant 0 : index
    %c0_9 = arith.constant 0 : index
    %c0_10 = arith.constant 0 : index
    %17 = vector.load %arg14[%c0_8, %c0_9, %c0_10] : memref<1x1x48xf32, #tpu.memory_space<vmem>>, vector<1x1x48xf32>
    %18 = vector.shape_cast %17 : vector<1x1x48xf32> to vector<1x48xf32>
    %cst_11 = arith.constant dense<0.000000e+00> : vector<2x8xf32>
    %19 = vector.multi_reduction <add>, %14, %cst_11 [2] : vector<2x8x48xf32> to vector<2x8xf32>
    %20 = vector.shape_cast %19 : vector<2x8xf32> to vector<2x8x1xf32>
    %cst_12 = arith.constant 4.800000e+01 : f32
    %21 = vector.broadcast %cst_12 : f32 to vector<2x8x1xf32>
    %22 = arith.divf %20, %21 : vector<2x8x1xf32>
    %23 = vector.broadcast %22 : vector<2x8x1xf32> to vector<2x8x48xf32>
    %24 = arith.subf %14, %23 : vector<2x8x48xf32>
    %25 = arith.mulf %24, %24 : vector<2x8x48xf32>
    %cst_13 = arith.constant dense<0.000000e+00> : vector<2x8xf32>
    %26 = vector.multi_reduction <add>, %25, %cst_13 [2] : vector<2x8x48xf32> to vector<2x8xf32>
    %27 = vector.shape_cast %26 : vector<2x8xf32> to vector<2x8x1xf32>
    %cst_14 = arith.constant 4.800000e+01 : f32
    %28 = vector.broadcast %cst_14 : f32 to vector<2x8x1xf32>
    %29 = arith.divf %27, %28 : vector<2x8x1xf32>
    %30 = vector.broadcast %22 : vector<2x8x1xf32> to vector<2x8x48xf32>
    %31 = arith.subf %14, %30 : vector<2x8x48xf32>
    %cst_15 = arith.constant 9.99999974E-6 : f32
    %32 = vector.broadcast %cst_15 : f32 to vector<2x8x1xf32>
    %33 = arith.addf %29, %32 : vector<2x8x1xf32>
    %34 = math.rsqrt %33 : vector<2x8x1xf32>
    %35 = vector.broadcast %34 : vector<2x8x1xf32> to vector<2x8x48xf32>
    %36 = arith.mulf %31, %35 : vector<2x8x48xf32>
    %37 = vector.shape_cast %16 : vector<1x48xf32> to vector<1x1x48xf32>
    %38 = vector.broadcast %37 : vector<1x1x48xf32> to vector<2x8x48xf32>
    %39 = arith.mulf %36, %38 : vector<2x8x48xf32>
    %40 = vector.shape_cast %18 : vector<1x48xf32> to vector<1x1x48xf32>
    %41 = vector.broadcast %40 : vector<1x1x48xf32> to vector<2x8x48xf32>
    %42 = arith.addf %39, %41 : vector<2x8x48xf32>
    %43 = vector.shape_cast %42 : vector<2x8x48xf32> to vector<16x48xf32>
    %44 = arith.truncf %43 : vector<16x48xf32> to vector<16x48xbf16>
    %c0_16 = arith.constant 0 : index
    %c0_17 = arith.constant 0 : index
    %c0_18 = arith.constant 0 : index
    %45 = vector.load %arg15[%c0_16, %c0_17, %c0_18] : memref<1x48x144xbf16, #tpu.memory_space<vmem>>, vector<1x48x144xbf16>
    %46 = vector.shape_cast %45 : vector<1x48x144xbf16> to vector<48x144xbf16>
    %cst_19 = arith.constant dense<0.000000e+00> : vector<16x144xf32>
    %47 = tpu.matmul %44, %46, %cst_19 {dimension_numbers = #tpu.dot_dimension_numbers<[1], [0], [0], [1], [0, 0, 1, 1], [], []>} : vector<16x48xbf16>, vector<48x144xbf16>, vector<16x144xf32> -> vector<16x144xf32>
    %c0_20 = arith.constant 0 : index
    %c0_21 = arith.constant 0 : index
    %c0_22 = arith.constant 0 : index
    %48 = vector.load %arg16[%c0_20, %c0_21, %c0_22] : memref<1x1x144xf32, #tpu.memory_space<vmem>>, vector<1x1x144xf32>
    %49 = vector.shape_cast %48 : vector<1x1x144xf32> to vector<1x144xf32>
    %50 = vector.broadcast %49 : vector<1x144xf32> to vector<16x144xf32>
    %51 = arith.addf %47, %50 : vector<16x144xf32>
    %cst_23 = arith.constant 0.000000e+00 : f32
    %52 = vector.broadcast %cst_23 : f32 to vector<16x48xf32>
    %53 = vector.extract_strided_slice %51 {offsets = [0, 0], sizes = [16, 12], strides = [1, 1]} : vector<16x144xf32> to vector<16x12xf32>
    %54 = vector.shape_cast %53 : vector<16x12xf32> to vector<2x8x12xf32>
    %55 = vector.extract_strided_slice %51 {offsets = [0, 48], sizes = [16, 12], strides = [1, 1]} : vector<16x144xf32> to vector<16x12xf32>
    %56 = vector.shape_cast %55 : vector<16x12xf32> to vector<2x8x12xf32>
    %57 = vector.extract_strided_slice %51 {offsets = [0, 96], sizes = [16, 12], strides = [1, 1]} : vector<16x144xf32> to vector<16x12xf32>
    %58 = vector.shape_cast %57 : vector<16x12xf32> to vector<2x8x12xf32>
    %59 = arith.truncf %54 : vector<2x8x12xf32> to vector<2x8x12xbf16>
    %60 = arith.truncf %56 : vector<2x8x12xf32> to vector<2x8x12xbf16>
    %cst_24 = arith.constant dense<0.000000e+00> : vector<2x8x8xf32>
    %61 = tpu.matmul %59, %60, %cst_24 {dimension_numbers = #tpu.dot_dimension_numbers<[2], [2], [1], [1], [0, 0, 0, 1, 1, 1], [0], [0]>} : vector<2x8x12xbf16>, vector<2x8x12xbf16>, vector<2x8x8xf32> -> vector<2x8x8xf32>
    %cst_25 = arith.constant 0.288675129 : f32
    %62 = vector.broadcast %cst_25 : f32 to vector<2x8x8xf32>
    %63 = arith.mulf %61, %62 : vector<2x8x8xf32>
    %64 = vector.shape_cast %13 : vector<8x8xf32> to vector<1x8x8xf32>
    %65 = vector.broadcast %64 : vector<1x8x8xf32> to vector<2x8x8xf32>
    %66 = arith.addf %63, %65 : vector<2x8x8xf32>
    %cst_26 = arith.constant dense<0xFF800000> : vector<2x8xf32>
    %67 = vector.multi_reduction <maximumf>, %66, %cst_26 [2] : vector<2x8x8xf32> to vector<2x8xf32>
    %68 = vector.shape_cast %67 : vector<2x8xf32> to vector<2x8x1xf32>
    %69 = vector.broadcast %68 : vector<2x8x1xf32> to vector<2x8x8xf32>
    %70 = arith.subf %66, %69 : vector<2x8x8xf32>
    %71 = math.exp %70 : vector<2x8x8xf32>
    %cst_27 = arith.constant dense<0.000000e+00> : vector<2x8xf32>
    %72 = vector.multi_reduction <add>, %71, %cst_27 [2] : vector<2x8x8xf32> to vector<2x8xf32>
    %73 = vector.shape_cast %72 : vector<2x8xf32> to vector<2x8x1xf32>
    %74 = tpu.reciprocal %73 {approx = true} : vector<2x8x1xf32> -> vector<2x8x1xf32>
    %75 = vector.broadcast %74 : vector<2x8x1xf32> to vector<2x8x8xf32>
    %76 = arith.mulf %71, %75 : vector<2x8x8xf32>
    %77 = arith.truncf %76 : vector<2x8x8xf32> to vector<2x8x8xbf16>
    %78 = arith.truncf %58 : vector<2x8x12xf32> to vector<2x8x12xbf16>
    %cst_28 = arith.constant dense<0.000000e+00> : vector<2x8x12xf32>
    %79 = tpu.matmul %77, %78, %cst_28 {dimension_numbers = #tpu.dot_dimension_numbers<[2], [1], [1], [2], [0, 0, 0, 1, 1, 2], [0], [0]>} : vector<2x8x8xbf16>, vector<2x8x12xbf16>, vector<2x8x12xf32> -> vector<2x8x12xf32>
    %80 = vector.shape_cast %79 : vector<2x8x12xf32> to vector<16x12xf32>
    %81 = arith.truncf %80 : vector<16x12xf32> to vector<16x12xbf16>
    %c0_29 = arith.constant 0 : index
    %c0_30 = arith.constant 0 : index
    %c0_31 = arith.constant 0 : index
    %c0_32 = arith.constant 0 : index
    %82 = vector.load %arg17[%c0_29, %c0_30, %c0_31, %c0_32] : memref<1x4x12x48xbf16, #tpu.memory_space<vmem>>, vector<1x1x12x48xbf16>
    %83 = vector.shape_cast %82 : vector<1x1x12x48xbf16> to vector<12x48xbf16>
    %cst_33 = arith.constant dense<0.000000e+00> : vector<16x48xf32>
    %84 = tpu.matmul %81, %83, %cst_33 {dimension_numbers = #tpu.dot_dimension_numbers<[1], [0], [0], [1], [0, 0, 1, 1], [], []>} : vector<16x12xbf16>, vector<12x48xbf16>, vector<16x48xf32> -> vector<16x48xf32>
    %85 = arith.addf %52, %84 : vector<16x48xf32>
    %86 = vector.extract_strided_slice %51 {offsets = [0, 12], sizes = [16, 12], strides = [1, 1]} : vector<16x144xf32> to vector<16x12xf32>
    %87 = vector.shape_cast %86 : vector<16x12xf32> to vector<2x8x12xf32>
    %88 = vector.extract_strided_slice %51 {offsets = [0, 60], sizes = [16, 12], strides = [1, 1]} : vector<16x144xf32> to vector<16x12xf32>
    %89 = vector.shape_cast %88 : vector<16x12xf32> to vector<2x8x12xf32>
    %90 = vector.extract_strided_slice %51 {offsets = [0, 108], sizes = [16, 12], strides = [1, 1]} : vector<16x144xf32> to vector<16x12xf32>
    %91 = vector.shape_cast %90 : vector<16x12xf32> to vector<2x8x12xf32>
    %92 = arith.truncf %87 : vector<2x8x12xf32> to vector<2x8x12xbf16>
    %93 = arith.truncf %89 : vector<2x8x12xf32> to vector<2x8x12xbf16>
    %cst_34 = arith.constant dense<0.000000e+00> : vector<2x8x8xf32>
    %94 = tpu.matmul %92, %93, %cst_34 {dimension_numbers = #tpu.dot_dimension_numbers<[2], [2], [1], [1], [0, 0, 0, 1, 1, 1], [0], [0]>} : vector<2x8x12xbf16>, vector<2x8x12xbf16>, vector<2x8x8xf32> -> vector<2x8x8xf32>
    %cst_35 = arith.constant 0.288675129 : f32
    %95 = vector.broadcast %cst_35 : f32 to vector<2x8x8xf32>
    %96 = arith.mulf %94, %95 : vector<2x8x8xf32>
    %97 = vector.shape_cast %13 : vector<8x8xf32> to vector<1x8x8xf32>
    %98 = vector.broadcast %97 : vector<1x8x8xf32> to vector<2x8x8xf32>
    %99 = arith.addf %96, %98 : vector<2x8x8xf32>
    %cst_36 = arith.constant dense<0xFF800000> : vector<2x8xf32>
    %100 = vector.multi_reduction <maximumf>, %99, %cst_36 [2] : vector<2x8x8xf32> to vector<2x8xf32>
    %101 = vector.shape_cast %100 : vector<2x8xf32> to vector<2x8x1xf32>
    %102 = vector.broadcast %101 : vector<2x8x1xf32> to vector<2x8x8xf32>
    %103 = arith.subf %99, %102 : vector<2x8x8xf32>
    %104 = math.exp %103 : vector<2x8x8xf32>
    %cst_37 = arith.constant dense<0.000000e+00> : vector<2x8xf32>
    %105 = vector.multi_reduction <add>, %104, %cst_37 [2] : vector<2x8x8xf32> to vector<2x8xf32>
    %106 = vector.shape_cast %105 : vector<2x8xf32> to vector<2x8x1xf32>
    %107 = tpu.reciprocal %106 {approx = true} : vector<2x8x1xf32> -> vector<2x8x1xf32>
    %108 = vector.broadcast %107 : vector<2x8x1xf32> to vector<2x8x8xf32>
    %109 = arith.mulf %104, %108 : vector<2x8x8xf32>
    %110 = arith.truncf %109 : vector<2x8x8xf32> to vector<2x8x8xbf16>
    %111 = arith.truncf %91 : vector<2x8x12xf32> to vector<2x8x12xbf16>
    %cst_38 = arith.constant dense<0.000000e+00> : vector<2x8x12xf32>
    %112 = tpu.matmul %110, %111, %cst_38 {dimension_numbers = #tpu.dot_dimension_numbers<[2], [1], [1], [2], [0, 0, 0, 1, 1, 2], [0], [0]>} : vector<2x8x8xbf16>, vector<2x8x12xbf16>, vector<2x8x12xf32> -> vector<2x8x12xf32>
    %113 = vector.shape_cast %112 : vector<2x8x12xf32> to vector<16x12xf32>
    %114 = arith.truncf %113 : vector<16x12xf32> to vector<16x12xbf16>
    %c0_39 = arith.constant 0 : index
    %c1 = arith.constant 1 : index
    %c0_40 = arith.constant 0 : index
    %c0_41 = arith.constant 0 : index
    %115 = vector.load %arg17[%c0_39, %c1, %c0_40, %c0_41] : memref<1x4x12x48xbf16, #tpu.memory_space<vmem>>, vector<1x1x12x48xbf16>
    %116 = vector.shape_cast %115 : vector<1x1x12x48xbf16> to vector<12x48xbf16>
    %cst_42 = arith.constant dense<0.000000e+00> : vector<16x48xf32>
    %117 = tpu.matmul %114, %116, %cst_42 {dimension_numbers = #tpu.dot_dimension_numbers<[1], [0], [0], [1], [0, 0, 1, 1], [], []>} : vector<16x12xbf16>, vector<12x48xbf16>, vector<16x48xf32> -> vector<16x48xf32>
    %118 = arith.addf %85, %117 : vector<16x48xf32>
    %119 = vector.extract_strided_slice %51 {offsets = [0, 24], sizes = [16, 12], strides = [1, 1]} : vector<16x144xf32> to vector<16x12xf32>
    %120 = vector.shape_cast %119 : vector<16x12xf32> to vector<2x8x12xf32>
    %121 = vector.extract_strided_slice %51 {offsets = [0, 72], sizes = [16, 12], strides = [1, 1]} : vector<16x144xf32> to vector<16x12xf32>
    %122 = vector.shape_cast %121 : vector<16x12xf32> to vector<2x8x12xf32>
    %123 = vector.extract_strided_slice %51 {offsets = [0, 120], sizes = [16, 12], strides = [1, 1]} : vector<16x144xf32> to vector<16x12xf32>
    %124 = vector.shape_cast %123 : vector<16x12xf32> to vector<2x8x12xf32>
    %125 = arith.truncf %120 : vector<2x8x12xf32> to vector<2x8x12xbf16>
    %126 = arith.truncf %122 : vector<2x8x12xf32> to vector<2x8x12xbf16>
    %cst_43 = arith.constant dense<0.000000e+00> : vector<2x8x8xf32>
    %127 = tpu.matmul %125, %126, %cst_43 {dimension_numbers = #tpu.dot_dimension_numbers<[2], [2], [1], [1], [0, 0, 0, 1, 1, 1], [0], [0]>} : vector<2x8x12xbf16>, vector<2x8x12xbf16>, vector<2x8x8xf32> -> vector<2x8x8xf32>
    %cst_44 = arith.constant 0.288675129 : f32
    %128 = vector.broadcast %cst_44 : f32 to vector<2x8x8xf32>
    %129 = arith.mulf %127, %128 : vector<2x8x8xf32>
    %130 = vector.shape_cast %13 : vector<8x8xf32> to vector<1x8x8xf32>
    %131 = vector.broadcast %130 : vector<1x8x8xf32> to vector<2x8x8xf32>
    %132 = arith.addf %129, %131 : vector<2x8x8xf32>
    %cst_45 = arith.constant dense<0xFF800000> : vector<2x8xf32>
    %133 = vector.multi_reduction <maximumf>, %132, %cst_45 [2] : vector<2x8x8xf32> to vector<2x8xf32>
    %134 = vector.shape_cast %133 : vector<2x8xf32> to vector<2x8x1xf32>
    %135 = vector.broadcast %134 : vector<2x8x1xf32> to vector<2x8x8xf32>
    %136 = arith.subf %132, %135 : vector<2x8x8xf32>
    %137 = math.exp %136 : vector<2x8x8xf32>
    %cst_46 = arith.constant dense<0.000000e+00> : vector<2x8xf32>
    %138 = vector.multi_reduction <add>, %137, %cst_46 [2] : vector<2x8x8xf32> to vector<2x8xf32>
    %139 = vector.shape_cast %138 : vector<2x8xf32> to vector<2x8x1xf32>
    %140 = tpu.reciprocal %139 {approx = true} : vector<2x8x1xf32> -> vector<2x8x1xf32>
    %141 = vector.broadcast %140 : vector<2x8x1xf32> to vector<2x8x8xf32>
    %142 = arith.mulf %137, %141 : vector<2x8x8xf32>
    %143 = arith.truncf %142 : vector<2x8x8xf32> to vector<2x8x8xbf16>
    %144 = arith.truncf %124 : vector<2x8x12xf32> to vector<2x8x12xbf16>
    %cst_47 = arith.constant dense<0.000000e+00> : vector<2x8x12xf32>
    %145 = tpu.matmul %143, %144, %cst_47 {dimension_numbers = #tpu.dot_dimension_numbers<[2], [1], [1], [2], [0, 0, 0, 1, 1, 2], [0], [0]>} : vector<2x8x8xbf16>, vector<2x8x12xbf16>, vector<2x8x12xf32> -> vector<2x8x12xf32>
    %146 = vector.shape_cast %145 : vector<2x8x12xf32> to vector<16x12xf32>
    %147 = arith.truncf %146 : vector<16x12xf32> to vector<16x12xbf16>
    %c0_48 = arith.constant 0 : index
    %c2 = arith.constant 2 : index
    %c0_49 = arith.constant 0 : index
    %c0_50 = arith.constant 0 : index
    %148 = vector.load %arg17[%c0_48, %c2, %c0_49, %c0_50] : memref<1x4x12x48xbf16, #tpu.memory_space<vmem>>, vector<1x1x12x48xbf16>
    %149 = vector.shape_cast %148 : vector<1x1x12x48xbf16> to vector<12x48xbf16>
    %cst_51 = arith.constant dense<0.000000e+00> : vector<16x48xf32>
    %150 = tpu.matmul %147, %149, %cst_51 {dimension_numbers = #tpu.dot_dimension_numbers<[1], [0], [0], [1], [0, 0, 1, 1], [], []>} : vector<16x12xbf16>, vector<12x48xbf16>, vector<16x48xf32> -> vector<16x48xf32>
    %151 = arith.addf %118, %150 : vector<16x48xf32>
    %152 = vector.extract_strided_slice %51 {offsets = [0, 36], sizes = [16, 12], strides = [1, 1]} : vector<16x144xf32> to vector<16x12xf32>
    %153 = vector.shape_cast %152 : vector<16x12xf32> to vector<2x8x12xf32>
    %154 = vector.extract_strided_slice %51 {offsets = [0, 84], sizes = [16, 12], strides = [1, 1]} : vector<16x144xf32> to vector<16x12xf32>
    %155 = vector.shape_cast %154 : vector<16x12xf32> to vector<2x8x12xf32>
    %156 = vector.extract_strided_slice %51 {offsets = [0, 132], sizes = [16, 12], strides = [1, 1]} : vector<16x144xf32> to vector<16x12xf32>
    %157 = vector.shape_cast %156 : vector<16x12xf32> to vector<2x8x12xf32>
    %158 = arith.truncf %153 : vector<2x8x12xf32> to vector<2x8x12xbf16>
    %159 = arith.truncf %155 : vector<2x8x12xf32> to vector<2x8x12xbf16>
    %cst_52 = arith.constant dense<0.000000e+00> : vector<2x8x8xf32>
    %160 = tpu.matmul %158, %159, %cst_52 {dimension_numbers = #tpu.dot_dimension_numbers<[2], [2], [1], [1], [0, 0, 0, 1, 1, 1], [0], [0]>} : vector<2x8x12xbf16>, vector<2x8x12xbf16>, vector<2x8x8xf32> -> vector<2x8x8xf32>
    %cst_53 = arith.constant 0.288675129 : f32
    %161 = vector.broadcast %cst_53 : f32 to vector<2x8x8xf32>
    %162 = arith.mulf %160, %161 : vector<2x8x8xf32>
    %163 = vector.shape_cast %13 : vector<8x8xf32> to vector<1x8x8xf32>
    %164 = vector.broadcast %163 : vector<1x8x8xf32> to vector<2x8x8xf32>
    %165 = arith.addf %162, %164 : vector<2x8x8xf32>
    %cst_54 = arith.constant dense<0xFF800000> : vector<2x8xf32>
    %166 = vector.multi_reduction <maximumf>, %165, %cst_54 [2] : vector<2x8x8xf32> to vector<2x8xf32>
    %167 = vector.shape_cast %166 : vector<2x8xf32> to vector<2x8x1xf32>
    %168 = vector.broadcast %167 : vector<2x8x1xf32> to vector<2x8x8xf32>
    %169 = arith.subf %165, %168 : vector<2x8x8xf32>
    %170 = math.exp %169 : vector<2x8x8xf32>
    %cst_55 = arith.constant dense<0.000000e+00> : vector<2x8xf32>
    %171 = vector.multi_reduction <add>, %170, %cst_55 [2] : vector<2x8x8xf32> to vector<2x8xf32>
    %172 = vector.shape_cast %171 : vector<2x8xf32> to vector<2x8x1xf32>
    %173 = tpu.reciprocal %172 {approx = true} : vector<2x8x1xf32> -> vector<2x8x1xf32>
    %174 = vector.broadcast %173 : vector<2x8x1xf32> to vector<2x8x8xf32>
    %175 = arith.mulf %170, %174 : vector<2x8x8xf32>
    %176 = arith.truncf %175 : vector<2x8x8xf32> to vector<2x8x8xbf16>
    %177 = arith.truncf %157 : vector<2x8x12xf32> to vector<2x8x12xbf16>
    %cst_56 = arith.constant dense<0.000000e+00> : vector<2x8x12xf32>
    %178 = tpu.matmul %176, %177, %cst_56 {dimension_numbers = #tpu.dot_dimension_numbers<[2], [1], [1], [2], [0, 0, 0, 1, 1, 2], [0], [0]>} : vector<2x8x8xbf16>, vector<2x8x12xbf16>, vector<2x8x12xf32> -> vector<2x8x12xf32>
    %179 = vector.shape_cast %178 : vector<2x8x12xf32> to vector<16x12xf32>
    %180 = arith.truncf %179 : vector<16x12xf32> to vector<16x12xbf16>
    %c0_57 = arith.constant 0 : index
    %c3 = arith.constant 3 : index
    %c0_58 = arith.constant 0 : index
    %c0_59 = arith.constant 0 : index
    %181 = vector.load %arg17[%c0_57, %c3, %c0_58, %c0_59] : memref<1x4x12x48xbf16, #tpu.memory_space<vmem>>, vector<1x1x12x48xbf16>
    %182 = vector.shape_cast %181 : vector<1x1x12x48xbf16> to vector<12x48xbf16>
    %cst_60 = arith.constant dense<0.000000e+00> : vector<16x48xf32>
    %183 = tpu.matmul %180, %182, %cst_60 {dimension_numbers = #tpu.dot_dimension_numbers<[1], [0], [0], [1], [0, 0, 1, 1], [], []>} : vector<16x12xbf16>, vector<12x48xbf16>, vector<16x48xf32> -> vector<16x48xf32>
    %184 = arith.addf %151, %183 : vector<16x48xf32>
    %c0_61 = arith.constant 0 : index
    %c0_62 = arith.constant 0 : index
    %c0_63 = arith.constant 0 : index
    %185 = vector.load %arg18[%c0_61, %c0_62, %c0_63] : memref<1x1x48xf32, #tpu.memory_space<vmem>>, vector<1x1x48xf32>
    %186 = vector.shape_cast %185 : vector<1x1x48xf32> to vector<1x48xf32>
    %187 = vector.broadcast %186 : vector<1x48xf32> to vector<16x48xf32>
    %188 = arith.addf %184, %187 : vector<16x48xf32>
    %189 = vector.shape_cast %188 : vector<16x48xf32> to vector<2x8x48xf32>
    %190 = arith.addf %14, %189 : vector<2x8x48xf32>
    %c0_64 = arith.constant 0 : index
    %c0_65 = arith.constant 0 : index
    %c0_66 = arith.constant 0 : index
    %191 = vector.load %arg29[%c0_64, %c0_65, %c0_66] : memref<2x8x48xf32, #tpu.memory_space<vmem>>, vector<2x8x48xf32>
    tpu.vector_store %arg29[%c0_64, %c0_65, %c0_66], %190 {strides = array<i32>} : memref<2x8x48xf32, #tpu.memory_space<vmem>>, vector<2x8x48xf32>,
    %c0_67 = arith.constant 0 : index
    %c0_68 = arith.constant 0 : index
    %c0_69 = arith.constant 0 : index
    %192 = vector.load %arg19[%c0_67, %c0_68, %c0_69] : memref<1x1x48xf32, #tpu.memory_space<vmem>>, vector<1x1x48xf32>
    %193 = vector.shape_cast %192 : vector<1x1x48xf32> to vector<1x48xf32>
    %c0_70 = arith.constant 0 : index
    %c0_71 = arith.constant 0 : index
    %c0_72 = arith.constant 0 : index
    %194 = vector.load %arg20[%c0_70, %c0_71, %c0_72] : memref<1x1x48xf32, #tpu.memory_space<vmem>>, vector<1x1x48xf32>
    %195 = vector.shape_cast %194 : vector<1x1x48xf32> to vector<1x48xf32>
    %cst_73 = arith.constant dense<0.000000e+00> : vector<2x8xf32>
    %196 = vector.multi_reduction <add>, %190, %cst_73 [2] : vector<2x8x48xf32> to vector<2x8xf32>
    %197 = vector.shape_cast %196 : vector<2x8xf32> to vector<2x8x1xf32>
    %cst_74 = arith.constant 4.800000e+01 : f32
    %198 = vector.broadcast %cst_74 : f32 to vector<2x8x1xf32>
    %199 = arith.divf %197, %198 : vector<2x8x1xf32>
    %200 = vector.broadcast %199 : vector<2x8x1xf32> to vector<2x8x48xf32>
    %201 = arith.subf %190, %200 : vector<2x8x48xf32>
    %202 = arith.mulf %201, %201 : vector<2x8x48xf32>
    %cst_75 = arith.constant dense<0.000000e+00> : vector<2x8xf32>
    %203 = vector.multi_reduction <add>, %202, %cst_75 [2] : vector<2x8x48xf32> to vector<2x8xf32>
    %204 = vector.shape_cast %203 : vector<2x8xf32> to vector<2x8x1xf32>
    %cst_76 = arith.constant 4.800000e+01 : f32
    %205 = vector.broadcast %cst_76 : f32 to vector<2x8x1xf32>
    %206 = arith.divf %204, %205 : vector<2x8x1xf32>
    %207 = vector.broadcast %199 : vector<2x8x1xf32> to vector<2x8x48xf32>
    %208 = arith.subf %190, %207 : vector<2x8x48xf32>
    %cst_77 = arith.constant 9.99999974E-6 : f32
    %209 = vector.broadcast %cst_77 : f32 to vector<2x8x1xf32>
    %210 = arith.addf %206, %209 : vector<2x8x1xf32>
    %211 = math.rsqrt %210 : vector<2x8x1xf32>
    %212 = vector.broadcast %211 : vector<2x8x1xf32> to vector<2x8x48xf32>
    %213 = arith.mulf %208, %212 : vector<2x8x48xf32>
    %214 = vector.shape_cast %193 : vector<1x48xf32> to vector<1x1x48xf32>
    %215 = vector.broadcast %214 : vector<1x1x48xf32> to vector<2x8x48xf32>
    %216 = arith.mulf %213, %215 : vector<2x8x48xf32>
    %217 = vector.shape_cast %195 : vector<1x48xf32> to vector<1x1x48xf32>
    %218 = vector.broadcast %217 : vector<1x1x48xf32> to vector<2x8x48xf32>
    %219 = arith.addf %216, %218 : vector<2x8x48xf32>
    %220 = vector.shape_cast %219 : vector<2x8x48xf32> to vector<16x48xf32>
    %221 = arith.truncf %220 : vector<16x48xf32> to vector<16x48xbf16>
    %c0_78 = arith.constant 0 : index
    %c0_79 = arith.constant 0 : index
    %c0_80 = arith.constant 0 : index
    %222 = vector.load %arg21[%c0_78, %c0_79, %c0_80] : memref<1x48x192xbf16, #tpu.memory_space<vmem>>, vector<1x48x192xbf16>
    %223 = vector.shape_cast %222 : vector<1x48x192xbf16> to vector<48x192xbf16>
    %cst_81 = arith.constant dense<0.000000e+00> : vector<16x192xf32>
    %224 = tpu.matmul %221, %223, %cst_81 {dimension_numbers = #tpu.dot_dimension_numbers<[1], [0], [0], [1], [0, 0, 1, 1], [], []>} : vector<16x48xbf16>, vector<48x192xbf16>, vector<16x192xf32> -> vector<16x192xf32>
    %c0_82 = arith.constant 0 : index
    %c0_83 = arith.constant 0 : index
    %c0_84 = arith.constant 0 : index
    %225 = vector.load %arg22[%c0_82, %c0_83, %c0_84] : memref<1x1x192xf32, #tpu.memory_space<vmem>>, vector<1x1x192xf32>
    %226 = vector.shape_cast %225 : vector<1x1x192xf32> to vector<1x192xf32>
    %227 = vector.broadcast %226 : vector<1x192xf32> to vector<16x192xf32>
    %228 = arith.addf %224, %227 : vector<16x192xf32>
    %cst_85 = arith.constant 1.702000e+00 : f32
    %229 = vector.broadcast %cst_85 : f32 to vector<16x192xf32>
    %230 = arith.mulf %229, %228 : vector<16x192xf32>
    %231 = arith.negf %230 : vector<16x192xf32>
    %232 = math.exp %231 : vector<16x192xf32>
    %cst_86 = arith.constant 1.000000e+00 : f32
    %233 = vector.broadcast %cst_86 : f32 to vector<16x192xf32>
    %234 = arith.addf %233, %232 : vector<16x192xf32>
    %235 = arith.divf %233, %234 : vector<16x192xf32>
    %236 = arith.mulf %228, %235 : vector<16x192xf32>
    %237 = arith.truncf %236 : vector<16x192xf32> to vector<16x192xbf16>
    %c0_87 = arith.constant 0 : index
    %c0_88 = arith.constant 0 : index
    %c0_89 = arith.constant 0 : index
    %238 = vector.load %arg23[%c0_87, %c0_88, %c0_89] : memref<1x192x48xbf16, #tpu.memory_space<vmem>>, vector<1x192x48xbf16>
    %239 = vector.shape_cast %238 : vector<1x192x48xbf16> to vector<192x48xbf16>
    %cst_90 = arith.constant dense<0.000000e+00> : vector<16x48xf32>
    %240 = tpu.matmul %237, %239, %cst_90 {dimension_numbers = #tpu.dot_dimension_numbers<[1], [0], [0], [1], [0, 0, 1, 1], [], []>} : vector<16x192xbf16>, vector<192x48xbf16>, vector<16x48xf32> -> vector<16x48xf32>
    %c0_91 = arith.constant 0 : index
    %c0_92 = arith.constant 0 : index
    %c0_93 = arith.constant 0 : index
    %241 = vector.load %arg24[%c0_91, %c0_92, %c0_93] : memref<1x1x48xf32, #tpu.memory_space<vmem>>, vector<1x1x48xf32>
    %242 = vector.shape_cast %241 : vector<1x1x48xf32> to vector<1x48xf32>
    %243 = vector.broadcast %242 : vector<1x48xf32> to vector<16x48xf32>
    %244 = arith.addf %240, %243 : vector<16x48xf32>
    %245 = vector.shape_cast %244 : vector<16x48xf32> to vector<2x8x48xf32>
    %246 = arith.addf %190, %245 : vector<2x8x48xf32>
    %c0_94 = arith.constant 0 : index
    %c0_95 = arith.constant 0 : index
    %c0_96 = arith.constant 0 : index
    %247 = vector.load %arg29[%c0_94, %c0_95, %c0_96] : memref<2x8x48xf32, #tpu.memory_space<vmem>>, vector<2x8x48xf32>
    tpu.vector_store %arg29[%c0_94, %c0_95, %c0_96], %246 {strides = array<i32>} : memref<2x8x48xf32, #tpu.memory_space<vmem>>, vector<2x8x48xf32>,
    %c1_i32_97 = arith.constant 1 : i32
    %248 = arith.cmpi eq, %arg0, %c1_i32_97 : i32
    %249 = arith.extui %248 : i1 to i32
    %c0_i32_98 = arith.constant 0 : i32
    %250 = arith.cmpi ne, %249, %c0_i32_98 : i32
    scf.if %250 {
      %c0_99 = arith.constant 0 : index
      %c0_100 = arith.constant 0 : index
      %c0_101 = arith.constant 0 : index
      %251 = vector.load %arg29[%c0_99, %c0_100, %c0_101] : memref<2x8x48xf32, #tpu.memory_space<vmem>>, vector<1x1x48xf32>
      %252 = vector.shape_cast %251 : vector<1x1x48xf32> to vector<1x48xf32>
      %c1_102 = arith.constant 1 : index
      %c0_103 = arith.constant 0 : index
      %c0_104 = arith.constant 0 : index
      %253 = vector.load %arg29[%c1_102, %c0_103, %c0_104] : memref<2x8x48xf32, #tpu.memory_space<vmem>>, vector<1x1x48xf32>
      %254 = vector.shape_cast %253 : vector<1x1x48xf32> to vector<1x48xf32>
      %255 = tpu.concatenate %252, %254 in 0 : vector<1x48xf32>, vector<1x48xf32> -> vector<2x48xf32>
      %c0_105 = arith.constant 0 : index
      %c0_106 = arith.constant 0 : index
      %256 = vector.load %arg25[%c0_105, %c0_106] : memref<1x48xf32, #tpu.memory_space<vmem>>, vector<1x48xf32>
      %c0_107 = arith.constant 0 : index
      %c0_108 = arith.constant 0 : index
      %257 = vector.load %arg26[%c0_107, %c0_108] : memref<1x48xf32, #tpu.memory_space<vmem>>, vector<1x48xf32>
      %cst_109 = arith.constant dense<0.000000e+00> : vector<2xf32>
      %258 = vector.multi_reduction <add>, %255, %cst_109 [1] : vector<2x48xf32> to vector<2xf32>
      %259 = vector.shape_cast %258 : vector<2xf32> to vector<2x1xf32>
      %cst_110 = arith.constant 4.800000e+01 : f32
      %260 = vector.broadcast %cst_110 : f32 to vector<2x1xf32>
      %261 = arith.divf %259, %260 : vector<2x1xf32>
      %262 = vector.broadcast %261 : vector<2x1xf32> to vector<2x48xf32>
      %263 = arith.subf %255, %262 : vector<2x48xf32>
      %264 = arith.mulf %263, %263 : vector<2x48xf32>
      %cst_111 = arith.constant dense<0.000000e+00> : vector<2xf32>
      %265 = vector.multi_reduction <add>, %264, %cst_111 [1] : vector<2x48xf32> to vector<2xf32>
      %266 = vector.shape_cast %265 : vector<2xf32> to vector<2x1xf32>
      %cst_112 = arith.constant 4.800000e+01 : f32
      %267 = vector.broadcast %cst_112 : f32 to vector<2x1xf32>
      %268 = arith.divf %266, %267 : vector<2x1xf32>
      %269 = vector.broadcast %261 : vector<2x1xf32> to vector<2x48xf32>
      %270 = arith.subf %255, %269 : vector<2x48xf32>
      %cst_113 = arith.constant 9.99999974E-6 : f32
      %271 = vector.broadcast %cst_113 : f32 to vector<2x1xf32>
      %272 = arith.addf %268, %271 : vector<2x1xf32>
      %273 = math.rsqrt %272 : vector<2x1xf32>
      %274 = vector.broadcast %273 : vector<2x1xf32> to vector<2x48xf32>
      %275 = arith.mulf %270, %274 : vector<2x48xf32>
      %276 = vector.broadcast %256 : vector<1x48xf32> to vector<2x48xf32>
      %277 = arith.mulf %275, %276 : vector<2x48xf32>
      %278 = vector.broadcast %257 : vector<1x48xf32> to vector<2x48xf32>
      %279 = arith.addf %277, %278 : vector<2x48xf32>
      %c0_114 = arith.constant 0 : index
      %c0_115 = arith.constant 0 : index
      %280 = vector.load %arg27[%c0_114, %c0_115] : memref<48x16xbf16, #tpu.memory_space<vmem>>, vector<48x16xbf16>
      %281 = arith.truncf %279 : vector<2x48xf32> to vector<2x48xbf16>
      %cst_116 = arith.constant dense<0.000000e+00> : vector<2x16xf32>
      %282 = tpu.matmul %281, %280, %cst_116 {dimension_numbers = #tpu.dot_dimension_numbers<[1], [0], [0], [1], [0, 0, 1, 1], [], []>} : vector<2x48xbf16>, vector<48x16xbf16>, vector<2x16xf32> -> vector<2x16xf32>
      %283 = arith.mulf %282, %282 : vector<2x16xf32>
      %cst_117 = arith.constant dense<0.000000e+00> : vector<2xf32>
      %284 = vector.multi_reduction <add>, %283, %cst_117 [1] : vector<2x16xf32> to vector<2xf32>
      %285 = vector.shape_cast %284 : vector<2xf32> to vector<2x1xf32>
      %cst_118 = arith.constant 9.99999996E-13 : f32
      %286 = vector.broadcast %cst_118 : f32 to vector<2x1xf32>
      %287 = arith.addf %285, %286 : vector<2x1xf32>
      %288 = math.rsqrt %287 : vector<2x1xf32>
      %289 = vector.broadcast %288 : vector<2x1xf32> to vector<2x16xf32>
      %290 = arith.mulf %282, %289 : vector<2x16xf32>
      %c0_119 = arith.constant 0 : index
      %c0_120 = arith.constant 0 : index
      %291 = vector.load %arg28[%c0_119, %c0_120] : memref<2x16xf32, #tpu.memory_space<vmem>>, vector<2x16xf32>
      tpu.vector_store %arg28[%c0_119, %c0_120], %290 {strides = array<i32>} : memref<2x16xf32, #tpu.memory_space<vmem>>, vector<2x16xf32>,
    } else {
    }
    return
  }
  func.func @transform_0(%arg0: i32) -> (i32, i32) {
    %c0_i32 = arith.constant 0 : i32
    %c0_i32_0 = arith.constant 0 : i32
    %c0_i32_1 = arith.constant 0 : i32
    return %c0_i32, %c0_i32_0 : i32, i32
  }
  func.func @transform_1(%arg0: i32) -> (i32, i32) {
    %c0_i32 = arith.constant 0 : i32
    %c0_i32_0 = arith.constant 0 : i32
    %c0_i32_1 = arith.constant 0 : i32
    return %c0_i32, %c0_i32_0 : i32, i32
  }
  func.func @transform_2(%arg0: i32) -> (i32, i32) {
    %c0_i32 = arith.constant 0 : i32
    %c0_i32_0 = arith.constant 0 : i32
    %c0_i32_1 = arith.constant 0 : i32
    return %c0_i32, %c0_i32_0 : i32, i32
  }
  func.func @transform_3(%arg0: i32) -> (i32, i32) {
    %c0_i32 = arith.constant 0 : i32
    %c0_i32_0 = arith.constant 0 : i32
    %c0_i32_1 = arith.constant 0 : i32
    return %c0_i32, %c0_i32_0 : i32, i32
  }
  func.func @transform_4(%arg0: i32) -> (i32, i32) {
    %c0_i32 = arith.constant 0 : i32
    %c0_i32_0 = arith.constant 0 : i32
    %c0_i32_1 = arith.constant 0 : i32
    return %c0_i32, %c0_i32_0 : i32, i32
  }
  func.func @transform_5(%arg0: i32) -> (i32, i32) {
    %c0_i32 = arith.constant 0 : i32
    %c0_i32_0 = arith.constant 0 : i32
    %c0_i32_1 = arith.constant 0 : i32
    return %c0_i32, %c0_i32_0 : i32, i32
  }
  func.func @transform_6(%arg0: i32) -> (i32, i32) {
    %c0_i32 = arith.constant 0 : i32
    %c0_i32_0 = arith.constant 0 : i32
    %c0_i32_1 = arith.constant 0 : i32
    return %c0_i32, %c0_i32_0 : i32, i32
  }
  func.func @transform_7(%arg0: i32) -> (i32, i32) {
    %c0_i32 = arith.constant 0 : i32
    %c0_i32_0 = arith.constant 0 : i32
    %c0_i32_1 = arith.constant 0 : i32
    return %c0_i32, %c0_i32_0 : i32, i32
  }
  func.func @transform_8(%arg0: i32) -> (i32, i32) {
    %c0_i32 = arith.constant 0 : i32
    %c0_i32_0 = arith.constant 0 : i32
    %c0_i32_1 = arith.constant 0 : i32
    return %c0_i32, %c0_i32_0 : i32, i32
  }
  func.func @transform_9(%arg0: i32) -> (i32, i32, i32) {
    %c0_i32 = arith.constant 0 : i32
    %c0_i32_0 = arith.constant 0 : i32
    %c0_i32_1 = arith.constant 0 : i32
    return %arg0, %c0_i32, %c0_i32_0 : i32, i32, i32
  }
  func.func @transform_10(%arg0: i32) -> (i32, i32, i32) {
    %c0_i32 = arith.constant 0 : i32
    %c0_i32_0 = arith.constant 0 : i32
    %c0_i32_1 = arith.constant 0 : i32
    return %arg0, %c0_i32, %c0_i32_0 : i32, i32, i32
  }
  func.func @transform_11(%arg0: i32) -> (i32, i32, i32) {
    %c0_i32 = arith.constant 0 : i32
    %c0_i32_0 = arith.constant 0 : i32
    %c0_i32_1 = arith.constant 0 : i32
    return %arg0, %c0_i32, %c0_i32_0 : i32, i32, i32
  }
  func.func @transform_12(%arg0: i32) -> (i32, i32, i32) {
    %c0_i32 = arith.constant 0 : i32
    %c0_i32_0 = arith.constant 0 : i32
    %c0_i32_1 = arith.constant 0 : i32
    return %arg0, %c0_i32, %c0_i32_0 : i32, i32, i32
  }
  func.func @transform_13(%arg0: i32) -> (i32, i32, i32) {
    %c0_i32 = arith.constant 0 : i32
    %c0_i32_0 = arith.constant 0 : i32
    %c0_i32_1 = arith.constant 0 : i32
    return %arg0, %c0_i32, %c0_i32_0 : i32, i32, i32
  }
  func.func @transform_14(%arg0: i32) -> (i32, i32, i32) {
    %c0_i32 = arith.constant 0 : i32
    %c0_i32_0 = arith.constant 0 : i32
    %c0_i32_1 = arith.constant 0 : i32
    return %arg0, %c0_i32, %c0_i32_0 : i32, i32, i32
  }
  func.func @transform_15(%arg0: i32) -> (i32, i32, i32) {
    %c0_i32 = arith.constant 0 : i32
    %c0_i32_0 = arith.constant 0 : i32
    %c0_i32_1 = arith.constant 0 : i32
    return %arg0, %c0_i32, %c0_i32_0 : i32, i32, i32
  }
  func.func @transform_16(%arg0: i32) -> (i32, i32, i32, i32) {
    %c0_i32 = arith.constant 0 : i32
    %c0_i32_0 = arith.constant 0 : i32
    %c0_i32_1 = arith.constant 0 : i32
    %c0_i32_2 = arith.constant 0 : i32
    return %arg0, %c0_i32, %c0_i32_0, %c0_i32_1 : i32, i32, i32, i32
  }
  func.func @transform_17(%arg0: i32) -> (i32, i32, i32) {
    %c0_i32 = arith.constant 0 : i32
    %c0_i32_0 = arith.constant 0 : i32
    %c0_i32_1 = arith.constant 0 : i32
    return %arg0, %c0_i32, %c0_i32_0 : i32, i32, i32
  }
  func.func @transform_18(%arg0: i32) -> (i32, i32, i32) {
    %c0_i32 = arith.constant 0 : i32
    %c0_i32_0 = arith.constant 0 : i32
    %c0_i32_1 = arith.constant 0 : i32
    return %arg0, %c0_i32, %c0_i32_0 : i32, i32, i32
  }
  func.func @transform_19(%arg0: i32) -> (i32, i32, i32) {
    %c0_i32 = arith.constant 0 : i32
    %c0_i32_0 = arith.constant 0 : i32
    %c0_i32_1 = arith.constant 0 : i32
    return %arg0, %c0_i32, %c0_i32_0 : i32, i32, i32
  }
  func.func @transform_20(%arg0: i32) -> (i32, i32, i32) {
    %c0_i32 = arith.constant 0 : i32
    %c0_i32_0 = arith.constant 0 : i32
    %c0_i32_1 = arith.constant 0 : i32
    return %arg0, %c0_i32, %c0_i32_0 : i32, i32, i32
  }
  func.func @transform_21(%arg0: i32) -> (i32, i32, i32) {
    %c0_i32 = arith.constant 0 : i32
    %c0_i32_0 = arith.constant 0 : i32
    %c0_i32_1 = arith.constant 0 : i32
    return %arg0, %c0_i32, %c0_i32_0 : i32, i32, i32
  }
  func.func @transform_22(%arg0: i32) -> (i32, i32, i32) {
    %c0_i32 = arith.constant 0 : i32
    %c0_i32_0 = arith.constant 0 : i32
    %c0_i32_1 = arith.constant 0 : i32
    return %arg0, %c0_i32, %c0_i32_0 : i32, i32, i32
  }
  func.func @transform_23(%arg0: i32) -> (i32, i32, i32) {
    %c0_i32 = arith.constant 0 : i32
    %c0_i32_0 = arith.constant 0 : i32
    %c0_i32_1 = arith.constant 0 : i32
    return %arg0, %c0_i32, %c0_i32_0 : i32, i32, i32
  }
  func.func @transform_24(%arg0: i32) -> (i32, i32) {
    %c0_i32 = arith.constant 0 : i32
    %c0_i32_0 = arith.constant 0 : i32
    %c0_i32_1 = arith.constant 0 : i32
    return %c0_i32, %c0_i32_0 : i32, i32
  }
  func.func @transform_25(%arg0: i32) -> (i32, i32) {
    %c0_i32 = arith.constant 0 : i32
    %c0_i32_0 = arith.constant 0 : i32
    %c0_i32_1 = arith.constant 0 : i32
    return %c0_i32, %c0_i32_0 : i32, i32
  }
  func.func @transform_26(%arg0: i32) -> (i32, i32) {
    %c0_i32 = arith.constant 0 : i32
    %c0_i32_0 = arith.constant 0 : i32
    %c0_i32_1 = arith.constant 0 : i32
    return %c0_i32, %c0_i32_0 : i32, i32
  }
  func.func @transform_27(%arg0: i32) -> (i32, i32) {
    %c0_i32 = arith.constant 0 : i32
    %c0_i32_0 = arith.constant 0 : i32
    %c0_i32_1 = arith.constant 0 : i32
    return %c0_i32, %c0_i32_0 : i32, i32
  }
}

</mosaic_0001>

<bundles_post_ra>
// kernel: forward.5
= control target key start
LH: loop header
LB: loop body
LE: loop exit
PB: predicated region body
PF: predicated region fallthrough
CT: control target
= control target key end

     0   :  { %s195_s0 = inlined_call_operand.<no memory space> [shape: f32[1,1], index: 0, kind: input, shape index: {}]   ;;  %s196_s1 = inlined_call_operand.vmem [shape: f32[2,16], index: 1, kind: input, shape index: {}]   ;;  %s197_s2 = inlined_call_operand.vmem [shape: f32[3,16], index: 2, kind: input, shape index: {}]   ;;  %s198_s3 = inlined_call_operand.hbm [shape: f32[2,3], index: 3, kind: output, shape index: {}]  }
   0x1   :  { %v8_v0 = vstv %s195_s0 }
   0x2   :  { %9 = vst [vmem:[#allocation2] sm:$0x1] %v8_v0 }
   0x3   :  { %v24_v1 = vld [vmem:[%s197_s2] sm:$0x7]  ;;  %vm25_vm0 = vcmask 130048   ;;  %v160_v2 = vmov 0.0   ;;  %vm161_vm1 = vmmov 0  }
   0x4   :  { %124 = vmatprep.subr.mxu0 %v160_v2  ;;  %126 = vmatprep.mubr.msk.f32.mxu0 %vm161_vm1, %v160_v2 }
   0x9   :  { %v17_v3 = vld [vmem:[#allocation2] sm:$0x1] }
   0xa   :  { %10 = vsyncpa [#allocation4], 0  ;;  %125 = vmatpush3.xpose.msk.msra.mxu0 %vm25_vm0, %v24_v1  ;;  %v23_v4 = vld [vmem:[%s196_s1] sm:$0x3]  ;;  %129 = vpush %v17_v3  ;;  %s162_s18 = smov [#allocation3]   ;;  %vm104_vm2 = vcmask 17408  }
   0xb   :  { %s112_s19 = sshll.u32 %s162_s18, 4  ;;  %s113_s19 = int_to_ptr.vmem [resolvable:$true] %s112_s19 }
   0xc   :  { %s138_s20 = scalar_lea.vmem %s113_s19, 32  ;;  %p143_p1 = scmp.lt.s32.totalorder %s113_s19, %s113_s19 }
   0xd   :  { %127 = vmatmul.mubr.msk.f32.vlgmr.msra.gmra.mxu0 %vm25_vm0, %v23_v4  ;;  %p139_p0 = scmp.ne.s32.totalorder %s113_s19, %s138_s20  ;;  %p144_p2 = scmp.lt.s32.totalorder %s138_s20, %s138_s20 }
   0xf   :  { %p145_p3 = por %p144_p2, %p143_p1 }
  0x11   :  { %p146_p4 = pnand %p145_p3, %p139_p0 }
  0x3b   :  { %s130_s0 = spop %129 }
  0x3c   :  { %v19_v5 = vstv %s130_s0 }
  0x3d   :  { %v20_v6 = vmul.f32 1.442695, %v19_v5 }
  0x3f   :  { %136 = vpow2.f32 %v20_v6 }
  0x4c   :  { %v137_v7 = vpop.eup %136 }
  0x4d   :  { %131 = vpush %v137_v7 }
  0x7e   :  { %s132_s2 = spop %131 }
  0x7f   :  { %v102_v8 = vstv %s132_s2 }
  0xcd   :  { %v98_v9 = vpop.f32.mrf.mxu0 }
  0xce   :  { %v103_v10 = vmul.f32 %v102_v8, %v98_v9 }
  0xcf   :  { %v128_v11 = vpop.f32.mrf.mxu0 }
  0xd0   :  { %105 = vst.msk [vmem:[#allocation3] sm:$0x3] %vm104_vm2, %v103_v10 }
  0xd1   :  { %149 = shalt.err (!%p146_p4)
}
  0xd2   :  { %115 = dma.vmem_to_hbm [thread:$0]  %s113_s19, 32, %s198_s3, [#allocation4]  }
  0xd3   :  { %158 = dma.done.wait [#allocation4], 32  }
  0xd4   :  { %159 = vsyncadd [#allocation4], 4294967264 }
  0xd5   :  { %119 = vsyncpa [#allocation4], 1 }

// kernel: forward.3
= control target key start
LH: loop header
LB: loop body
LE: loop exit
PB: predicated region body
PF: predicated region fallthrough
CT: control target
= control target key end

     0   :  { %s4416_s0 = inlined_call_operand.vmem [shape: s32[3], index: 0, kind: input, shape index: {}]   ;;  %s4417_s1 = inlined_call_operand.vmem [shape: f32[3,1,32], index: 1, kind: input, shape index: {}]   ;;  %s4418_s2 = inlined_call_operand.vmem [shape: f32[2,32], index: 2, kind: input, shape index: {}]   ;;  %s4419_s3 = inlined_call_operand.vmem [shape: f32[3,5,32], index: 3, kind: input, shape index: {}]   ;;  %s4420_s4 = inlined_call_operand.vmem [shape: f32[8,32], index: 4, kind: input, shape index: {}]   ;;  %s4421_s5 = inlined_call_operand.vmem [shape: f32[2,2,32], index: 5, kind: input, shape index: {}]   ;;  %s4422_s6 = inlined_call_operand.vmem [shape: f32[2,1,32], index: 6, kind: input, shape index: {}]   ;;  %s4423_s7 = inlined_call_operand.vmem [shape: f32[2,1,32], index: 7, kind: input, shape index: {}]   ;;  %s4424_s8 = inlined_call_operand.vmem [shape: bf16[2,32,96], index: 8, kind: input, shape index: {}]   ;;  %s4425_s9 = inlined_call_operand.vmem [shape: f32[2,1,96], index: 9, kind: input, shape index: {}]   ;;  %s4426_s10 = inlined_call_operand.vmem [shape: bf16[2,4,8,32], index: 10, kind: input, shape index: {}]   ;;  %s4427_s11 = inlined_call_operand.vmem [shape: f32[2,1,32], index: 11, kind: input, shape index: {}]   ;;  %s4428_s12 = inlined_call_operand.vmem [shape: f32[2,1,32], index: 12, kind: input, shape index: {}]   ;;  %s4429_s13 = inlined_call_operand.vmem [shape: f32[2,1,32], index: 13, kind: input, shape index: {}]   ;;  %s4430_s14 = inlined_call_operand.vmem [shape: bf16[2,32,128], index: 14, kind: input, shape index: {}]   ;;  %s4431_s15 = inlined_call_operand.vmem [shape: f32[2,1,128], index: 15, kind: input, shape index: {}]   ;;  %s4432_s16 = inlined_call_operand.vmem [shape: bf16[2,128,32], index: 16, kind: input, shape index: {}]   ;;  %s4433_s17 = inlined_call_operand.vmem [shape: f32[2,1,32], index: 17, kind: input, shape index: {}]   ;;  %s4434_s18 = inlined_call_operand.vmem [shape: f32[1,32], index: 18, kind: input, shape index: {}]   ;;  %s4435_s19 = inlined_call_operand.vmem [shape: f32[1,32], index: 19, kind: input, shape index: {}]   ;;  %s4436_s20 = inlined_call_operand.vmem [shape: bf16[32,16], index: 20, kind: input, shape index: {}]   ;;  %s4437_s21 = inlined_call_operand.vmem [shape: f32[3,16], index: 21, kind: output, shape index: {}]  }
   0x1   :  { %4445 = sst [smem:[#allocation8_spill]] %s4416_s0 }
   0x2   :  { %4446 = sst [smem:[#allocation9_spill]] %s4417_s1 }
   0x3   :  { %4447 = sst [smem:[#allocation10_spill]] %s4418_s2 }
   0x4   :  { %4448 = sst [smem:[#allocation11_spill]] %s4419_s3 }
   0x5   :  { %4449 = sst [smem:[#allocation12_spill]] %s4420_s4 }
   0x6   :  { %4450 = sst [smem:[#allocation13_spill]] %s4421_s5 }
   0x7   :  { %4451 = sst [smem:[#allocation14_spill]] %s4424_s8 }
   0x8   :  { %4452 = sst [smem:[#allocation15_spill]] %s4426_s10 }
   0x9   :  { %4453 = sst [smem:[#allocation16_spill]] %s4431_s15 }
   0xa   :  { %4454 = sst [smem:[#allocation17_spill]] %s4434_s18 }
   0xb   :  { %4455 = sst [smem:[#allocation18_spill]] %s4435_s19 }
   0xc   :  { %4456 = sst [smem:[#allocation19_spill]] %s4436_s20 }
   0xd   :  { %4457 = sst [smem:[#allocation20_spill]] %s4437_s21 }
   0xe   :  { %s4458_s26 = sld [smem:[#allocation8_spill]] }
  0x14   :  { %s26_s15 = sshll.u32 %s4458_s26, 4  ;;  %s27_s15 = int_to_ptr.vmem [resolvable:$true] %s26_s15 }
  0x15   :  { %s3737_s27 = scalar_lea.vmem %s27_s15, 16  ;;  %p3742_p1 = scmp.lt.s32.totalorder %s27_s15, %s27_s15 }
  0x16   :  { %p3738_p0 = scmp.ne.s32.totalorder %s27_s15, %s3737_s27  ;;  %p3743_p2 = scmp.lt.s32.totalorder %s3737_s27, %s3737_s27 }
  0x18   :  { %p3744_p3 = por %p3743_p2, %p3742_p1 }
  0x1a   :  { %p3745_p4 = pnand %p3744_p3, %p3738_p0 }
  0x1c   :  { %3748 = shalt.err (!%p3745_p4)  }
  0x1d   :  { %s3759_s3 = smov [#allocation4]  }
  0x1e   :  { %29 = dma.vmem_to_smem %s27_s15, 16, %s3759_s3, [#allocation3] }
  0x1f   :  { %3753 = dma.done.wait [#allocation3], 16 }
  0x20   :  { %3754 = vsyncadd [#allocation3], 4294967280 }
  0x21   :  { %31 = sfence }
  0x22   :  { %s3888_s28 = smov 0  }
  0x23 LB: > { %4459 = sst [smem:[#allocation6_spill]] %s3757_s28  ;;  %s3894_s29 = sadd.s32 4294967295, %s3757_s28   ;;  %s3757_s28 = sphi %s3888_s28, %s37_s28  }
  0x24   : > { %p3229_p5 = scmp.ge.s32.totalorder %s3757_s28, 1  ;;  %p667_p6 = scmp.lt.s32.totalorder %s3757_s28, 3 }
  0x26   : > { %p668_p7 = pnand %p3229_p5, %p667_p6 }
  0x28   : > { %671 = sbr.rel (%p668_p7) target bundleno = 5093 (0x13e5), region = 100 }
  0x2d   : > { %p763_p8 = scmp.lt.s32.totalorder %s3894_s29, 1  ;;  %s4460_s1 = sld [smem:[#allocation13_spill]] }
  0x2e   : > { %s4461_s8 = sld [smem:[#allocation14_spill]]  ;;  %p3239_p9 = scmp.ne.s32.totalorder %s3894_s29, 0 }
  0x2f   : > { %s3900_s15 = scalar_select %p763_p8, %s3894_s29, 1 }
  0x30   : > { %s4462_s10 = sld [smem:[#allocation15_spill]] }
  0x31   : > { %s3230_s0 = sshll.u32 %s3900_s15, 1  ;;  %s3319_s27 = sshll.u32 %s3900_s15, 4 }
  0x32   : > { %s791_s26 = scalar_lea.vmem %s4428_s12, %s3900_s15  ;;  %s794_s21 = scalar_lea.vmem %s4429_s13, %s3900_s15 }
  0x33   : > { %s3910_s24 = scalar_lea.vmem %s4460_s1, %s3230_s0  ;;  %s3946_s5 = scalar_lea.vmem %s4430_s14, %s3319_s27 }
  0x34   : > { %s3924_s20 = scalar_lea.vmem %s4461_s8, %s3319_s27  ;;  %815 = sbr.rel (%p3239_p9) target bundleno = 71 (0x47), region = 104 }
  0x35   : > { %s4465_s18 = sld [smem:[#allocation9_spill]] (!%p3239_p9) }
  0x36   : > { %s3929_s22 = scalar_lea.vmem %s4462_s10, %s3319_s27  ;;  %s4466_s8 = sld [smem:[#allocation12_spill]] (!%p3239_p9) }
  0x37   : > { %4463 = sst [smem:[#allocation7_spill]] %s3929_s22  ;;  %s3322_s22 = sshll.u32 %s3900_s15, 6 }
  0x38   : > { %s3956_s1 = scalar_lea.vmem %s4432_s16, %s3322_s22  ;;  %s4467_s0 = sld [smem:[#allocation10_spill]] (!%p3239_p9) }
  0x39   : > { %vm819_vm0 = vcmask 253952   ;;  %vm824_vm1 = vcmask 254976   ;;  %s4468_s10 = sld [smem:[#allocation11_spill]]  ;;  %vm829_vm2 = vcmask 258048  }
  0x3b   : > { %v816_v0 = vld [vmem:[%s4465_s18] sm:$0x1]  ;;  %v3240_v8 = vld [vmem:[%s4465_s18 + $0x1] sm:$0x1]  ;;  %v3242_v17 = vld [vmem:[%s4465_s18 + $0x2] sm:$0x1] }
  0x3c   : > { %v817_v1 = vld [vmem:[%s4466_s8] sm:$0x1]  ;;  %v822_v4 = vld [vmem:[%s4466_s8 + $0x1] sm:$0x3]  ;;  %v827_v7 = vld [vmem:[%s4466_s8 + $0x3] sm:$0x1f] }
  0x3d   : > { %v818_v2 = vadd.f32 %v817_v1, %v816_v0  ;;  %v833_v10 = vld [vmem:[%s4466_s8] sm:$0x1]  ;;  %v838_v12 = vld [vmem:[%s4466_s8 + $0x1] sm:$0x3]  ;;  %v843_v16 = vld [vmem:[%s4466_s8 + $0x3] sm:$0x1f] }
  0x3e   : > { %v821_v3 = vld [vmem:[%s4467_s0] sm:$0x3]  ;;  %v834_v13 = vadd.f32 %v3240_v8, %v833_v10  ;;  %v858_v25 = vld [vmem:[%s4466_s8 + $0x3] sm:$0x1f] }
  0x3f   : > { %v826_v5 = vld [vmem:[%s4468_s10] sm:$0x1f]  ;;  %v823_v6 = vadd.f32 %v822_v4, %v821_v3  ;;  %820 = vst.msk [vmem:[#allocation2] sm:$0x1] %vm819_vm0, %v818_v2  ;;  %v3241_v15 = vld [vmem:[%s4468_s10 + $0x8] sm:$0x1f] }
  0x40   : > { %v828_v9 = vadd.f32 %v827_v7, %v826_v5  ;;  %v837_v11 = vld [vmem:[%s4467_s0] sm:$0x3]  ;;  %v844_v18 = vadd.f32 %v3241_v15, %v843_v16  ;;  %836 = vst.msk [vmem:[#allocation2 + $0x8] sm:$0x1] %vm819_vm0, %v834_v13  ;;  %v3243_v24 = vld [vmem:[%s4468_s10 + $0x10] sm:$0x1f] }
  0x41   : > { %825 = vst.msk [vmem:[#allocation2 + $0x1] sm:$0x3] %vm824_vm1, %v823_v6  ;;  %v839_v14 = vadd.f32 %v838_v12, %v837_v11  ;;  %v848_v19 = vld [vmem:[%s4466_s8] sm:$0x1]  ;;  %v853_v21 = vld [vmem:[%s4466_s8 + $0x1] sm:$0x3]  ;;  %v859_v26 = vadd.f32 %v3243_v24, %v858_v25 }
  0x42   : > { %830 = vst.msk [vmem:[#allocation2 + $0x3] sm:$0x1f] %vm829_vm2, %v828_v9  ;;  %v852_v20 = vld [vmem:[%s4467_s0] sm:$0x3]  ;;  %v849_v22 = vadd.f32 %v3242_v17, %v848_v19  ;;  %845 = vst.msk [vmem:[#allocation2 + $0xb] sm:$0x1f] %vm829_vm2, %v844_v18 }
  0x43   : > { %840 = vst.msk [vmem:[#allocation2 + $0x9] sm:$0x3] %vm824_vm1, %v839_v14  ;;  %v854_v23 = vadd.f32 %v853_v21, %v852_v20 }
  0x44   : > { %851 = vst.msk [vmem:[#allocation2 + $0x10] sm:$0x1] %vm819_vm0, %v849_v22 }
  0x45   : > { %855 = vst.msk [vmem:[#allocation2 + $0x11] sm:$0x3] %vm824_vm1, %v854_v23 }
  0x46   : > { %860 = vst.msk [vmem:[#allocation2 + $0x13] sm:$0x1f] %vm829_vm2, %v859_v26 }
  0x47 PF: > { %p861_p10 = scmp.ge.s32.totalorder %s3894_s29, 1  ;;  %p862_p11 = scmp.lt.s32.totalorder %s3894_s29, 2 }
  0x49   : > { %p863_p12 = pnand %p862_p11, %p861_p10 }
  0x4b   : > { %866 = sbr.rel (%p863_p12) target bundleno = 84 (0x54), region = 108 }
  0x50   : > { %v867_v27 = vld [vmem:[%s3910_s24] sm:$0x3]  ;;  %vm868_vm3 = vcmask 254976  }
  0x51   : > { %v870_v28 = vld [vmem:[%s3910_s24] sm:$0x3]  ;;  %869 = vst.msk [vmem:[#allocation2 + $0x1] sm:$0x3] %vm868_vm3, %v867_v27 }
  0x52   : > { %872 = vst.msk [vmem:[#allocation2 + $0x9] sm:$0x3] %vm868_vm3, %v870_v28  ;;  %v873_v29 = vld [vmem:[%s3910_s24] sm:$0x3] }
  0x53   : > { %875 = vst.msk [vmem:[#allocation2 + $0x11] sm:$0x3] %vm868_vm3, %v873_v29 }
  0x54 PF: > { %vm889_vm4 = vcmask 261120   ;;  %v3644_v51 = vld [vmem:[%s3924_s20 + $0x8] sm:$0xff]   ;;  %v3645_v52 = vld [vmem:[%s3924_s20] sm:$0xff]   ;;  %s4469_s23 = scalar_lea.vmem %s4422_s6, %s3900_s15  ;;  %s4470_s25 = scalar_lea.vmem %s4423_s7, %s3900_s15  ;;  %v3760_v14 = vmov 0.0   ;;  %vm3761_vm5 = vmmov 0   ;;  %vm1033_vm6 = vcmask 64512  }
  0x55   : > { %3404 = vmatprep.subr.bf16.mxu1 %v3644_v51  ;;  %v3244_v0 = vld [vmem:[%s4469_s23] ss:$0 sm:$0xff]  ;;  %3430 = vmatprep.subr.bf16.mxu0 %v3760_v14  ;;  %s4471_s19 = scalar_lea.vmem %s4425_s9, %s3900_s15  ;;  %s3762_s4 = smov 96   ;;  %vm1225_vm10 = vcmask 1043456  }
  0x56   : > { %3405 = vmatpush3.bf16.msra.mxu1 %v3644_v51  ;;  %v3245_v6 = vld [vmem:[%s4470_s25] ss:$0 sm:$0xff]  ;;  %3432 = vmatprep.mubr.msk.bf16.mxu0 %vm3761_vm5, %v3760_v14  ;;  %s3763_s22 = smov 64   ;;  %s3764_s30 = smov 88  }
  0x57   : > { %3406 = vmatprep.subr.bf16.mxu1 %v3645_v52  ;;  %v3246_v16 = vld [vmem:[%s4471_s19] ss:$0 sm:$0xff]  ;;  %s3765_s20 = smov 120   ;;  %s3766_s24 = smov 56  }
  0x58   : > { %v884_v30 = vld [vmem:[#allocation2] sm:$0xff]  ;;  %s3767_s23 = smov 80   ;;  %s3768_s28 = smov 112  }
  0x59   : > { %v885_v32 = vld [vmem:[#allocation2 + $0x8] sm:$0xff]  ;;  %v890_v33 = vsel %vm889_vm4, %v884_v30, 0.0  ;;  %s4472_s2 = sld [smem:[#allocation7_spill]]  ;;  %s3769_s25 = smov 48  }
  0x5a   : > { %v886_v31 = vld [vmem:[#allocation2 + $0x10] sm:$0xff]  ;;  %v893_v35 = vsel %vm889_vm4, %v885_v32, 0.0  ;;  %891 = vadd.xlane.f32.xlu0 %v890_v33  ;;  %3407 = vmatpush3.bf16.msra.mxu1 %v3645_v52  ;;  %s3770_s3 = smov 72   ;;  %s3771_s27 = smov 104  }
  0x5b   : > { %v896_v34 = vsel %vm889_vm4, %v886_v31, 0.0  ;;  %3412 = vmatprep.subr.bf16.mxu1 %v3760_v14  ;;  %s3772_s19 = smov 40   ;;  %p3306_p13 = scmp.ne.s32.totalorder %s3894_s29, 1 }
  0x5c   : > { %897 = vadd.xlane.f32.xlu1 %v896_v34 }
  0x5e   : > { %894 = vadd.xlane.f32.xlu0 %v893_v35 }
  0xe3   : > { %v892_v36 = vpop.xlane.xlu0 %891 }
  0xe4   : > { %v900_v38 = vmul.f32 0.03125, %v892_v36 }
  0xe5   : > { %v898_v37 = vpop.xlane.xlu1 %897 }
  0xe6   : > { %v902_v39 = vmul.f32 0.03125, %v898_v37  ;;  %v903_v40 = vsub.f32 %v884_v30, %v900_v38 }
  0xe7   : > { %v895_v42 = vpop.xlane.xlu0 %894 }
  0xe8   : > { %v905_v41 = vsub.f32 %v886_v31, %v902_v39  ;;  %v901_v43 = vmul.f32 0.03125, %v895_v42  ;;  %v906_v44 = vmul.f32 %v903_v40, %v903_v40 }
  0xea   : > { %v908_v45 = vmul.f32 %v905_v41, %v905_v41  ;;  %v904_v46 = vsub.f32 %v885_v32, %v901_v43  ;;  %v909_v47 = vsel %vm889_vm4, %v906_v44, 0.0  ;;  %v876_v32 = vlaneseq }
  0xeb   : > { %910 = vadd.xlane.f32.xlu1 %v909_v47 }
  0xec   : > { %v915_v48 = vsel %vm889_vm4, %v908_v45, 0.0  ;;  %v907_v49 = vmul.f32 %v904_v46, %v904_v46  ;;  %v4089_v33 = vshrl.u32 %v876_v32, 7  ;;  %v879_v34 = vand.u32 127, %v876_v32 }
  0xee   : > { %v912_v50 = vsel %vm889_vm4, %v907_v49, 0.0  ;;  %vm880_vm7 = vcmp.gt.s32.totalorder %v879_v34, %v4089_v33  ;;  %vm881_vm8 = vcmp.ge.s32.totalorder %v879_v34, 8 }
  0xef   : > { %916 = vadd.xlane.f32.xlu1 %v915_v48  ;;  %913 = vadd.xlane.f32.xlu0 %v912_v50  ;;  %vm882_vm9 = vmor %vm880_vm7, %vm881_vm8 }
  0xf0   : > { %v4093_v36 = vsel %vm882_vm9, -1e+09, %v3760_v14 }
 0x174   : > { %v911_v53 = vpop.xlane.xlu1 %910 }
 0x175   : > { %v918_v54 = vmul.f32 0.03125, %v911_v53 }
 0x177   : > { %v921_v55 = vadd.f32 1e-05, %v918_v54 }
 0x178   : > { %v917_v56 = vpop.xlane.xlu1 %916  ;;  %v914_v57 = vpop.xlane.xlu0 %913 }
 0x179   : > { %3656 = vrsqrt.f32 %v921_v55  ;;  %v920_v58 = vmul.f32 0.03125, %v917_v56  ;;  %v919_v59 = vmul.f32 0.03125, %v914_v57 }
 0x17b   : > { %v923_v60 = vadd.f32 1e-05, %v920_v58  ;;  %v922_v61 = vadd.f32 1e-05, %v919_v59 }
 0x17d   : > { %3658 = vrsqrt.f32 %v923_v60 }
 0x17e   : > { %3660 = vrsqrt.f32 %v922_v61 }
 0x186   : > { %v3657_v62 = vpop.eup %3656 }
 0x187   : > { %v927_v63 = vmul.f32 %v3657_v62, %v903_v40 }
 0x189   : > { %v936_v5 = vmul.f32 %v3244_v0, %v927_v63 }
 0x18a   : > { %v3659_v1 = vpop.eup %3658 }
 0x18b   : > { %v3661_v2 = vpop.eup %3660  ;;  %v929_v3 = vmul.f32 %v3659_v1, %v905_v41  ;;  %v945_v10 = vadd.f32 %v3245_v6, %v936_v5 }
 0x18c   : > { %v928_v4 = vmul.f32 %v3661_v2, %v904_v46 }
 0x18d   : > { %v938_v7 = vmul.f32 %v3244_v0, %v929_v3 }
 0x18e   : > { %v937_v8 = vmul.f32 %v3244_v0, %v928_v4 }
 0x18f   : > { %v947_v9 = vadd.f32 %v3245_v6, %v938_v7 }
 0x190   : > { %v946_v11 = vadd.f32 %v3245_v6, %v937_v8 }
 0x191   : > { %v949_v12 = vpack.c.bf16 %v947_v9, %v947_v9 }
 0x192   : > { %v948_v13 = vpack.c.bf16 %v946_v11, %v945_v10 }
 0x194   : > { %3408 = vmatprep.mubr.msk.bf16.mxu1 %vm889_vm4, %v948_v13 }
 0x195   : > { %3409 = vmatmul.mubr.msk.bf16.vlgmr.msra.gmra.mxu1 %vm889_vm4, %v949_v12 }
 0x196   : > { %3414 = vmatprep.mubr.msk.bf16.mxu1 %vm3761_vm5, %v3760_v14 }
 0x255   : > { %v3410_v15 = vpop.f32.mrf.mxu1 }
 0x256   : > { %v1022_v23 = vadd.f32 %v3410_v15, %v3246_v16 }
 0x257   : > { %v1013_v17 = vpop.f32.mrf.mxu1 }
 0x258   : > { %v1014_v18 = vadd.f32 %v3246_v16, %v1013_v17  ;;  %v4068_v25 = vpack.c.bf16 %v1022_v23, %v1022_v23 }
 0x259   : > { %v3411_v19 = vpop.f32.mrf.mxu1 }
 0x25a   : > { %v4062_v20 = vpack.c.bf16 %v1014_v18, %v1014_v18 }
 0x25b   : > { %v1016_v21 = vpop.f32.mrf.mxu1 }
 0x25c   : > { %v1017_v22 = vadd.f32 %v3246_v16, %v1016_v21  ;;  %1031 = vrot.lane.b32.xlu0 %v4062_v20, %s3762_s4 }
 0x25e   : > { %v4065_v24 = vpack.c.bf16 %v1017_v22, %v1017_v22 }
 0x260   : > { %1081 = vrot.lane.b32.xlu1 %v4065_v24, %s3762_s4 }
 0x264   : > { %1130 = vrot.lane.b32.xlu1 %v4068_v25, %s3762_s4 }
 0x2ce   : > { %v1032_v26 = vpop.permute.xlu0 %1031 }
 0x2cf   : > { %v1038_v27 = vsel %vm1033_vm6, %v1032_v26, 0 }
 0x2d0   : > { %3413 = vmatpush3.bf16.xpose.msra.mxu1 %v1038_v27 }
 0x2d1   : > { %3418 = vmatprep.subr.bf16.mxu1 %v3760_v14 }
 0x2d2   : > { %v1082_v28 = vpop.permute.xlu1 %1081 }
 0x2d3   : > { %v1087_v29 = vsel %vm1033_vm6, %v1082_v28, 0 }
 0x2d6   : > { %v1131_v30 = vpop.permute.xlu1 %1130 }
 0x2d7   : > { %3415 = vmatmul.mubr.msk.bf16.vlgmr.msra.gmra.mxu1 %vm1033_vm6, %v4062_v20  ;;  %v1136_v31 = vsel %vm1033_vm6, %v1131_v30, 0 }
 0x2d8   : > { %3419 = vmatpush3.bf16.xpose.msra.mxu1 %v1087_v29  ;;  %3420 = vmatprep.mubr.msk.bf16.mxu1 %vm3761_vm5, %v3760_v14 }
 0x2d9   : > { %3424 = vmatprep.subr.bf16.mxu1 %v3760_v14 }
 0x2df   : > { %3421 = vmatmul.mubr.msk.bf16.vlgmr.msra.gmra.mxu1 %vm1033_vm6, %v4065_v24 }
 0x2e0   : > { %3425 = vmatpush3.bf16.xpose.msra.mxu1 %v1136_v31  ;;  %3426 = vmatprep.mubr.msk.bf16.mxu1 %vm3761_vm5, %v3760_v14 }
 0x2e1   : > { %3436 = vmatprep.subr.bf16.mxu1 %v3760_v14 }
 0x2e7   : > { %3427 = vmatmul.mubr.msk.bf16.vlgmr.msra.gmra.mxu1 %vm1033_vm6, %v4068_v25 }
 0x2e8   : > { %3438 = vmatprep.mubr.msk.bf16.mxu1 %vm3761_vm5, %v3760_v14 }
 0x397   : > { %v1074_v35 = vpop.f32.mrf.mxu1 }
 0x398   : > { %v1178_v37 = vmul.f32 0.35355338, %v1074_v35 }
 0x399   : > { %v3416_v38 = vpop.f32.mrf.mxu1 }
 0x39a   : > { %v1181_v39 = vadd.f32 %v1178_v37, %v4093_v36 }
 0x39b   : > { %v1077_v40 = vpop.f32.mrf.mxu1 }
 0x39c   : > { %v1184_v41 = vsel %vm1033_vm6, %v1181_v39, -inf }
 0x39d   : > { %v3417_v42 = vpop.f32.mrf.mxu1  ;;  %1185 = vmax.xlane.f32.xlu1 %v1184_v41 }
 0x39f   : > { %v1123_v43 = vpop.f32.mrf.mxu1 }
 0x3a0   : > { %v1179_v44 = vmul.f32 0.35355338, %v1123_v43 }
 0x3a1   : > { %v3422_v45 = vpop.f32.mrf.mxu1 }
 0x3a2   : > { %v1182_v46 = vadd.f32 %v1179_v44, %v4093_v36 }
 0x3a3   : > { %v1126_v47 = vpop.f32.mrf.mxu1 }
 0x3a4   : > { %v1187_v48 = vsel %vm1033_vm6, %v1182_v46, -inf }
 0x3a5   : > { %v3423_v49 = vpop.f32.mrf.mxu1  ;;  %1188 = vmax.xlane.f32.xlu0 %v1187_v48 }
 0x3a7   : > { %v1172_v50 = vpop.f32.mrf.mxu1 }
 0x3a8   : > { %v1180_v51 = vmul.f32 0.35355338, %v1172_v50 }
 0x3a9   : > { %v3428_v52 = vpop.f32.mrf.mxu1 }
 0x3aa   : > { %v1183_v53 = vadd.f32 %v1180_v51, %v4093_v36 }
 0x3ab   : > { %v1175_v54 = vpop.f32.mrf.mxu1 }
 0x3ac   : > { %v1190_v55 = vsel %vm1033_vm6, %v1183_v53, -inf }
 0x3ad   : > { %v3429_v56 = vpop.f32.mrf.mxu1  ;;  %1191 = vmax.xlane.f32.xlu0 %v1190_v55 }
 0x3ae   : > { %1220 = vrot.lane.b32.xlu1 %v4062_v20, %s3763_s22 }
 0x3b2   : > { %1370 = vrot.lane.b32.xlu1 %v4062_v20, %s3764_s30 }
 0x3b6   : > { %1317 = vrot.lane.b32.xlu1 %v4068_v25, %s3763_s22 }
 0x426   : > { %v1186_v57 = vpop.xlane.xlu1 %1185 }
 0x427   : > { %v1193_v58 = vsub.f32 %v1181_v39, %v1186_v57 }
 0x429   : > { %v1196_v59 = vmul.f32 1.442695, %v1193_v58 }
 0x42a   : > { %v1221_v60 = vpop.permute.xlu1 %1220 }
 0x42b   : > { %3662 = vpow2.f32 %v1196_v59  ;;  %v1227_v61 = vsel %vm1225_vm10, %v1221_v60, 0 }
 0x42c   : > { %3431 = vmatpush3.bf16.msra.mxu0 %v1227_v61 }
 0x42d   : > { %3442 = vmatprep.subr.bf16.mxu0 %v3760_v14 }
 0x42e   : > { %v1189_v62 = vpop.xlane.xlu0 %1188  ;;  %v1371_v10 = vpop.permute.xlu1 %1370 }
 0x42f   : > { %v1194_v63 = vsub.f32 %v1182_v46, %v1189_v62  ;;  %v1376_v27 = vsel %vm1033_vm6, %v1371_v10, 0 }
 0x431   : > { %v1198_v0 = vmul.f32 1.442695, %v1194_v63 }
 0x432   : > { %v1318_v12 = vpop.permute.xlu1 %1317 }
 0x433   : > { %3664 = vpow2.f32 %v1198_v0  ;;  %v1323_v21 = vsel %vm1225_vm10, %v1318_v12, 0 }
 0x436   : > { %v1192_v5 = vpop.xlane.xlu0 %1191 }
 0x437   : > { %v1195_v6 = vsub.f32 %v1183_v53, %v1192_v5 }
 0x438   : > { %v3663_v1 = vpop.eup %3662 }
 0x439   : > { %v1202_v2 = vsel %vm1033_vm6, %v3663_v1, 0.0  ;;  %v1200_v7 = vmul.f32 1.442695, %v1195_v6 }
 0x43a   : > { %1203 = vadd.xlane.f32.xlu0 %v1202_v2 }
 0x43b   : > { %3666 = vpow2.f32 %v1200_v7 }
 0x440   : > { %v3665_v3 = vpop.eup %3664 }
 0x441   : > { %v1205_v4 = vsel %vm1033_vm6, %v3665_v3, 0.0 }
 0x442   : > { %1206 = vadd.xlane.f32.xlu1 %v1205_v4 }
 0x448   : > { %v3667_v8 = vpop.eup %3666 }
 0x449   : > { %v1208_v9 = vsel %vm1033_vm6, %v3667_v8, 0.0 }
 0x450   : > { %1269 = vrot.lane.b32.xlu0 %v4065_v24, %s3763_s22  ;;  %s4477_s22 = sld [smem:[#allocation19_spill]] (!%p3306_p13) }
 0x453   : > { %1420 = vrot.lane.b32.xlu1 %v4065_v24, %s3764_s30 }
 0x457   : > { %1470 = vrot.lane.b32.xlu1 %v4068_v25, %s3764_s30  ;;  %s4473_s30 = scalar_lea.vmem %s4427_s11, %s3900_s15 }
 0x45b   : > { %1468 = vrot.lane.b32.xlu1 %v4068_v25, %s3765_s20 }
 0x46f   : > { %1209 = vadd.xlane.f32.xlu0 %v1208_v9 }
 0x485   : > { %1368 = vrot.lane.b32.xlu0 %v4062_v20, %s3765_s20 }
 0x489   : > { %1418 = vrot.lane.b32.xlu0 %v4065_v24, %s3765_s20 }
 0x4c3   : > { %v1204_v11 = vpop.xlane.xlu0 %1203 }
 0x4c4   : > { %3668 = vrcp.f32 %v1204_v11 }
 0x4c7   : > { %v1270_v13 = vpop.permute.xlu0 %1269 }
 0x4c8   : > { %v1275_v15 = vsel %vm1225_vm10, %v1270_v13, 0 }
 0x4c9   : > { %3437 = vmatpush3.bf16.msra.mxu1 %v1275_v15 }
 0x4ca   : > { %3448 = vmatprep.subr.bf16.mxu1 %v3760_v14 }
 0x4cb   : > { %v1207_v16 = vpop.xlane.xlu1 %1206 }
 0x4cc   : > { %3670 = vrcp.f32 %v1207_v16 }
 0x4cf   : > { %v1421_v28 = vpop.permute.xlu1 %1420 }
 0x4d0   : > { %v1426_v39 = vsel %vm1033_vm6, %v1421_v28, 0 }
 0x4d1   : > { %v3669_v17 = vpop.eup %3668 }
 0x4d2   : > { %v1214_v18 = vmul.f32 %v3669_v17, %v3663_v1 }
 0x4d3   : > { %v1471_v30 = vpop.permute.xlu1 %1470 }
 0x4d4   : > { %v1217_v19 = vpack.c.bf16 %v1214_v18, %v1214_v18  ;;  %v1476_v32 = vsel %vm1033_vm6, %v1471_v30, 0 }
 0x4d6   : > { %3433 = vmatmul.mubr.msk.bf16.vlgmr.msra.gmra.mxu0 %vm1033_vm6, %v1217_v19 }
 0x4d7   : > { %3443 = vmatpush3.bf16.msra.mxu0 %v1323_v21  ;;  %3444 = vmatprep.mubr.msk.bf16.mxu0 %vm3761_vm5, %v3760_v14  ;;  %v1469_v34 = vpop.permute.xlu1 %1468 }
 0x4d8   : > { %3454 = vmatprep.subr.bf16.mxu0 %v3760_v14 }
 0x4d9   : > { %v3671_v22 = vpop.eup %3670 }
 0x4da   : > { %v1215_v23 = vmul.f32 %v3671_v22, %v3665_v3 }
 0x4dc   : > { %v1218_v26 = vpack.c.bf16 %v1215_v23, %v1215_v23 }
 0x4de   : > { %3439 = vmatmul.mubr.msk.bf16.vlgmr.msra.gmra.mxu1 %vm1033_vm6, %v1218_v26 }
 0x4df   : > { %3449 = vmatpush3.bf16.xpose.msra.mxu1 %v1376_v27  ;;  %3450 = vmatprep.mubr.msk.bf16.mxu1 %vm3761_vm5, %v3760_v14 }
 0x4e0   : > { %3460 = vmatprep.subr.bf16.mxu1 %v3760_v14 }
 0x4f8   : > { %v1210_v29 = vpop.xlane.xlu0 %1209 }
 0x4f9   : > { %3672 = vrcp.f32 %v1210_v29 }
 0x4fc   : > { %v1369_v31 = vpop.permute.xlu0 %1368 }
 0x4fd   : > { %3451 = vmatmul.mubr.msk.bf16.vlgmr.msra.gmra.mxu1 %vm1033_vm6, %v1369_v31 }
 0x4fe   : > { %3461 = vmatpush3.bf16.xpose.msra.mxu1 %v1476_v32  ;;  %3462 = vmatprep.mubr.msk.bf16.mxu1 %vm3761_vm5, %v3760_v14 }
 0x4ff   : > { %3472 = vmatprep.subr.bf16.mxu1 %v3760_v14 }
 0x500   : > { %v1419_v40 = vpop.permute.xlu0 %1418 }
 0x505   : > { %3463 = vmatmul.mubr.msk.bf16.vlgmr.msra.gmra.mxu1 %vm1033_vm6, %v1469_v34 }
 0x506   : > { %v3673_v35 = vpop.eup %3672  ;;  %3474 = vmatprep.mubr.msk.bf16.mxu1 %vm3761_vm5, %v3760_v14 }
 0x507   : > { %v1216_v37 = vmul.f32 %v3673_v35, %v3667_v8 }
 0x509   : > { %v1219_v38 = vpack.c.bf16 %v1216_v37, %v1216_v37 }
 0x50b   : > { %3445 = vmatmul.mubr.msk.bf16.vlgmr.msra.gmra.mxu0 %vm1033_vm6, %v1219_v38 }
 0x50c   : > { %3455 = vmatpush3.bf16.xpose.msra.mxu0 %v1426_v39  ;;  %3456 = vmatprep.mubr.msk.bf16.mxu0 %vm3761_vm5, %v3760_v14 }
 0x50d   : > { %3466 = vmatprep.subr.bf16.mxu0 %v3760_v14 }
 0x513   : > { %3457 = vmatmul.mubr.msk.bf16.vlgmr.msra.gmra.mxu0 %vm1033_vm6, %v1419_v40 }
 0x514   : > { %3468 = vmatprep.mubr.msk.bf16.mxu0 %vm3761_vm5, %v3760_v14 }
 0x596   : > { %v4143_v41 = vpop.f32.mrf.mxu0 }
 0x598   : > { %v3434_v42 = vpop.f32.mrf.mxu0 }
 0x59a   : > { %v1266_v43 = vpop.f32.mrf.mxu0 }
 0x59c   : > { %v3435_v44 = vpop.f32.mrf.mxu0 }
 0x59e   : > { %v4145_v45 = vpop.f32.mrf.mxu1 }
 0x59f   : > { %v1365_v46 = vpack.c.bf16 %v4145_v45, %v4143_v41  ;;  %v3263_v45 = vld [vmem:[%s4472_s2 + $0x4] sm:$0xf] }
 0x5a0   : > { %v3440_v47 = vpop.f32.mrf.mxu1 }
 0x5a1   : > { %v1367_v47 = vld [vmem:[%s4472_s2] sm:$0xf] }
 0x5a2   : > { %v1314_v48 = vpop.f32.mrf.mxu1 }
 0x5a4   : > { %v3441_v49 = vpop.f32.mrf.mxu1 }
 0x5bd   : > { %v1412_v50 = vpop.f32.mrf.mxu1 }
 0x5be   : > { %v1518_v51 = vmul.f32 0.35355338, %v1412_v50 }
 0x5bf   : > { %v3452_v52 = vpop.f32.mrf.mxu1 }
 0x5c0   : > { %v1521_v53 = vadd.f32 %v1518_v51, %v4093_v36 }
 0x5c1   : > { %v1415_v54 = vpop.f32.mrf.mxu1 }
 0x5c2   : > { %v1524_v55 = vsel %vm1033_vm6, %v1521_v53, -inf }
 0x5c3   : > { %1525 = vmax.xlane.f32.xlu0 %v1524_v55  ;;  %v3453_v56 = vpop.f32.mrf.mxu1 }
 0x5c5   : > { %v1512_v57 = vpop.f32.mrf.mxu1 }
 0x5c6   : > { %v1520_v58 = vmul.f32 0.35355338, %v1512_v57 }
 0x5c7   : > { %v3464_v59 = vpop.f32.mrf.mxu1 }
 0x5c8   : > { %v1523_v60 = vadd.f32 %v1520_v58, %v4093_v36 }
 0x5c9   : > { %v1515_v61 = vpop.f32.mrf.mxu1 }
 0x5ca   : > { %v1530_v62 = vsel %vm1033_vm6, %v1523_v60, -inf }
 0x5cb   : > { %v4153_v63 = vpop.f32.mrf.mxu0  ;;  %1531 = vmax.xlane.f32.xlu0 %v1530_v62  ;;  %v3465_v0 = vpop.f32.mrf.mxu1 }
 0x5cc   : > { %v1366_v57 = vpack.c.bf16 %v4153_v63, %v4153_v63 }
 0x5cd   : > { %v3446_v1 = vpop.f32.mrf.mxu0 }
 0x5cf   : > { %v1362_v2 = vpop.f32.mrf.mxu0 }
 0x5d1   : > { %v3447_v3 = vpop.f32.mrf.mxu0 }
 0x5d3   : > { %v1462_v4 = vpop.f32.mrf.mxu0 }
 0x5d4   : > { %v1519_v5 = vmul.f32 0.35355338, %v1462_v4 }
 0x5d5   : > { %v3458_v6 = vpop.f32.mrf.mxu0 }
 0x5d6   : > { %v1522_v7 = vadd.f32 %v1519_v5, %v4093_v36 }
 0x5d7   : > { %v1465_v8 = vpop.f32.mrf.mxu0 }
 0x5d8   : > { %v1527_v9 = vsel %vm1033_vm6, %v1522_v7, -inf }
 0x5d9   : > { %1528 = vmax.xlane.f32.xlu1 %v1527_v9  ;;  %v3459_v10 = vpop.f32.mrf.mxu0 }
 0x5ea   : > { %1608 = vrot.lane.b32.xlu1 %v4065_v24, %s3766_s24 }
 0x64c   : > { %v1526_v11 = vpop.xlane.xlu0 %1525 }
 0x64d   : > { %v1533_v12 = vsub.f32 %v1521_v53, %v1526_v11  ;;  %v1772_v53 = vsel %vm1225_vm10, %v1367_v47, 0 }
 0x64f   : > { %v1536_v13 = vmul.f32 1.442695, %v1533_v12 }
 0x651   : > { %3674 = vpow2.f32 %v1536_v13 }
 0x654   : > { %v1532_v15 = vpop.xlane.xlu0 %1531 }
 0x655   : > { %v1535_v16 = vsub.f32 %v1523_v60, %v1532_v15 }
 0x657   : > { %v1540_v17 = vmul.f32 1.442695, %v1535_v16 }
 0x659   : > { %3676 = vpow2.f32 %v1540_v17 }
 0x65e   : > { %v3675_v18 = vpop.eup %3674 }
 0x65f   : > { %v1542_v19 = vsel %vm1033_vm6, %v3675_v18, 0.0 }
 0x660   : > { %1543 = vadd.xlane.f32.xlu0 %v1542_v19 }
 0x662   : > { %v1529_v21 = vpop.xlane.xlu1 %1528 }
 0x663   : > { %v1534_v22 = vsub.f32 %v1522_v7, %v1529_v21 }
 0x665   : > { %v1538_v23 = vmul.f32 1.442695, %v1534_v22 }
 0x666   : > { %v3677_v26 = vpop.eup %3676  ;;  %v1609_v27 = vpop.permute.xlu1 %1608 }
 0x667   : > { %3678 = vpow2.f32 %v1538_v23  ;;  %v1614_v28 = vsel %vm1225_vm10, %v1609_v27, 0  ;;  %v1548_v29 = vsel %vm1033_vm6, %v3677_v26, 0.0 }
 0x668   : > { %1549 = vadd.xlane.f32.xlu1 %v1548_v29  ;;  %3473 = vmatpush3.bf16.msra.mxu1 %v1614_v28 }
 0x669   : > { %3616 = vmatprep.subr.msk.bf16.mxu1 %vm1225_vm10, %v3263_v45 }
 0x674   : > { %v3679_v30 = vpop.eup %3678 }
 0x675   : > { %v1545_v31 = vsel %vm1033_vm6, %v3679_v30, 0.0 }
 0x676   : > { %1546 = vadd.xlane.f32.xlu0 %v1545_v31 }
 0x679   : > { %1656 = vrot.lane.b32.xlu1 %v4068_v25, %s3766_s24 }
 0x67d   : > { %1824 = vrot.lane.b32.xlu1 %v4062_v20, %s3767_s23 }
 0x681   : > { %1822 = vrot.lane.b32.xlu1 %v4062_v20, %s3768_s28 }
 0x685   : > { %1872 = vrot.lane.b32.xlu1 %v4065_v24, %s3768_s28 }
 0x68c   : > { %1560 = vrot.lane.b32.xlu0 %v4062_v20, %s3766_s24 }
 0x690   : > { %1874 = vrot.lane.b32.xlu0 %v4065_v24, %s3767_s23 }
 0x694   : > { %1924 = vrot.lane.b32.xlu0 %v4068_v25, %s3767_s23  ;;  %s4478_s23 = sld [smem:[#allocation17_spill]] (!%p3306_p13) }
 0x698   : > { %1922 = vrot.lane.b32.xlu0 %v4068_v25, %s3768_s28  ;;  %s4474_s28 = sld [smem:[#allocation16_spill]] }
 0x6e9   : > { %v1544_v32 = vpop.xlane.xlu0 %1543 }
 0x6ea   : > { %3680 = vrcp.f32 %v1544_v32 }
 0x6f1   : > { %v1550_v34 = vpop.xlane.xlu1 %1549 }
 0x6f2   : > { %3682 = vrcp.f32 %v1550_v34 }
 0x6f5   : > { %v1657_v42 = vpop.permute.xlu1 %1656 }
 0x6f6   : > { %v1662_v48 = vsel %vm1225_vm10, %v1657_v42, 0 }
 0x6f7   : > { %v3681_v35 = vpop.eup %3680 }
 0x6f8   : > { %v1554_v38 = vmul.f32 %v3681_v35, %v3675_v18 }
 0x6f9   : > { %v1825_v55 = vpop.permute.xlu1 %1824 }
 0x6fa   : > { %v1557_v43 = vpack.c.bf16 %v1554_v38, %v1554_v38  ;;  %v1830_v7 = vsel %vm1033_vm6, %v1825_v55, 0 }
 0x6fd   : > { %v1823_v59 = vpop.permute.xlu1 %1822 }
 0x6ff   : > { %v1547_v37 = vpop.xlane.xlu0 %1546  ;;  %v3683_v44 = vpop.eup %3682 }
 0x700   : > { %3684 = vrcp.f32 %v1547_v37  ;;  %v1556_v49 = vmul.f32 %v3683_v44, %v3677_v26 }
 0x701   : > { %v1873_v41 = vpop.permute.xlu1 %1872 }
 0x702   : > { %v1559_v51 = vpack.c.bf16 %v1556_v49, %v1556_v49 }
 0x703   : > { %v1561_v39 = vpop.permute.xlu0 %1560 }
 0x704   : > { %v1566_v40 = vsel %vm1225_vm10, %v1561_v39, 0 }
 0x705   : > { %3467 = vmatpush3.bf16.msra.mxu0 %v1566_v40 }
 0x706   : > { %3478 = vmatprep.subr.bf16.mxu0 %v3760_v14 }
 0x707   : > { %v1875_v56 = vpop.permute.xlu0 %1874 }
 0x708   : > { %3469 = vmatmul.mubr.msk.bf16.vlgmr.msra.gmra.mxu0 %vm1033_vm6, %v1557_v43  ;;  %v1880_v58 = vsel %vm1033_vm6, %v1875_v56, 0 }
 0x709   : > { %3479 = vmatpush3.bf16.msra.mxu0 %v1662_v48  ;;  %3480 = vmatprep.mubr.msk.bf16.mxu0 %vm3761_vm5, %v3760_v14 }
 0x70a   : > { %3617 = vmatprep.subr.msk.bf16.mxu0 %vm1225_vm10, %v1367_v47 }
 0x70b   : > { %v1925_v13 = vpop.permute.xlu0 %1924 }
 0x70c   : > { %v1930_v16 = vsel %vm1033_vm6, %v1925_v13, 0 }
 0x70d   : > { %v3685_v50 = vpop.eup %3684 }
 0x70e   : > { %v1555_v52 = vmul.f32 %v3685_v50, %v3679_v30 }
 0x70f   : > { %v1923_v26 = vpop.permute.xlu0 %1922 }
 0x710   : > { %3481 = vmatmul.mubr.msk.bf16.vlgmr.msra.gmra.mxu0 %vm1033_vm6, %v1559_v51  ;;  %v1558_v54 = vpack.c.bf16 %v1555_v52, %v1555_v52 }
 0x711   : > { %3492 = vmatprep.mubr.msk.bf16.mxu0 %vm1033_vm6, %v1365_v46  ;;  %3491 = vmatpush3.bf16.msra.mxu0 %v1772_v53  ;;  %v1715_v46 = vsel %vm1225_vm10, %v3263_v45, 0 }
 0x712   : > { %3475 = vmatmul.mubr.msk.bf16.vlgmr.msra.gmra.mxu1 %vm1033_vm6, %v1558_v54  ;;  %3502 = vmatprep.subr.bf16.mxu0 %v3760_v14 }
 0x713   : > { %3485 = vmatpush3.bf16.msra.mxu1 %v1715_v46 }
 0x714   : > { %3496 = vmatprep.subr.bf16.mxu1 %v3760_v14 }
 0x718   : > { %3493 = vmatmul.mubr.msk.bf16.vlgmr.msra.gmra.mxu0 %vm1033_vm6, %v1366_v57 }
 0x719   : > { %3503 = vmatpush3.bf16.xpose.msra.mxu0 %v1880_v58  ;;  %3504 = vmatprep.mubr.msk.bf16.mxu0 %vm3761_vm5, %v3760_v14 }
 0x71a   : > { %3514 = vmatprep.subr.bf16.mxu0 %v3760_v14 }
 0x720   : > { %3505 = vmatmul.mubr.msk.bf16.vlgmr.msra.gmra.mxu0 %vm1033_vm6, %v1873_v41 }
 0x721   : > { %3516 = vmatprep.mubr.msk.bf16.mxu0 %vm3761_vm5, %v3760_v14 }
 0x7c8   : > { %v1602_v60 = vpop.f32.mrf.mxu0 }
 0x7ca   : > { %v3470_v61 = vpop.f32.mrf.mxu0 }
 0x7cc   : > { %v1605_v62 = vpop.f32.mrf.mxu0 }
 0x7ce   : > { %v3471_v63 = vpop.f32.mrf.mxu0 }
 0x7d0   : > { %v1698_v0 = vpop.f32.mrf.mxu0 }
 0x7d1   : > { %v1705_v4 = vpack.c.bf16 %v1698_v0, %v1698_v0 }
 0x7d2   : > { %v1650_v1 = vpop.f32.mrf.mxu1  ;;  %v3482_v2 = vpop.f32.mrf.mxu0 }
 0x7d3   : > { %v1704_v3 = vpack.c.bf16 %v1650_v1, %v1602_v60 }
 0x7d4   : > { %v3476_v5 = vpop.f32.mrf.mxu1  ;;  %v1701_v6 = vpop.f32.mrf.mxu0 }
 0x7d5   : > { %3486 = vmatprep.mubr.msk.bf16.mxu1 %vm1033_vm6, %v1704_v3 }
 0x7d6   : > { %v1653_v8 = vpop.f32.mrf.mxu1  ;;  %v3483_v9 = vpop.f32.mrf.mxu0  ;;  %3487 = vmatmul.mubr.msk.bf16.vlgmr.msra.gmra.mxu1 %vm1033_vm6, %v1705_v4 }
 0x7d7   : > { %3497 = vmatpush3.bf16.xpose.msra.mxu1 %v1830_v7  ;;  %3498 = vmatprep.mubr.msk.bf16.mxu1 %vm3761_vm5, %v3760_v14 }
 0x7d8   : > { %v3477_v10 = vpop.f32.mrf.mxu1  ;;  %v4208_v11 = vpop.f32.mrf.mxu0  ;;  %3508 = vmatprep.subr.bf16.mxu1 %v3760_v14 }
 0x7da   : > { %v4211_v12 = vpop.f32.mrf.mxu0 }
 0x7dc   : > { %v3495_v15 = vpop.f32.mrf.mxu0 }
 0x7de   : > { %v4214_v17 = vpop.f32.mrf.mxu0  ;;  %3499 = vmatmul.mubr.msk.bf16.vlgmr.msra.gmra.mxu1 %vm1033_vm6, %v1823_v59 }
 0x7df   : > { %3509 = vmatpush3.bf16.xpose.msra.mxu1 %v1930_v16  ;;  %3510 = vmatprep.mubr.msk.bf16.mxu1 %vm3761_vm5, %v3760_v14 }
 0x7e0   : > { %v1916_v18 = vpop.f32.mrf.mxu0  ;;  %3520 = vmatprep.subr.bf16.mxu1 %v3760_v14 }
 0x7e1   : > { %v1973_v19 = vmul.f32 0.35355338, %v1916_v18 }
 0x7e2   : > { %v3506_v21 = vpop.f32.mrf.mxu0 }
 0x7e3   : > { %v1976_v22 = vadd.f32 %v1973_v19, %v4093_v36 }
 0x7e4   : > { %v1919_v23 = vpop.f32.mrf.mxu0 }
 0x7e5   : > { %v1981_v27 = vsel %vm1033_vm6, %v1976_v22, -inf }
 0x7e6   : > { %3511 = vmatmul.mubr.msk.bf16.vlgmr.msra.gmra.mxu1 %vm1033_vm6, %v1923_v26  ;;  %1982 = vmax.xlane.f32.xlu0 %v1981_v27  ;;  %v3507_v28 = vpop.f32.mrf.mxu0 }
 0x7e7   : > { %3522 = vmatprep.mubr.msk.bf16.mxu1 %vm3761_vm5, %v3760_v14 }
 0x86f   : > { %v1983_v29 = vpop.xlane.xlu0 %1982 }
 0x870   : > { %v1988_v30 = vsub.f32 %v1976_v22, %v1983_v29 }
 0x872   : > { %v1992_v31 = vmul.f32 1.442695, %v1988_v30 }
 0x874   : > { %3686 = vpow2.f32 %v1992_v31 }
 0x881   : > { %v3687_v47 = vpop.eup %3686 }
 0x882   : > { %v1999_v51 = vsel %vm1033_vm6, %v3687_v47, 0.0 }
 0x896   : > { %v4225_v32 = vpop.f32.mrf.mxu1 }
 0x898   : > { %v4227_v34 = vpop.f32.mrf.mxu1 }
 0x89a   : > { %v3489_v35 = vpop.f32.mrf.mxu1 }
 0x89b   : > { %v3274_v35 = vld [vmem:[%s4472_s2 + $0x8] sm:$0xf] }
 0x89c   : > { %v4229_v37 = vpop.f32.mrf.mxu1 }
 0x89e   : > { %v1866_v38 = vpop.f32.mrf.mxu1 }
 0x89f   : > { %v1972_v39 = vmul.f32 0.35355338, %v1866_v38  ;;  %v2169_v38 = vsel %vm1225_vm10, %v3274_v35, 0 }
 0x8a0   : > { %v3500_v40 = vpop.f32.mrf.mxu1 }
 0x8a1   : > { %v1975_v42 = vadd.f32 %v1972_v39, %v4093_v36 }
 0x8a2   : > { %v1869_v43 = vpop.f32.mrf.mxu1 }
 0x8a3   : > { %v1978_v44 = vsel %vm1033_vm6, %v1975_v42, -inf }
 0x8a4   : > { %1979 = vmax.xlane.f32.xlu1 %v1978_v44  ;;  %v3501_v48 = vpop.f32.mrf.mxu1 }
 0x8a6   : > { %v1966_v49 = vpop.f32.mrf.mxu1 }
 0x8a7   : > { %v1974_v50 = vmul.f32 0.35355338, %v1966_v49 }
 0x8a8   : > { %v3512_v52 = vpop.f32.mrf.mxu1  ;;  %2000 = vadd.xlane.f32.xlu1 %v1999_v51 }
 0x8a9   : > { %v1977_v53 = vadd.f32 %v1974_v50, %v4093_v36 }
 0x8aa   : > { %v1969_v54 = vpop.f32.mrf.mxu1 }
 0x8ab   : > { %v1984_v55 = vsel %vm1033_vm6, %v1977_v53, -inf }
 0x8ac   : > { %v3513_v56 = vpop.f32.mrf.mxu1  ;;  %1985 = vmax.xlane.f32.xlu0 %v1984_v55 }
 0x8b9   : > { %2014 = vrot.lane.b32.xlu1 %v4062_v20, %s3769_s25 }
 0x8bd   : > { %2110 = vrot.lane.b32.xlu1 %v4068_v25, %s3769_s25 }
 0x8c1   : > { %2224 = vrot.lane.b32.xlu1 %v4062_v20, %s3770_s3 }
 0x8c5   : > { %2274 = vrot.lane.b32.xlu1 %v4065_v24, %s3770_s3 }
 0x8c9   : > { %2324 = vrot.lane.b32.xlu1 %v4068_v25, %s3770_s3  ;;  %s4476_s3 = scalar_lea.vmem %s4433_s17, %s3900_s15 }
 0x8cd   : > { %2322 = vrot.lane.b32.xlu1 %v4068_v25, %s3771_s27 }
 0x92d   : > { %v1980_v57 = vpop.xlane.xlu1 %1979 }
 0x92e   : > { %v1987_v58 = vsub.f32 %v1975_v42, %v1980_v57 }
 0x930   : > { %v1990_v59 = vmul.f32 1.442695, %v1987_v58 }
 0x931   : > { %v2001_v41 = vpop.xlane.xlu1 %2000 }
 0x932   : > { %3688 = vpow2.f32 %v1990_v59 }
 0x935   : > { %v1986_v45 = vpop.xlane.xlu0 %1985  ;;  %v2015_v46 = vpop.permute.xlu1 %2014 }
 0x936   : > { %v1989_v60 = vsub.f32 %v1977_v53, %v1986_v45  ;;  %v2020_v61 = vsel %vm1225_vm10, %v2015_v46, 0 }
 0x937   : > { %3515 = vmatpush3.bf16.msra.mxu0 %v2020_v61 }
 0x938   : > { %v1994_v62 = vmul.f32 1.442695, %v1989_v60  ;;  %3526 = vmatprep.subr.bf16.mxu0 %v3760_v14 }
 0x939   : > { %v2111_v10 = vpop.permute.xlu1 %2110 }
 0x93a   : > { %3690 = vpow2.f32 %v1994_v62  ;;  %v2116_v18 = vsel %vm1225_vm10, %v2111_v10, 0 }
 0x93b   : > { %3692 = vrcp.f32 %v2001_v41 }
 0x93d   : > { %v2225_v19 = vpop.permute.xlu1 %2224 }
 0x93e   : > { %v2230_v27 = vsel %vm1033_vm6, %v2225_v19, 0  ;;  %v1809_v19 = vadd.f32 %v4211_v12, %v4227_v34 }
 0x93f   : > { %v3689_v63 = vpop.eup %3688 }
 0x940   : > { %v1996_v0 = vsel %vm1033_vm6, %v3689_v63, 0.0 }
 0x941   : > { %1997 = vadd.xlane.f32.xlu0 %v1996_v0  ;;  %v2275_v26 = vpop.permute.xlu1 %2274 }
 0x942   : > { %v2280_v54 = vsel %vm1033_vm6, %v2275_v26, 0 }
 0x945   : > { %v2325_v28 = vpop.permute.xlu1 %2324 }
 0x946   : > { %v2330_v30 = vsel %vm1033_vm6, %v2325_v28, 0 }
 0x947   : > { %v3691_v1 = vpop.eup %3690 }
 0x948   : > { %v2002_v2 = vsel %vm1033_vm6, %v3691_v1, 0.0  ;;  %v3693_v4 = vpop.eup %3692 }
 0x949   : > { %2003 = vadd.xlane.f32.xlu0 %v2002_v2  ;;  %v2009_v6 = vmul.f32 %v3693_v4, %v3687_v47  ;;  %v2323_v31 = vpop.permute.xlu1 %2322 }
 0x94b   : > { %v2012_v13 = vpack.c.bf16 %v2009_v6, %v2009_v6 }
 0x95f   : > { %2062 = vrot.lane.b32.xlu0 %v4065_v24, %s3769_s25  ;;  %s4480_s25 = sld [smem:[#allocation20_spill]] (!%p3306_p13) }
 0x963   : > { %2222 = vrot.lane.b32.xlu0 %v4062_v20, %s3771_s27 }
 0x967   : > { %2272 = vrot.lane.b32.xlu0 %v4065_v24, %s3771_s27  ;;  %s3308_s27 = sld [smem:[#allocation4 + $0x1]] (!%p3306_p13) }
 0x9ca   : > { %v1998_v3 = vpop.xlane.xlu0 %1997 }
 0x9cb   : > { %3694 = vrcp.f32 %v1998_v3 }
 0x9d2   : > { %v2004_v5 = vpop.xlane.xlu0 %2003 }
 0x9d3   : > { %3696 = vrcp.f32 %v2004_v5 }
 0x9d6   : > { %v2063_v7 = vpop.permute.xlu0 %2062 }
 0x9d7   : > { %v2068_v8 = vsel %vm1225_vm10, %v2063_v7, 0 }
 0x9d8   : > { %v3695_v9 = vpop.eup %3694  ;;  %3521 = vmatpush3.bf16.msra.mxu1 %v2068_v8 }
 0x9d9   : > { %v2008_v15 = vmul.f32 %v3695_v9, %v3689_v63  ;;  %3618 = vmatprep.subr.msk.bf16.mxu1 %vm1225_vm10, %v3274_v35 }
 0x9da   : > { %v2223_v29 = vpop.permute.xlu0 %2222 }
 0x9db   : > { %3523 = vmatmul.mubr.msk.bf16.vlgmr.msra.gmra.mxu1 %vm1033_vm6, %v2012_v13  ;;  %v2011_v16 = vpack.c.bf16 %v2008_v15, %v2008_v15 }
 0x9dc   : > { %3533 = vmatpush3.bf16.msra.mxu1 %v2169_v38 }
 0x9dd   : > { %3517 = vmatmul.mubr.msk.bf16.vlgmr.msra.gmra.mxu0 %vm1033_vm6, %v2011_v16  ;;  %3544 = vmatprep.subr.bf16.mxu1 %v3760_v14  ;;  %v1817_v16 = vadd.f32 %v4208_v11, %v4225_v32 }
 0x9de   : > { %3527 = vmatpush3.bf16.msra.mxu0 %v2116_v18  ;;  %3528 = vmatprep.mubr.msk.bf16.mxu0 %vm3761_vm5, %v3760_v14  ;;  %v2273_v59 = vpop.permute.xlu0 %2272 }
 0x9df   : > { %3538 = vmatprep.subr.bf16.mxu0 %v3760_v14 }
 0x9e0   : > { %v3697_v21 = vpop.eup %3696 }
 0x9e1   : > { %v2010_v22 = vmul.f32 %v3697_v21, %v3691_v1 }
 0x9e3   : > { %v2013_v23 = vpack.c.bf16 %v2010_v22, %v2010_v22 }
 0x9e5   : > { %3529 = vmatmul.mubr.msk.bf16.vlgmr.msra.gmra.mxu0 %vm1033_vm6, %v2013_v23 }
 0x9e6   : > { %3539 = vmatpush3.bf16.xpose.msra.mxu0 %v2230_v27  ;;  %3540 = vmatprep.mubr.msk.bf16.mxu0 %vm3761_vm5, %v3760_v14  ;;  %v1812_v27 = vadd.f32 %v4214_v17, %v4229_v37 }
 0x9e7   : > { %3550 = vmatprep.subr.bf16.mxu0 %v3760_v14 }
 0x9ed   : > { %3541 = vmatmul.mubr.msk.bf16.vlgmr.msra.gmra.mxu0 %vm1033_vm6, %v2223_v29 }
 0x9ee   : > { %3551 = vmatpush3.bf16.xpose.msra.mxu0 %v2330_v30  ;;  %3552 = vmatprep.mubr.msk.bf16.mxu0 %vm3761_vm5, %v3760_v14 }
 0x9ef   : > { %3562 = vmatprep.subr.bf16.mxu0 %v3760_v14 }
 0x9f5   : > { %3553 = vmatmul.mubr.msk.bf16.vlgmr.msra.gmra.mxu0 %vm1033_vm6, %v2323_v31 }
 0x9f6   : > { %3564 = vmatprep.mubr.msk.bf16.mxu0 %vm3761_vm5, %v3760_v14 }
 0xa9b   : > { %v2104_v39 = vpop.f32.mrf.mxu1 }
 0xa9d   : > { %v2056_v40 = vpop.f32.mrf.mxu0  ;;  %v3524_v42 = vpop.f32.mrf.mxu1 }
 0xa9e   : > { %v2158_v43 = vpack.c.bf16 %v2104_v39, %v2056_v40 }
 0xa9f   : > { %v3518_v44 = vpop.f32.mrf.mxu0  ;;  %v2107_v47 = vpop.f32.mrf.mxu1 }
 0xaa0   : > { %3534 = vmatprep.mubr.msk.bf16.mxu1 %vm1033_vm6, %v2158_v43 }
 0xaa1   : > { %v2059_v48 = vpop.f32.mrf.mxu0  ;;  %v3525_v49 = vpop.f32.mrf.mxu1 }
 0xaa3   : > { %v3519_v50 = vpop.f32.mrf.mxu0 }
 0xaa5   : > { %v2152_v51 = vpop.f32.mrf.mxu0 }
 0xaa6   : > { %v2159_v52 = vpack.c.bf16 %v2152_v51, %v2152_v51 }
 0xaa7   : > { %v3530_v53 = vpop.f32.mrf.mxu0 }
 0xaa8   : > { %3535 = vmatmul.mubr.msk.bf16.vlgmr.msra.gmra.mxu1 %vm1033_vm6, %v2159_v52 }
 0xaa9   : > { %3545 = vmatpush3.bf16.xpose.msra.mxu1 %v2280_v54  ;;  %v2155_v55 = vpop.f32.mrf.mxu0  ;;  %3546 = vmatprep.mubr.msk.bf16.mxu1 %vm3761_vm5, %v3760_v14 }
 0xaaa   : > { %3556 = vmatprep.subr.bf16.mxu1 %v3760_v14 }
 0xaab   : > { %v3531_v56 = vpop.f32.mrf.mxu0 }
 0xaad   : > { %v2266_v57 = vpop.f32.mrf.mxu0 }
 0xaae   : > { %v2372_v58 = vmul.f32 0.35355338, %v2266_v57 }
 0xaaf   : > { %v3542_v41 = vpop.f32.mrf.mxu0 }
 0xab0   : > { %3547 = vmatmul.mubr.msk.bf16.vlgmr.msra.gmra.mxu1 %vm1033_vm6, %v2273_v59  ;;  %v2375_v45 = vadd.f32 %v2372_v58, %v4093_v36  ;;  %v3283_v41 = vld [vmem:[%s4472_s2 + $0xc] sm:$0xf]  ;;  %s4475_s2 = scalar_lea.vmem %s4474_s28, %s3900_s15  ;;  %s2931_s15 = sld [smem:[#allocation4]] (!%p3306_p13) }
 0xab1   : > { %v2269_v46 = vpop.f32.mrf.mxu0  ;;  %3558 = vmatprep.mubr.msk.bf16.mxu1 %vm3761_vm5, %v3760_v14  ;;  %s4479_s28 = sld [smem:[#allocation18_spill]] (!%p3306_p13) }
 0xab2   : > { %v2378_v60 = vsel %vm1033_vm6, %v2375_v45, -inf }
 0xab3   : > { %2379 = vmax.xlane.f32.xlu0 %v2378_v60  ;;  %v3543_v61 = vpop.f32.mrf.mxu0 }
 0xab5   : > { %v2366_v62 = vpop.f32.mrf.mxu0 }
 0xab6   : > { %v2374_v63 = vmul.f32 0.35355338, %v2366_v62 }
 0xab7   : > { %v3554_v0 = vpop.f32.mrf.mxu0 }
 0xab8   : > { %v2377_v1 = vadd.f32 %v2374_v63, %v4093_v36 }
 0xab9   : > { %v2369_v2 = vpop.f32.mrf.mxu0 }
 0xaba   : > { %v2384_v3 = vsel %vm1033_vm6, %v2377_v1, -inf }
 0xabb   : > { %2385 = vmax.xlane.f32.xlu0 %v2384_v3  ;;  %v3555_v4 = vpop.f32.mrf.mxu0 }
 0xb3c   : > { %v2380_v5 = vpop.xlane.xlu0 %2379 }
 0xb3d   : > { %v2387_v6 = vsub.f32 %v2375_v45, %v2380_v5  ;;  %v2569_v45 = vsel %vm1225_vm10, %v3283_v41, 0 }
 0xb3f   : > { %v2390_v7 = vmul.f32 1.442695, %v2387_v6 }
 0xb41   : > { %3698 = vpow2.f32 %v2390_v7 }
 0xb44   : > { %v2386_v10 = vpop.xlane.xlu0 %2385 }
 0xb45   : > { %v2389_v13 = vsub.f32 %v2377_v1, %v2386_v10 }
 0xb47   : > { %v2394_v15 = vmul.f32 1.442695, %v2389_v13 }
 0xb49   : > { %3700 = vpow2.f32 %v2394_v15 }
 0xb4e   : > { %v3699_v8 = vpop.eup %3698 }
 0xb4f   : > { %v2396_v9 = vsel %vm1033_vm6, %v3699_v8, 0.0 }
 0xb50   : > { %2397 = vadd.xlane.f32.xlu0 %v2396_v9  ;;  %v3286_v9 = vld [vmem:[%s4473_s30] ss:$0 sm:$0xff] }
 0xb56   : > { %v3701_v34 = vpop.eup %3700 }
 0xb57   : > { %v2402_v39 = vsel %vm1033_vm6, %v3701_v34, 0.0 }
 0xb68   : > { %v3536_v18 = vpop.f32.mrf.mxu1 }
 0xb69   : > { %v4291_v21 = vadd.f32 %v3536_v18, %v1817_v16 }
 0xb6a   : > { %v2205_v22 = vpop.f32.mrf.mxu1 }
 0xb6b   : > { %v4293_v23 = vadd.f32 %v2205_v22, %v1809_v19  ;;  %v3728_v19 = vld [vmem:[#allocation2 + $0x10] sm:$0xff] }
 0xb6c   : > { %v3537_v26 = vpop.f32.mrf.mxu1 }
 0xb6e   : > { %v2208_v28 = vpop.f32.mrf.mxu1 }
 0xb6f   : > { %v4297_v29 = vadd.f32 %v2208_v28, %v1812_v27  ;;  %v3729_v28 = vld [vmem:[#allocation2] sm:$0xff] }
 0xb70   : > { %v2316_v30 = vpop.f32.mrf.mxu1 }
 0xb71   : > { %v2373_v31 = vmul.f32 0.35355338, %v2316_v30 }
 0xb72   : > { %v3548_v11 = vpop.f32.mrf.mxu1 }
 0xb73   : > { %v2376_v32 = vadd.f32 %v2373_v31, %v4093_v36  ;;  %v3730_v11 = vld [vmem:[#allocation2 + $0x8] sm:$0xff] }
 0xb74   : > { %v2319_v35 = vpop.f32.mrf.mxu1 }
 0xb75   : > { %v2381_v12 = vsel %vm1033_vm6, %v2376_v32, -inf }
 0xb76   : > { %2382 = vmax.xlane.f32.xlu1 %v2381_v12  ;;  %v3549_v38 = vpop.f32.mrf.mxu1 }
 0xb7a   : > { %2403 = vadd.xlane.f32.xlu1 %v2402_v39 }
 0xb8b   : > { %2462 = vrot.lane.b32.xlu1 %v4065_v24, %s3772_s19 }
 0xb8f   : > { %2510 = vrot.lane.b32.xlu1 %v4068_v25, %s3772_s19 }
 0xbd9   : > { %v2398_v48 = vpop.xlane.xlu0 %2397 }
 0xbff   : > { %v2383_v17 = vpop.xlane.xlu1 %2382 }
 0xc00   : > { %v2388_v37 = vsub.f32 %v2376_v32, %v2383_v17 }
 0xc02   : > { %v2392_v40 = vmul.f32 1.442695, %v2388_v37 }
 0xc03   : > { %v2404_v42 = vpop.xlane.xlu1 %2403 }
 0xc04   : > { %3702 = vpow2.f32 %v2392_v40 }
 0xc05   : > { %3704 = vrcp.f32 %v2398_v48 }
 0xc06   : > { %3706 = vrcp.f32 %v2404_v42 }
 0xc07   : > { %v2463_v36 = vpop.permute.xlu1 %2462 }
 0xc08   : > { %v2468_v43 = vsel %vm1225_vm10, %v2463_v36, 0 }
 0xc09   : > { %3563 = vmatpush3.bf16.msra.mxu0 %v2468_v43 }
 0xc0a   : > { %3619 = vmatprep.subr.msk.bf16.mxu0 %vm1225_vm10, %v3283_v41 }
 0xc0b   : > { %v2511_v52 = vpop.permute.xlu1 %2510 }
 0xc0c   : > { %v2516_v55 = vsel %vm1225_vm10, %v2511_v52, 0 }
 0xc11   : > { %v3703_v44 = vpop.eup %3702 }
 0xc12   : > { %v2399_v47 = vsel %vm1033_vm6, %v3703_v44, 0.0  ;;  %v3705_v24 = vpop.eup %3704 }
 0xc13   : > { %2400 = vadd.xlane.f32.xlu0 %v2399_v47  ;;  %v2408_v49 = vmul.f32 %v3705_v24, %v3699_v8  ;;  %v3707_v54 = vpop.eup %3706 }
 0xc15   : > { %v2411_v53 = vpack.c.bf16 %v2408_v49, %v2408_v49  ;;  %v3646_v49 = vld [vmem:[%s3946_s5 + $0x8] sm:$0xff]  }
 0xc29   : > { %2414 = vrot.lane.b32.xlu0 %v4062_v20, %s3772_s19  ;;  %v2410_v20 = vmul.f32 %v3707_v54, %v3701_v34  ;;  %s3310_s19 = sld [smem:[#allocation4 + $0x2]] (!%p3306_p13) }
 0xc2b   : > { %v2413_v57 = vpack.c.bf16 %v2410_v20, %v2410_v20 }
 0xc9c   : > { %v2401_v25 = vpop.xlane.xlu0 %2400 }
 0xc9d   : > { %3708 = vrcp.f32 %v2401_v25 }
 0xca0   : > { %v2415_v50 = vpop.permute.xlu0 %2414 }
 0xca1   : > { %v2420_v51 = vsel %vm1225_vm10, %v2415_v50, 0  ;;  %v3647_v50 = vld [vmem:[%s3946_s5] sm:$0xff]  }
 0xca2   : > { %3557 = vmatpush3.bf16.msra.mxu1 %v2420_v51 }
 0xca3   : > { %3568 = vmatprep.subr.bf16.mxu1 %v3760_v14 }
 0xca5   : > { %3559 = vmatmul.mubr.msk.bf16.vlgmr.msra.gmra.mxu1 %vm1033_vm6, %v2411_v53 }
 0xca6   : > { %3569 = vmatpush3.bf16.msra.mxu1 %v2516_v55  ;;  %3570 = vmatprep.mubr.msk.bf16.mxu1 %vm3761_vm5, %v3760_v14 }
 0xca7   : > { %3580 = vmatprep.subr.bf16.mxu1 %v3646_v49 }
 0xcaa   : > { %v3709_v56 = vpop.eup %3708 }
 0xcab   : > { %v2409_v58 = vmul.f32 %v3709_v56, %v3703_v44 }
 0xcad   : > { %3571 = vmatmul.mubr.msk.bf16.vlgmr.msra.gmra.mxu1 %vm1033_vm6, %v2413_v57  ;;  %v2412_v59 = vpack.c.bf16 %v2409_v58, %v2409_v58 }
 0xcae   : > { %3581 = vmatpush3.bf16.msra.mxu1 %v3646_v49 }
 0xcaf   : > { %3565 = vmatmul.mubr.msk.bf16.vlgmr.msra.gmra.mxu0 %vm1033_vm6, %v2412_v59  ;;  %3582 = vmatprep.subr.bf16.mxu1 %v3647_v50 }
 0xcb0   : > { %3575 = vmatpush3.bf16.msra.mxu0 %v2569_v45  ;;  %v3287_v45 = vld [vmem:[%s791_s26] ss:$0 sm:$0xff] }
 0xcb2   : > { %3583 = vmatpush3.bf16.msra.mxu1 %v3647_v50 }
 0xd65   : > { %v2456_v46 = vpop.f32.mrf.mxu1 }
 0xd67   : > { %v3560_v60 = vpop.f32.mrf.mxu1 }
 0xd69   : > { %v2459_v61 = vpop.f32.mrf.mxu1 }
 0xd6b   : > { %v3561_v14 = vpop.f32.mrf.mxu1 }
 0xd6c   : > { %v3288_v14 = vld [vmem:[%s794_s21] ss:$0 sm:$0xff] }
 0xd6d   : > { %v2552_v62 = vpop.f32.mrf.mxu1 }
 0xd6e   : > { %v2559_v2 = vpack.c.bf16 %v2552_v62, %v2552_v62 }
 0xd6f   : > { %v2504_v63 = vpop.f32.mrf.mxu0  ;;  %v3572_v0 = vpop.f32.mrf.mxu1 }
 0xd70   : > { %v2558_v1 = vpack.c.bf16 %v2504_v63, %v2456_v46 }
 0xd71   : > { %v3566_v3 = vpop.f32.mrf.mxu0  ;;  %v2555_v4 = vpop.f32.mrf.mxu1 }
 0xd72   : > { %3576 = vmatprep.mubr.msk.bf16.mxu0 %vm1033_vm6, %v2558_v1 }
 0xd73   : > { %v2507_v5 = vpop.f32.mrf.mxu0  ;;  %v3573_v6 = vpop.f32.mrf.mxu1  ;;  %3577 = vmatmul.mubr.msk.bf16.vlgmr.msra.gmra.mxu0 %vm1033_vm6, %v2559_v2 }
 0xd75   : > { %v3567_v7 = vpop.f32.mrf.mxu0 }
 0xd76   : > { %v3648_v7 = vld [vmem:[%s3956_s1 + $0x38] sm:$0xff]  }
 0xd77   : > { %3588 = vmatprep.subr.bf16.mxu0 %v3648_v7 }
 0xd78   : > { %3589 = vmatpush3.bf16.msra.mxu0 %v3648_v7 }
 0xe33   : > { %v3578_v8 = vpop.f32.mrf.mxu0 }
 0xe34   : > { %v2621_v10 = vadd.f32 %v3578_v8, %v4291_v21  ;;  %v3649_v8 = vld [vmem:[%s3956_s1 + $0x30] sm:$0xff]  }
 0xe35   : > { %v2605_v13 = vpop.f32.mrf.mxu0  ;;  %3590 = vmatprep.subr.bf16.mxu0 %v3649_v8 }
 0xe36   : > { %v2631_v15 = vadd.f32 %v3286_v9, %v2621_v10  ;;  %v2619_v16 = vadd.f32 %v2605_v13, %v4293_v23  ;;  %3591 = vmatpush3.bf16.msra.mxu0 %v3649_v8  ;;  %v3651_v10 = vld [vmem:[%s3956_s1 + $0x20] sm:$0xff]   ;;  %v3652_v13 = vld [vmem:[%s3956_s1 + $0x18] sm:$0xff]  }
 0xe37   : > { %v3579_v18 = vpop.f32.mrf.mxu0 }
 0xe38   : > { %v4327_v22 = vadd.f32 %v3728_v19, %v2631_v15  ;;  %v2629_v26 = vadd.f32 %v3286_v9, %v2619_v16  ;;  %v3653_v15 = vld [vmem:[%s3956_s1 + $0x10] sm:$0xff]   ;;  %v3654_v16 = vld [vmem:[%s3956_s1 + $0x8] sm:$0xff]   ;;  %v3655_v18 = vld [vmem:[%s3956_s1] sm:$0xff]  }
 0xe39   : > { %v2608_v27 = vpop.f32.mrf.mxu0  ;;  %v3289_v19 = vld [vmem:[%s4475_s2] ss:$0 sm:$0xff] }
 0xe3a   : > { %2637 = vst.msk [vmem:[#allocation2 + $0x10] sm:$0xff] %vm889_vm4, %v4327_v22  ;;  %v4331_v30 = vadd.f32 %v3729_v28, %v2629_v26  ;;  %v2620_v31 = vadd.f32 %v2608_v27, %v4297_v29  ;;  %v2646_v29 = vsel %vm889_vm4, %v4327_v22, 0.0 }
 0xe3c   : > { %2635 = vst.msk [vmem:[#allocation2] sm:$0xff] %vm889_vm4, %v4331_v30  ;;  %v2630_v21 = vadd.f32 %v3286_v9, %v2620_v31  ;;  %v2640_v23 = vsel %vm889_vm4, %v4331_v30, 0.0  ;;  %v3650_v9 = vld [vmem:[%s3956_s1 + $0x28] sm:$0xff]  }
 0xe3d   : > { %2641 = vadd.xlane.f32.xlu1 %v2640_v23  ;;  %3592 = vmatprep.subr.bf16.mxu0 %v3650_v9 }
 0xe3e   : > { %v4338_v32 = vadd.f32 %v3730_v11, %v2630_v21  ;;  %3593 = vmatpush3.bf16.msra.mxu0 %v3650_v9 }
 0xe3f   : > { %3594 = vmatprep.subr.bf16.mxu0 %v3651_v10 }
 0xe40   : > { %2636 = vst.msk [vmem:[#allocation2 + $0x8] sm:$0xff] %vm889_vm4, %v4338_v32  ;;  %v2643_v35 = vsel %vm889_vm4, %v4338_v32, 0.0 }
 0xe41   : > { %2644 = vadd.xlane.f32.xlu0 %v2643_v35 }
 0xe42   : > { %3595 = vmatpush3.bf16.msra.mxu0 %v3651_v10 }
 0xe43   : > { %3596 = vmatprep.subr.bf16.mxu0 %v3652_v13 }
 0xe45   : > { %2647 = vadd.xlane.f32.xlu0 %v2646_v29 }
 0xe46   : > { %3597 = vmatpush3.bf16.msra.mxu0 %v3652_v13 }
 0xe47   : > { %3598 = vmatprep.subr.bf16.mxu0 %v3653_v15 }
 0xe4a   : > { %3599 = vmatpush3.bf16.msra.mxu0 %v3653_v15 }
 0xe4b   : > { %3600 = vmatprep.subr.bf16.mxu0 %v3654_v16 }
 0xe4e   : > { %3601 = vmatpush3.bf16.msra.mxu0 %v3654_v16 }
 0xe4f   : > { %3602 = vmatprep.subr.bf16.mxu0 %v3655_v18 }
 0xe52   : > { %3603 = vmatpush3.bf16.msra.mxu0 %v3655_v18 }
 0xec6   : > { %v2642_v12 = vpop.xlane.xlu1 %2641 }
 0xec7   : > { %v2649_v34 = vmul.f32 0.03125, %v2642_v12 }
 0xec9   : > { %v2652_v38 = vsub.f32 %v4331_v30, %v2649_v34 }
 0xeca   : > { %v2645_v39 = vpop.xlane.xlu0 %2644 }
 0xecb   : > { %v2650_v17 = vmul.f32 0.03125, %v2645_v39  ;;  %v2655_v37 = vmul.f32 %v2652_v38, %v2652_v38 }
 0xecd   : > { %v2653_v40 = vsub.f32 %v4338_v32, %v2650_v17  ;;  %v2658_v42 = vsel %vm889_vm4, %v2655_v37, 0.0 }
 0xece   : > { %2659 = vadd.xlane.f32.xlu0 %v2658_v42  ;;  %v2648_v36 = vpop.xlane.xlu0 %2647 }
 0xecf   : > { %v2651_v43 = vmul.f32 0.03125, %v2648_v36  ;;  %v2656_v44 = vmul.f32 %v2653_v40, %v2653_v40 }
 0xed1   : > { %v2654_v47 = vsub.f32 %v4327_v22, %v2651_v43  ;;  %v2661_v48 = vsel %vm889_vm4, %v2656_v44, 0.0 }
 0xed2   : > { %2662 = vadd.xlane.f32.xlu1 %v2661_v48 }
 0xed3   : > { %v2657_v24 = vmul.f32 %v2654_v47, %v2654_v47 }
 0xed5   : > { %v2664_v25 = vsel %vm889_vm4, %v2657_v24, 0.0 }
 0xed6   : > { %2665 = vadd.xlane.f32.xlu0 %v2664_v25 }
 0xf57   : > { %v2660_v51 = vpop.xlane.xlu0 %2659 }
 0xf58   : > { %v2667_v52 = vmul.f32 0.03125, %v2660_v51 }
 0xf5a   : > { %v2670_v53 = vadd.f32 1e-05, %v2667_v52  ;;  %v3297_v52 = vld [vmem:[%s4476_s3] ss:$0 sm:$0xff] }
 0xf5b   : > { %v2663_v54 = vpop.xlane.xlu1 %2662 }
 0xf5c   : > { %3710 = vrsqrt.f32 %v2670_v53  ;;  %v2668_v55 = vmul.f32 0.03125, %v2663_v54 }
 0xf5e   : > { %v2671_v20 = vadd.f32 1e-05, %v2668_v55 }
 0xf5f   : > { %v2666_v56 = vpop.xlane.xlu0 %2665 }
 0xf60   : > { %3712 = vrsqrt.f32 %v2671_v20  ;;  %v2669_v57 = vmul.f32 0.03125, %v2666_v56 }
 0xf62   : > { %v2672_v58 = vadd.f32 1e-05, %v2669_v57 }
 0xf64   : > { %3714 = vrsqrt.f32 %v2672_v58 }
 0xf69   : > { %v3711_v59 = vpop.eup %3710 }
 0xf6a   : > { %v2676_v41 = vmul.f32 %v3711_v59, %v2652_v38 }
 0xf6c   : > { %v2685_v61 = vmul.f32 %v3287_v45, %v2676_v41 }
 0xf6d   : > { %v3713_v46 = vpop.eup %3712 }
 0xf6e   : > { %v2677_v60 = vmul.f32 %v3713_v46, %v2653_v40  ;;  %v2694_v1 = vadd.f32 %v3288_v14, %v2685_v61 }
 0xf70   : > { %v2686_v62 = vmul.f32 %v3287_v45, %v2677_v60 }
 0xf71   : > { %v3715_v63 = vpop.eup %3714 }
 0xf72   : > { %v2678_v0 = vmul.f32 %v3715_v63, %v2654_v47  ;;  %v2695_v2 = vadd.f32 %v3288_v14, %v2686_v62 }
 0xf74   : > { %v2697_v3 = vpack.c.bf16 %v2695_v2, %v2694_v1  ;;  %v2687_v4 = vmul.f32 %v3287_v45, %v2678_v0 }
 0xf76   : > { %3584 = vmatprep.mubr.msk.bf16.mxu1 %vm889_vm4, %v2697_v3  ;;  %v2696_v5 = vadd.f32 %v3288_v14, %v2687_v4 }
 0xf78   : > { %v2698_v6 = vpack.c.bf16 %v2696_v5, %v2696_v5 }
 0xf7a   : > { %3585 = vmatmul.mubr.msk.bf16.vlgmr.msra.gmra.mxu1 %vm889_vm4, %v2698_v6 }
0x103a   : > { %v3586_v26 = vpop.f32.mrf.mxu1 }
0x103b   : > { %v2771_v27 = vadd.f32 %v3586_v26, %v3289_v19 }
0x103c   : > { %v2762_v28 = vpop.f32.mrf.mxu1 }
0x103d   : > { %v3296_v31 = vmul.f32 -1.702, %v2771_v27  ;;  %v2763_v21 = vadd.f32 %v3289_v19, %v2762_v28 }
0x103e   : > { %v3587_v23 = vpop.f32.mrf.mxu1 }
0x103f   : > { %v2786_v11 = vmul.f32 1.442695, %v3296_v31  ;;  %v3294_v35 = vmul.f32 -1.702, %v2763_v21 }
0x1040   : > { %v2765_v29 = vpop.f32.mrf.mxu1 }
0x1041   : > { %3716 = vpow2.f32 %v2786_v11  ;;  %v2782_v12 = vmul.f32 1.442695, %v3294_v35  ;;  %v2766_v34 = vadd.f32 %v3289_v19, %v2765_v29 }
0x1043   : > { %3718 = vpow2.f32 %v2782_v12  ;;  %v3295_v38 = vmul.f32 -1.702, %v2766_v34 }
0x1045   : > { %v2784_v39 = vmul.f32 1.442695, %v3295_v38 }
0x1047   : > { %3720 = vpow2.f32 %v2784_v39 }
0x104e   : > { %v3717_v17 = vpop.eup %3716 }
0x104f   : > { %v2790_v40 = vadd.f32 1.0, %v3717_v17 }
0x1050   : > { %v3719_v37 = vpop.eup %3718 }
0x1051   : > { %v2788_v42 = vadd.f32 1.0, %v3719_v37  ;;  %3722 = vrcp.f32 %v2790_v40 }
0x1053   : > { %3724 = vrcp.f32 %v2788_v42 }
0x1054   : > { %v3721_v36 = vpop.eup %3720 }
0x1055   : > { %v2789_v43 = vadd.f32 1.0, %v3721_v36 }
0x1057   : > { %3726 = vrcp.f32 %v2789_v43 }
0x105e   : > { %v3723_v44 = vpop.eup %3722 }
0x105f   : > { %v2799_v24 = vmul.f32 %v3723_v44, %v2771_v27 }
0x1060   : > { %v3725_v47 = vpop.eup %3724 }
0x1061   : > { %v2797_v25 = vmul.f32 %v3725_v47, %v2763_v21  ;;  %v2801_v51 = vpack.c.bf16 %v2799_v24, %v2799_v24 }
0x1064   : > { %v3727_v48 = vpop.eup %3726 }
0x1065   : > { %v2798_v49 = vmul.f32 %v3727_v48, %v2766_v34 }
0x1067   : > { %v2800_v50 = vpack.c.bf16 %v2798_v49, %v2797_v25 }
0x1069   : > { %3604 = vmatprep.mubr.bf16.mxu0 %v2800_v50 }
0x106a   : > { %3605 = vmatmul.mubr.bf16.vlgmr.msra.gmra.mxu0 %v2801_v51 }
0x112a   : > { %v3606_v53 = vpop.f32.mrf.mxu0 }
0x112b   : > { %v2916_v54 = vadd.f32 %v3606_v53, %v3297_v52 }
0x112c   : > { %v2907_v55 = vpop.f32.mrf.mxu0 }
0x112d   : > { %v2923_v20 = vadd.f32 %v2916_v54, %v4327_v22  ;;  %v2908_v56 = vadd.f32 %v3297_v52, %v2907_v55 }
0x112e   : > { %v3607_v57 = vpop.f32.mrf.mxu0 }
0x112f   : > { %2926 = vst.msk [vmem:[#allocation2 + $0x10] sm:$0xff] %vm889_vm4, %v2923_v20  ;;  %v2921_v58 = vadd.f32 %v2908_v56, %v4331_v30 }
0x1130   : > { %v2910_v59 = vpop.f32.mrf.mxu0 }
0x1131   : > { %2924 = vst.msk [vmem:[#allocation2] sm:$0xff] %vm889_vm4, %v2921_v58  ;;  %v2911_v41 = vadd.f32 %v3297_v52, %v2910_v59  ;;  %2930 = sbr.rel (%p3306_p13) target bundleno = 5093 (0x13e5), region = 112 }
0x1133   : > { %v2922_v45 = vadd.f32 %v2911_v41, %v4338_v32 }
0x1135   : > { %2925 = vst.msk [vmem:[#allocation2 + $0x8] sm:$0xff] %vm889_vm4, %v2922_v45 }
0x1136   : > { %v3773_v22 = vmov 0.0   ;;  %v2932_v46 = vstv %s2931_s15  ;;  %v2946_v30 = vstv %s3308_s27  ;;  %v2961_v32 = vstv %s3310_s19  ;;  %v2966_v62 = vld [vmem:[#allocation2 + $0x10] sm:$0xff]  ;;  %v3731_v42 = vld [vmem:[%s4477_s22 + $0x8] sm:$0xff]  }
0x1137   : > { %3608 = vmatprep.subr.bf16.mxu0 %v3773_v22  ;;  %vm2933_vm11 = vcmp.eq.s32.totalorder %v4089_v33, %v2932_v46  ;;  %vm2947_vm12 = vcmp.eq.s32.totalorder %v4089_v33, %v2946_v30  ;;  %vm2962_vm13 = vcmp.eq.s32.totalorder %v4089_v33, %v2961_v32  ;;  %vm2975_vm14 = vcmask 1040384   ;;  %v3732_v36 = vld [vmem:[%s4477_s22] sm:$0xff]  }
0x1138   : > { %v2936_v60 = vld [vmem:[#allocation2] sm:$0xff]  ;;  %v3307_v14 = vsel %vm2933_vm11, 1.0, %v3773_v22  ;;  %v3309_v0 = vsel %vm2947_vm12, 1.0, %v3773_v22  ;;  %v3311_v2 = vsel %vm2962_vm13, 1.0, %v3773_v22  ;;  %vm2977_vm15 = vcmask 1041408   ;;  %3609 = vmatpush3.bf16.msra.mxu0 %v3731_v42 }
0x1139   : > { %v2937_v63 = vmul.f32 %v3307_v14, %v2936_v60  ;;  %v2967_v4 = vmul.f32 %v3311_v2, %v2966_v62  ;;  %vm2981_vm0 = vcmask 256000   ;;  %vm3774_vm1 = vmmov 0   ;;  %3610 = vmatprep.subr.bf16.mxu0 %v3773_v22  ;;  %v3312_v24 = vld [vmem:[%s4478_s23] ss:$0 sm:$0xff] }
0x113a   : > { %3612 = vmatprep.mubr.msk.bf16.mxu0 %vm3774_vm1, %v3773_v22  ;;  %v3313_v49 = vld [vmem:[%s4479_s28] ss:$0 sm:$0xff]  ;;  %vm3070_vm2 = vcmask 124928  }
0x113b   : > { %v2938_v3 = vsel %vm889_vm4, %v2937_v63, 0.0  ;;  %v2968_v8 = vsel %vm889_vm4, %v2967_v4, 0.0 }
0x113c   : > { %v2951_v61 = vld [vmem:[#allocation2 + $0x8] sm:$0xff]  ;;  %v2939_v5 = vrot.slane %v2938_v3, 4  ;;  %v2969_v10 = vrot.slane %v2968_v8, 4  ;;  %3611 = vmatpush3.bf16.msra.mxu0 %v3732_v36 }
0x113d   : > { %v2952_v1 = vmul.f32 %v3309_v0, %v2951_v61 }
0x113e   : > { %v2940_v9 = vadd.f32 %v2939_v5, %v2938_v3  ;;  %v2970_v16 = vadd.f32 %v2969_v10, %v2968_v8 }
0x113f   : > { %v2953_v6 = vsel %vm889_vm4, %v2952_v1, 0.0 }
0x1140   : > { %v2954_v7 = vrot.slane %v2953_v6, 4  ;;  %v2941_v15 = vrot.slane %v2940_v9, 2  ;;  %v2971_v26 = vrot.slane %v2970_v16, 2 }
0x1142   : > { %v2955_v13 = vadd.f32 %v2954_v7, %v2953_v6  ;;  %v2942_v19 = vadd.f32 %v2941_v15, %v2940_v9  ;;  %v2972_v28 = vadd.f32 %v2971_v26, %v2970_v16 }
0x1144   : > { %v2956_v18 = vrot.slane %v2955_v13, 2  ;;  %v2943_v27 = vrot.slane %v2942_v19, 1  ;;  %v2973_v23 = vrot.slane %v2972_v28, 1 }
0x1146   : > { %v2957_v33 = vadd.f32 %v2956_v18, %v2955_v13  ;;  %v2944_v21 = vadd.f32 %v2943_v27, %v2942_v19  ;;  %v2974_v35 = vadd.f32 %v2973_v23, %v2972_v28 }
0x1148   : > { %v2958_v31 = vrot.slane %v2957_v33, 1 }
0x114a   : > { %v2959_v11 = vadd.f32 %v2958_v31, %v2957_v33 }
0x114c   : > { %v2976_v29 = vsel %vm2975_vm14, %v2944_v21, %v2959_v11 }
0x114d   : > { %v2978_v12 = vsel %vm2977_vm15, %v2976_v29, %v2974_v35 }
0x114e   : > { %v2982_v34 = vsel %vm2981_vm0, %v2978_v12, 0.0 }
0x114f   : > { %2983 = vadd.xlane.f32.xlu0 %v2982_v34 }
0x11d8   : > { %v2984_v38 = vpop.xlane.xlu0 %2983 }
0x11d9   : > { %v2985_v39 = vmul.f32 0.03125, %v2984_v38 }
0x11db   : > { %v2986_v17 = vsub.f32 %v2978_v12, %v2985_v39 }
0x11dd   : > { %v2987_v37 = vmul.f32 %v2986_v17, %v2986_v17 }
0x11df   : > { %v2988_v40 = vsel %vm2981_vm0, %v2987_v37, 0.0 }
0x11e0   : > { %2989 = vadd.xlane.f32.xlu0 %v2988_v40 }
0x1269   : > { %v2990_v43 = vpop.xlane.xlu0 %2989 }
0x126a   : > { %v2991_v44 = vmul.f32 0.03125, %v2990_v43 }
0x126c   : > { %v2992_v47 = vadd.f32 1e-05, %v2991_v44 }
0x126e   : > { %3733 = vrsqrt.f32 %v2992_v47 }
0x127b   : > { %v3734_v48 = vpop.eup %3733 }
0x127c   : > { %v2994_v25 = vmul.f32 %v3734_v48, %v2986_v17 }
0x127e   : > { %v3001_v50 = vmul.f32 %v3312_v24, %v2994_v25 }
0x1280   : > { %v3008_v51 = vadd.f32 %v3313_v49, %v3001_v50 }
0x1282   : > { %v3013_v52 = vpack.c.bf16 %v3008_v51, %v3008_v51 }
0x1284   : > { %3613 = vmatmul.mubr.msk.bf16.vlgmr.msra.gmra.mxu0 %vm889_vm4, %v3013_v52 }
0x1344   : > { %v3063_v53 = vpop.f32.mrf.mxu0 }
0x1345   : > { %v3069_v54 = vmul.f32 %v3063_v53, %v3063_v53 }
0x1346   : > { %v3614_v55 = vpop.f32.mrf.mxu0 }
0x1347   : > { %v3071_v20 = vsel %vm3070_vm2, %v3069_v54, 0.0 }
0x1348   : > { %3072 = vadd.xlane.f32.xlu1 %v3071_v20  ;;  %v3066_v56 = vpop.f32.mrf.mxu0 }
0x134a   : > { %v3615_v57 = vpop.f32.mrf.mxu0 }
0x13d1   : > { %v3073_v58 = vpop.xlane.xlu1 %3072 }
0x13d2   : > { %v3074_v59 = vadd.f32 1e-12, %v3073_v58 }
0x13d4   : > { %3735 = vrsqrt.f32 %v3074_v59 }
0x13e1   : > { %v3736_v41 = vpop.eup %3735 }
0x13e2   : > { %v3076_v45 = vmul.f32 %v3736_v41, %v3063_v53 }
0x13e4   : > { %3077 = vst.msk [vmem:[%s4480_s25] sm:$0x7] %vm3070_vm2, %v3076_v45 }
0x13e5 PF: > { %s4481_s3 = sld [smem:[#allocation6_spill]] }
0x13eb   : > { %s37_s28 = sadd.s32 1, %s4481_s3  }
0x13ec   : > { %p34_p0 = scmp.ge.s32.totalorder %s37_s28, 4  }
0x13ee   :  { %36 = sbr.rel (!%p34_p0) target bundleno = 35 (0x23), region = 187 }

// kernel: forward.4
= control target key start
LH: loop header
LB: loop body
LE: loop exit
PB: predicated region body
PF: predicated region fallthrough
CT: control target
= control target key end

     0   :  { %s4492_s0 = inlined_call_operand.vmem [shape: f32[8,192], index: 0, kind: input, shape index: {}]   ;;  %s4493_s1 = inlined_call_operand.vmem [shape: bf16[192,48], index: 1, kind: input, shape index: {}]   ;;  %s4494_s2 = inlined_call_operand.vmem [shape: f32[1,48], index: 2, kind: input, shape index: {}]   ;;  %s4495_s3 = inlined_call_operand.vmem [shape: f32[5,48], index: 3, kind: input, shape index: {}]   ;;  %s4496_s4 = inlined_call_operand.vmem [shape: f32[2,32], index: 4, kind: input, shape index: {}]   ;;  %s4497_s5 = inlined_call_operand.vmem [shape: bf16[32,48], index: 5, kind: input, shape index: {}]   ;;  %s4498_s6 = inlined_call_operand.vmem [shape: f32[1,48], index: 6, kind: input, shape index: {}]   ;;  %s4499_s7 = inlined_call_operand.vmem [shape: f32[1,48], index: 7, kind: input, shape index: {}]   ;;  %s4500_s8 = inlined_call_operand.vmem [shape: f32[1,48], index: 8, kind: input, shape index: {}]   ;;  %s4501_s9 = inlined_call_operand.vmem [shape: f32[2,2,32], index: 9, kind: input, shape index: {}]   ;;  %s4502_s10 = inlined_call_operand.vmem [shape: bf16[2,32,48], index: 10, kind: input, shape index: {}]   ;;  %s4503_s11 = inlined_call_operand.vmem [shape: f32[2,1,48], index: 11, kind: input, shape index: {}]   ;;  %s4504_s12 = inlined_call_operand.vmem [shape: f32[2,1,48], index: 12, kind: input, shape index: {}]   ;;  %s4505_s13 = inlined_call_operand.vmem [shape: f32[2,1,48], index: 13, kind: input, shape index: {}]   ;;  %s4506_s14 = inlined_call_operand.vmem [shape: bf16[2,48,144], index: 14, kind: input, shape index: {}]   ;;  %s4507_s15 = inlined_call_operand.vmem [shape: f32[2,1,144], index: 15, kind: input, shape index: {}]   ;;  %s4508_s16 = inlined_call_operand.vmem [shape: bf16[2,4,12,48], index: 16, kind: input, shape index: {}]   ;;  %s4509_s17 = inlined_call_operand.vmem [shape: f32[2,1,48], index: 17, kind: input, shape index: {}]   ;;  %s4510_s18 = inlined_call_operand.vmem [shape: f32[2,1,48], index: 18, kind: input, shape index: {}]   ;;  %s4511_s19 = inlined_call_operand.vmem [shape: f32[2,1,48], index: 19, kind: input, shape index: {}]   ;;  %s4512_s20 = inlined_call_operand.vmem [shape: bf16[2,48,192], index: 20, kind: input, shape index: {}]   ;;  %s4513_s21 = inlined_call_operand.vmem [shape: f32[2,1,192], index: 21, kind: input, shape index: {}]   ;;  %s4514_s22 = inlined_call_operand.vmem [shape: bf16[2,192,48], index: 22, kind: input, shape index: {}]   ;;  %s4515_s23 = inlined_call_operand.vmem [shape: f32[2,1,48], index: 23, kind: input, shape index: {}]   ;;  %s4516_s24 = inlined_call_operand.vmem [shape: f32[1,48], index: 24, kind: input, shape index: {}]   ;;  %s4517_s25 = inlined_call_operand.vmem [shape: f32[1,48], index: 25, kind: input, shape index: {}]   ;;  %s4518_s26 = inlined_call_operand.vmem [shape: bf16[48,16], index: 26, kind: input, shape index: {}]   ;;  %s4519_s27 = inlined_call_operand.vmem [shape: f32[2,16], index: 27, kind: output, shape index: {}]  }
   0x1   :  { %4530 = sst [smem:[#allocation6_spill]] %s4492_s0 }
   0x2   :  { %4531 = sst [smem:[#allocation7_spill]] %s4493_s1 }
   0x3   :  { %4532 = sst [smem:[#allocation8_spill]] %s4494_s2 }
   0x4   :  { %4533 = sst [smem:[#allocation9_spill]] %s4495_s3 }
   0x5   :  { %4534 = sst [smem:[#allocation10_spill]] %s4496_s4 }
   0x6   :  { %4535 = sst [smem:[#allocation11_spill]] %s4497_s5 }
   0x7   :  { %4536 = sst [smem:[#allocation12_spill]] %s4498_s6 }
   0x8   :  { %4537 = sst [smem:[#allocation13_spill]] %s4499_s7  ;;  %s3953_s7 = smov 0  }
   0x9   :  { %4538 = sst [smem:[#allocation14_spill]] %s4500_s8 }
   0xa   :  { %4539 = sst [smem:[#allocation15_spill]] %s4501_s9 }
   0xb   :  { %4540 = sst [smem:[#allocation16_spill]] %s4502_s10 }
   0xc   :  { %4541 = sst [smem:[#allocation17_spill]] %s4503_s11 }
   0xd   :  { %4542 = sst [smem:[#allocation18_spill]] %s4506_s14 }
   0xe   :  { %4543 = sst [smem:[#allocation19_spill]] %s4508_s16 }
   0xf   :  { %4544 = sst [smem:[#allocation20_spill]] %s4514_s22 }
  0x10   :  { %4545 = sst [smem:[#allocation21_spill]] %s4516_s24 }
  0x11   :  { %4546 = sst [smem:[#allocation22_spill]] %s4517_s25 }
  0x12   :  { %4547 = sst [smem:[#allocation23_spill]] %s4518_s26 }
  0x13   :  { %4548 = sst [smem:[#allocation24_spill]] %s4519_s27 }
  0x14 LB: > { %4549 = sst [smem:[#allocation3_spill]] %s3790_s7  ;;  %s3959_s4 = sadd.s32 4294967295, %s3790_s7   ;;  %s3790_s7 = sphi %s3953_s7, %s37_s7  }
  0x15   : > { %4550 = sst [smem:[#allocation4_spill]] %s3959_s4  ;;  %p3326_p0 = scmp.ge.s32.totalorder %s3790_s7, 1 }
  0x16   : > { %p855_p1 = scmp.lt.s32.totalorder %s3790_s7, 3 }
  0x18   : > { %p856_p2 = pnand %p3326_p0, %p855_p1 }
  0x1a   : > { %859 = sbr.rel (%p856_p2) target bundleno = 5770 (0x168a), region = 128 }
  0x1f   : > { %p975_p3 = scmp.lt.s32.totalorder %s3959_s4, 1  ;;  %s4552_s6 = sld [smem:[#allocation16_spill]] }
  0x20   : > { %s4555_s14 = sld [smem:[#allocation18_spill]] }
  0x21   : > { %s3965_s8 = scalar_select %p975_p3, %s3959_s4, 1 }
  0x22   : > { %s4556_s16 = sld [smem:[#allocation19_spill]] }
  0x23   : > { %s3968_s30 = sshll.u32 %s3965_s8, 1  ;;  %s3437_s9 = sshll.u32 %s3965_s8, 4 }
  0x24   : > { %s3635_s28 = smul.u32 48, %s3965_s8  ;;  %s3438_s1 = sshll.u32 %s3965_s8, 5 }
  0x25   : > { %s3978_s11 = scalar_lea.vmem %s4552_s6, %s3437_s9  ;;  %s1015_s26 = scalar_lea.vmem %s4511_s19, %s3965_s8 }
  0x26   : > { %4553 = sst [smem:[#allocation5_spill]] %s3978_s11  ;;  %s4001_s11 = scalar_lea.vmem %s4555_s14, %s3635_s28 }
  0x27   : > { %s4023_s27 = scalar_lea.vmem %s4512_s20, %s3635_s28  ;;  %s1024_s2 = scalar_lea.vmem %s4513_s21, %s3968_s30 }
  0x28   : > { %s4006_s24 = scalar_lea.vmem %s4556_s16, %s3438_s1  ;;  %s3636_s14 = smul.u32 96, %s3965_s8 }
  0x29   : > { %s4557_s10 = sld [smem:[#allocation20_spill]] }
  0x2a   : > { %s4558_s29 = sld [smem:[#allocation4_spill]] }
  0x2f   : > { %s4037_s16 = scalar_lea.vmem %s4557_s10, %s3636_s14 }
  0x30   : > { %p3337_p4 = scmp.ne.s32.totalorder %s4558_s29, 0 }
  0x31   : > { %s4559_s9 = sld [smem:[#allocation7_spill]] (!%p3337_p4) }
  0x32   : > { %1037 = sbr.rel (%p3337_p4) target bundleno = 620 (0x26c), region = 132  ;;  %s4560_s4 = sld [smem:[#allocation8_spill]] (!%p3337_p4) }
  0x33   : > { %s4561_s28 = sld [smem:[#allocation9_spill]] (!%p3337_p4) }
  0x34   : > { %s4562_s3 = sld [smem:[#allocation11_spill]] (!%p3337_p4) }
  0x35   : > { %s4563_s10 = sld [smem:[#allocation10_spill]] (!%p3337_p4) }
  0x36   : > { %s4564_s22 = sld [smem:[#allocation6_spill]] (!%p3337_p4) }
  0x37   : > { %v3666_v0 = vld [vmem:[%s4559_s9 + $0x38] sm:$0xff]   ;;  %v3792_v1 = vmov 0   ;;  %v3667_v2 = vld [vmem:[%s4559_s9 + $0x30] sm:$0xff]   ;;  %v3793_v3 = vmov 0.0   ;;  %vm1254_vm0 = vcmask 385024   ;;  %vm3794_vm1 = vmmov 0  }
  0x38   : > { %1142 = vmatprep.subr.bf16.mxu0 %v3792_v1  ;;  %3489 = vmatprep.subr.bf16.mxu1 %v3793_v3  ;;  %1262 = vst.msk [vmem:[#allocation2 + $0x7] sm:$0x1] %vm1254_vm0, %v3793_v3  ;;  %1276 = vst.msk [vmem:[#allocation2 + $0xf] sm:$0x1] %vm1254_vm0, %v3793_v3  ;;  %v3668_v4 = vld [vmem:[%s4559_s9 + $0x28] sm:$0xff]   ;;  %v3669_v5 = vld [vmem:[%s4559_s9 + $0x20] sm:$0xff]  }
  0x39   : > { %1143 = vmatpush1.bf16.msra.mxu0 %v3666_v0  ;;  %3493 = vmatprep.mubr.msk.bf16.mxu1 %vm3794_vm1, %v3793_v3  ;;  %v1251_v6 = vld [vmem:[%s4560_s4] sm:$0x1]  ;;  %v3670_v14 = vld [vmem:[%s4559_s9 + $0x18] sm:$0xff]   ;;  %vm1138_vm2 = vcmask 523264   ;;  %vm1207_vm3 = vcmask 261120   ;;  %v3671_v19 = vld [vmem:[%s4559_s9 + $0x10] sm:$0xff]  }
  0x3a   : > { %1144 = vmatprep.subr.bf16.mxu0 %v3792_v1  ;;  %v1252_v7 = vld [vmem:[%s4561_s28] sm:$0x1]  ;;  %v3675_v12 = vld [vmem:[%s4562_s3 + $0x8] sm:$0xff]   ;;  %v3674_v22 = vld [vmem:[%s4559_s9 + $0x58] sm:$0xff]   ;;  %s4565_s5 = sld [smem:[#allocation12_spill]]  ;;  %vm1260_vm4 = vcmask 386048  }
  0x3b   : > { %v1263_v8 = vld [vmem:[%s4560_s4] sm:$0x1]  ;;  %v1253_v9 = vadd.f32 %v1252_v7, %v1251_v6  ;;  %3490 = vmatpush3.bf16.msra.mxu1 %v3675_v12  ;;  %v3672_v20 = vld [vmem:[%s4559_s9 + $0x8] sm:$0xff]   ;;  %v3676_v23 = vld [vmem:[%s4559_s9 + $0x50] sm:$0xff]   ;;  %vm1258_vm5 = vcmask 388096   ;;  %vm1273_vm6 = vcmask 392196  }
  0x3c   : > { %v1264_v10 = vld [vmem:[%s4561_s28] sm:$0x1]  ;;  %3491 = vmatprep.subr.bf16.mxu1 %v3793_v3  ;;  %v1039_v16 = vld [vmem:[%s4564_s22 + $0x8] sm:$0xff]  ;;  %v1268_v34 = vld [vmem:[%s4561_s28 + $0x1] sm:$0xf]  ;;  %vm1281_vm7 = vcmask 392192  }
  0x3d   : > { %1145 = vmatpush1.bf16.msra.mxu0 %v3667_v2  ;;  %v1265_v11 = vadd.f32 %v1264_v10, %v1263_v8  ;;  %1255 = vst.msk [vmem:[#allocation2] sm:$0x1] %vm1254_vm0, %v1253_v9  ;;  %v3677_v13 = vld [vmem:[%s4562_s3] sm:$0xff]   ;;  %v1065_v18 = vpack.c.bf16 %v1039_v16, %v1039_v16  ;;  %v3678_v24 = vld [vmem:[%s4559_s9 + $0x48] sm:$0xff]   ;;  %v1270_v35 = vrot.slane %v1268_v34, 4  ;;  %s4566_s1 = sld [smem:[#allocation13_spill]] }
  0x3e   : > { %1146 = vmatprep.subr.bf16.mxu0 %v3792_v1  ;;  %v1182_v15 = vld [vmem:[%s4563_s10] sm:$0x3]  ;;  %s4567_s29 = sld [smem:[#allocation14_spill]] }
  0x3f   : > { %1267 = vst.msk [vmem:[#allocation2 + $0x8] sm:$0x1] %vm1254_vm0, %v1265_v11  ;;  %v1187_v17 = vpack.c.bf16 %v1182_v15, %v1182_v15  ;;  %3492 = vmatpush3.bf16.msra.mxu1 %v3677_v13  ;;  %3350 = vmatprep.mubr.msk.bf16.mxu0 %vm1138_vm2, %v1065_v18  ;;  %v3673_v21 = vld [vmem:[%s4559_s9] sm:$0xff]  }
  0x40   : > { %v3679_v25 = vld [vmem:[%s4559_s9 + $0x40] sm:$0xff]  }
  0x41   : > { %1147 = vmatpush1.bf16.msra.mxu0 %v3668_v4  ;;  %v1038_v26 = vld [vmem:[%s4564_s22] sm:$0xff] }
  0x42   : > { %1148 = vmatprep.subr.bf16.mxu0 %v3792_v1  ;;  %3494 = vmatmul.mubr.msk.bf16.vlgmr.msra.gmra.mxu1 %vm1207_vm3, %v1187_v17  ;;  %v1064_v27 = vpack.c.bf16 %v1038_v26, %v1038_v26  ;;  %v3351_v28 = vld [vmem:[%s4565_s5] ss:$0 sm:$0xff]  ;;  %v1256_v36 = vld [vmem:[%s4561_s28 + $0x1] sm:$0xf] }
  0x43   : > { %v3355_v0 = vld [vmem:[%s4566_s1] ss:$0 sm:$0xff] }
  0x44   : > { %v3356_v2 = vld [vmem:[%s4567_s29] ss:$0 sm:$0xff] }
  0x45   : > { %1149 = vmatpush1.bf16.msra.mxu0 %v3669_v5 }
  0x46   : > { %1150 = vmatprep.subr.bf16.mxu0 %v3792_v1 }
  0x49   : > { %1151 = vmatpush1.bf16.msra.mxu0 %v3670_v14 }
  0x4a   : > { %1152 = vmatprep.subr.bf16.mxu0 %v3792_v1 }
  0x4d   : > { %1153 = vmatpush1.bf16.msra.mxu0 %v3671_v19 }
  0x4e   : > { %1154 = vmatprep.subr.bf16.mxu0 %v3792_v1 }
  0x51   : > { %1155 = vmatpush1.bf16.msra.mxu0 %v3672_v20 }
  0x52   : > { %1156 = vmatprep.subr.bf16.mxu0 %v3792_v1 }
  0x55   : > { %1157 = vmatpush1.bf16.msra.mxu0 %v3673_v21 }
  0x56   : > { %1166 = vmatprep.subr.bf16.mxu0 %v3792_v1 }
  0x59   : > { %1167 = vmatpush2.bf16.msra.mxu0 %v3674_v22 }
  0x5a   : > { %1168 = vmatprep.subr.bf16.mxu0 %v3792_v1 }
  0x5d   : > { %1169 = vmatpush2.bf16.msra.mxu0 %v3676_v23 }
  0x5e   : > { %1170 = vmatprep.subr.bf16.mxu0 %v3792_v1 }
  0x61   : > { %1171 = vmatpush2.bf16.msra.mxu0 %v3678_v24 }
  0x62   : > { %1172 = vmatprep.subr.bf16.mxu0 %v3792_v1 }
  0x65   : > { %1173 = vmatpush2.bf16.msra.mxu0 %v3679_v25 }
  0x68   : > { %1175 = vmatmul.mubr.bf16.vlgmr.msra.gmra.mxu0 %v1064_v27 }
 0x102   : > { %v1245_v29 = vpop.f32.mrf.mxu1 }
 0x103   : > { %v1246_v30 = vadd.f32 %v3351_v28, %v1245_v29 }
 0x104   : > { %v3495_v31 = vpop.f32.mrf.mxu1 }
 0x105   : > { %1261 = vst.msk [vmem:[#allocation2 + $0x5] sm:$0x3] %vm1260_vm4, %v1246_v30  ;;  %1275 = vst.msk [vmem:[#allocation2 + $0xd] sm:$0x3] %vm1260_vm4, %v1246_v30 }
 0x106   : > { %v1248_v32 = vpop.f32.mrf.mxu1 }
 0x108   : > { %v3496_v33 = vpop.f32.mrf.mxu1 }
 0x128   : > { %v1176_v37 = vpop.f32.mrf.mxu0 }
 0x129   : > { %v1257_v38 = vadd.f32 %v1256_v36, %v1176_v37  ;;  %v1272_v39 = vadd.f32 %v1270_v35, %v1176_v37 }
 0x12a   : > { %v1178_v40 = vpop.f32.mrf.mxu0 }
 0x12b   : > { %1259 = vst.msk [vmem:[#allocation2 + $0x1] sm:$0xf] %vm1258_vm5, %v1257_v38 }
 0x12c   : > { %1274 = vst.msk [vmem:[#allocation2 + $0x5] sm:$0xf0] %vm1273_vm6, %v1272_v39  ;;  %v1179_v41 = vpop.f32.mrf.mxu0 }
 0x12e   : > { %v1180_v42 = vpop.f32.mrf.mxu0 }
 0x132   : > { %v1277_v43 = vld [vmem:[#allocation2] sm:$0xff] }
 0x133   : > { %v1282_v44 = vsel %vm1281_vm7, %v1277_v43, 0.0  ;;  %v1278_v45 = vld [vmem:[#allocation2 + $0x8] sm:$0xff] }
 0x134   : > { %1283 = vadd.xlane.f32.xlu0 %v1282_v44  ;;  %v1285_v46 = vsel %vm1281_vm7, %v1278_v45, 0.0 }
 0x138   : > { %1286 = vadd.xlane.f32.xlu0 %v1285_v46 }
 0x1bd   : > { %v1284_v47 = vpop.xlane.xlu0 %1283 }
 0x1be   : > { %v1289_v48 = vmul.f32 0.020833334, %v1284_v47 }
 0x1c0   : > { %v1291_v49 = vsub.f32 %v1277_v43, %v1289_v48 }
 0x1c1   : > { %v1287_v50 = vpop.xlane.xlu0 %1286 }
 0x1c2   : > { %v1290_v51 = vmul.f32 0.020833334, %v1287_v50  ;;  %v1293_v52 = vmul.f32 %v1291_v49, %v1291_v49 }
 0x1c4   : > { %v1292_v53 = vsub.f32 %v1278_v45, %v1290_v51  ;;  %v1295_v54 = vsel %vm1281_vm7, %v1293_v52, 0.0 }
 0x1c5   : > { %1296 = vadd.xlane.f32.xlu1 %v1295_v54 }
 0x1c6   : > { %v1294_v55 = vmul.f32 %v1292_v53, %v1292_v53 }
 0x1c8   : > { %v1298_v56 = vsel %vm1281_vm7, %v1294_v55, 0.0 }
 0x1c9   : > { %1299 = vadd.xlane.f32.xlu1 %v1298_v56 }
 0x24e   : > { %v1297_v57 = vpop.xlane.xlu1 %1296 }
 0x24f   : > { %v1301_v58 = vmul.f32 0.020833334, %v1297_v57 }
 0x251   : > { %v1303_v59 = vadd.f32 1e-05, %v1301_v58 }
 0x252   : > { %v1300_v60 = vpop.xlane.xlu1 %1299 }
 0x253   : > { %3680 = vrsqrt.f32 %v1303_v59  ;;  %v1302_v61 = vmul.f32 0.020833334, %v1300_v60 }
 0x255   : > { %v1304_v62 = vadd.f32 1e-05, %v1302_v61 }
 0x257   : > { %3682 = vrsqrt.f32 %v1304_v62 }
 0x260   : > { %v3681_v63 = vpop.eup %3680 }
 0x261   : > { %v1307_v1 = vmul.f32 %v3681_v63, %v1291_v49 }
 0x263   : > { %v1315_v3 = vmul.f32 %v3355_v0, %v1307_v1 }
 0x264   : > { %v3683_v4 = vpop.eup %3682 }
 0x265   : > { %v1323_v5 = vadd.f32 %v3356_v2, %v1315_v3  ;;  %v1308_v6 = vmul.f32 %v3683_v4, %v1292_v53 }
 0x267   : > { %1325 = vst.msk [vmem:[#allocation2] sm:$0xff] %vm1281_vm7, %v1323_v5  ;;  %v1316_v7 = vmul.f32 %v3355_v0, %v1308_v6 }
 0x269   : > { %v1324_v8 = vadd.f32 %v3356_v2, %v1316_v7 }
 0x26b   : > { %1326 = vst.msk [vmem:[#allocation2 + $0x8] sm:$0xff] %vm1281_vm7, %v1324_v8 }
 0x26c PF: > { %s4568_s0 = sld [smem:[#allocation4_spill]] }
 0x272   : > { %p1327_p5 = scmp.ge.s32.totalorder %s4568_s0, 1  ;;  %p1328_p6 = scmp.lt.s32.totalorder %s4568_s0, 2 }
 0x274   : > { %p1329_p7 = pnand %p1328_p6, %p1327_p5 }
 0x275   : > { %s4569_s6 = sld [smem:[#allocation5_spill]] (!%p1329_p7) }
 0x276   : > { %1332 = sbr.rel (%p1329_p7) target bundleno = 843 (0x34b), region = 136  ;;  %s4570_s10 = sld [smem:[#allocation15_spill]] (!%p1329_p7) }
 0x277   : > { %s4572_s29 = sld [smem:[#allocation17_spill]] (!%p1329_p7) }
 0x27b   : > { %v3684_v9 = vld [vmem:[%s4569_s6 + $0x8] sm:$0xff]   ;;  %v3795_v10 = vmov 0.0   ;;  %v3685_v11 = vld [vmem:[%s4569_s6] sm:$0xff]   ;;  %vm3796_vm8 = vmmov 0   ;;  %vm1358_vm9 = vcmask 261120   ;;  %vm1402_vm10 = vcmask 386048  }
 0x27c   : > { %3497 = vmatprep.subr.bf16.mxu0 %v3795_v10  ;;  %3501 = vmatprep.mubr.msk.bf16.mxu0 %vm3796_vm8, %v3795_v10  ;;  %s4571_s1 = scalar_lea.vmem %s4570_s10, %s3968_s30 }
 0x27d   : > { %3498 = vmatpush3.bf16.msra.mxu0 %v3684_v9  ;;  %v1333_v12 = vld [vmem:[%s4571_s1] sm:$0x3]  ;;  %s4573_s0 = scalar_lea.vmem %s4572_s29, %s3965_s8 }
 0x27e   : > { %3499 = vmatprep.subr.bf16.mxu0 %v3795_v10  ;;  %v1338_v13 = vpack.c.bf16 %v1333_v12, %v1333_v12  ;;  %v3357_v14 = vld [vmem:[%s4573_s0] ss:$0 sm:$0xff] }
 0x281   : > { %3500 = vmatpush3.bf16.msra.mxu0 %v3685_v11 }
 0x284   : > { %3502 = vmatmul.mubr.msk.bf16.vlgmr.msra.gmra.mxu0 %vm1358_vm9, %v1338_v13 }
 0x344   : > { %v1396_v15 = vpop.f32.mrf.mxu0 }
 0x345   : > { %v1397_v16 = vadd.f32 %v3357_v14, %v1396_v15 }
 0x346   : > { %v3503_v17 = vpop.f32.mrf.mxu0 }
 0x347   : > { %1403 = vst.msk [vmem:[#allocation2 + $0x5] sm:$0x3] %vm1402_vm10, %v1397_v16  ;;  %1405 = vst.msk [vmem:[#allocation2 + $0xd] sm:$0x3] %vm1402_vm10, %v1397_v16 }
 0x348   : > { %v1399_v18 = vpop.f32.mrf.mxu0 }
 0x34a   : > { %v3504_v19 = vpop.f32.mrf.mxu0 }
 0x34b PF: > { %vm1414_vm11 = vcmask 392192   ;;  %v3686_v34 = vld [vmem:[%s4001_s11 + $0x24] ss:$8 sps:$4 sm:$0xff]   ;;  %v3688_v35 = vld [vmem:[%s4001_s11 + $0x20] ss:$8 sps:$4 sm:$0xff]   ;;  %v3797_v38 = vmov 0   ;;  %s4574_s7 = scalar_lea.vmem %s4504_s12, %s3965_s8  ;;  %s4575_s1 = scalar_lea.vmem %s4505_s13, %s3965_s8  ;;  %v1406_v59 = vlaneseq }
 0x34c   : > { %v3689_v36 = vld [vmem:[%s4001_s11 + $0x14] ss:$8 sps:$4 sm:$0xff]   ;;  %1520 = vmatprep.subr.bf16.mxu0 %v3686_v34  ;;  %v3691_v37 = vld [vmem:[%s4001_s11 + $0x10] ss:$8 sps:$4 sm:$0xff]   ;;  %1542 = vmatprep.mubr.bf16.mxu0 %v3797_v38  ;;  %v3692_v39 = vld [vmem:[%s4001_s11 + $0x4] ss:$8 sps:$4 sm:$0xff]   ;;  %s4576_s29 = scalar_lea.vmem %s4507_s15, %s3968_s30 }
 0x34d   : > { %1521 = vmatpush1.bf16.msra.mxu0 %v3688_v35  ;;  %v3694_v40 = vld [vmem:[%s4001_s11] ss:$8 sps:$4 sm:$0xff]   ;;  %v3798_v41 = vmov 0.0   ;;  %v4170_v60 = vshrl.u32 %v1406_v59, 7  ;;  %vm3799_vm12 = vmmov 0   ;;  %s3800_s0 = smov 80  }
 0x34e   : > { %v4142_v20 = vld [vmem:[#allocation2] sm:$0xff]  ;;  %v1411_v21 = vld [vmem:[#allocation2 + $0x8] sm:$0xff]  ;;  %1522 = vmatprep.subr.bf16.mxu0 %v3689_v36  ;;  %3523 = vmatprep.subr.bf16.mxu1 %v3798_v41  ;;  %vm1558_vm13 = vcmask 97280   ;;  %v1407_v11 = vand.u32 127, %v1406_v59  ;;  %vm1658_vm15 = vcmask 64512   ;;  %s3801_s11 = smov 32  }
 0x34f   : > { %v1415_v22 = vsel %vm1414_vm11, %v4142_v20, 0.0  ;;  %v1418_v23 = vsel %vm1414_vm11, %v1411_v21, 0.0  ;;  %v3361_v50 = vld [vmem:[%s4574_s7] ss:$0 sm:$0xff]  ;;  %v1469_v61 = vsub.s32 0, %v4170_v60  ;;  %3525 = vmatprep.mubr.msk.bf16.mxu1 %vm3799_vm12, %v3798_v41  ;;  %s3802_s6 = smov 68  }
 0x350   : > { %1416 = vadd.xlane.f32.xlu0 %v1415_v22  ;;  %v3362_v54 = vld [vmem:[%s4575_s1] ss:$0 sm:$0xff]  ;;  %vm1408_vm14 = vcmp.ge.s32.totalorder %v1407_v11, 7  ;;  %vm1688_vm0 = vcmask 1043456   ;;  %s3803_s7 = smov 116   ;;  %s3804_s14 = smov 20  }
 0x351   : > { %1523 = vmatpush1.bf16.msra.mxu0 %v3691_v37  ;;  %v4178_v62 = vld [vmem:[%s4576_s29] sm:$0x3]  ;;  %v4210_v13 = vsel %vm1408_vm14, -1e+09, %v3798_v41  ;;  %s3805_s10 = smov 56   ;;  %s3806_s1 = smov 104  }
 0x352   : > { %1524 = vmatprep.subr.bf16.mxu0 %v3692_v39  ;;  %v1470_v63 = vrot.slane %v4178_v62, %v1469_v61  ;;  %vm2019_vm1 = vcmask 1045504   ;;  %s3807_s25 = smov 8   ;;  %s3808_s5 = smov 44   ;;  %vm2980_vm2 = vcmask 523264  }
 0x353   : > { %s3809_s29 = smov 92  }
 0x354   : > { %1419 = vadd.xlane.f32.xlu0 %v1418_v23 }
 0x355   : > { %1525 = vmatpush1.bf16.msra.mxu0 %v3694_v40 }
 0x356   : > { %3505 = vmatprep.subr.bf16.mxu0 %v3798_v41 }
 0x3d9   : > { %v1417_v24 = vpop.xlane.xlu0 %1416 }
 0x3da   : > { %v1422_v25 = vmul.f32 0.020833334, %v1417_v24 }
 0x3dc   : > { %v1424_v26 = vsub.f32 %v4142_v20, %v1422_v25 }
 0x3dd   : > { %v1420_v27 = vpop.xlane.xlu0 %1419 }
 0x3de   : > { %v1423_v28 = vmul.f32 0.020833334, %v1420_v27  ;;  %v1426_v29 = vmul.f32 %v1424_v26, %v1424_v26 }
 0x3e0   : > { %v1425_v30 = vsub.f32 %v1411_v21, %v1423_v28  ;;  %v1428_v31 = vsel %vm1414_vm11, %v1426_v29, 0.0 }
 0x3e1   : > { %1429 = vadd.xlane.f32.xlu1 %v1428_v31 }
 0x3e2   : > { %v1427_v32 = vmul.f32 %v1425_v30, %v1425_v30 }
 0x3e4   : > { %v1431_v33 = vsel %vm1414_vm11, %v1427_v32, 0.0 }
 0x3e5   : > { %1432 = vadd.xlane.f32.xlu1 %v1431_v33 }
 0x46a   : > { %v1430_v42 = vpop.xlane.xlu1 %1429 }
 0x46b   : > { %v1434_v43 = vmul.f32 0.020833334, %v1430_v42 }
 0x46d   : > { %v1436_v44 = vadd.f32 1e-05, %v1434_v43 }
 0x46e   : > { %v1433_v45 = vpop.xlane.xlu1 %1432 }
 0x46f   : > { %3720 = vrsqrt.f32 %v1436_v44  ;;  %v1435_v46 = vmul.f32 0.020833334, %v1433_v45 }
 0x471   : > { %v1437_v47 = vadd.f32 1e-05, %v1435_v46 }
 0x473   : > { %3722 = vrsqrt.f32 %v1437_v47 }
 0x47c   : > { %v3721_v48 = vpop.eup %3720 }
 0x47d   : > { %v1440_v49 = vmul.f32 %v3721_v48, %v1424_v26 }
 0x47f   : > { %v1448_v53 = vmul.f32 %v3361_v50, %v1440_v49 }
 0x480   : > { %v3723_v51 = vpop.eup %3722 }
 0x481   : > { %v1441_v52 = vmul.f32 %v3723_v51, %v1425_v30  ;;  %v1456_v56 = vadd.f32 %v3362_v54, %v1448_v53 }
 0x483   : > { %v1449_v55 = vmul.f32 %v3361_v50, %v1441_v52 }
 0x485   : > { %v1457_v57 = vadd.f32 %v3362_v54, %v1449_v55 }
 0x487   : > { %v1458_v58 = vpack.c.bf16 %v1457_v57, %v1456_v56 }
 0x489   : > { %3369 = vmatmul.mubr.msk.bf16.vlgmr.msra.gmra.mxu0 %vm1414_vm11, %v1458_v58 }
 0x48a   : > { %3507 = vmatprep.mubr.msk.bf16.mxu0 %vm3799_vm12, %v3798_v41 }
 0x549   : > { %v1544_v0 = vpop.f32.mrf.mxu0 }
 0x54a   : > { %v1545_v1 = vadd.f32 %v1544_v0, %v1470_v63 }
 0x54b   : > { %v4187_v2 = vpop.f32.mrf.mxu0 }
 0x54c   : > { %v4189_v3 = vpack.c.bf16 %v1545_v1, %v1545_v1 }
 0x54d   : > { %v1548_v4 = vpop.f32.mrf.mxu0 }
 0x54e   : > { %v1549_v5 = vadd.f32 %v1548_v4, %v1470_v63  ;;  %1556 = vrot.lane.b32.xlu0 %v4189_v3, %s3800_s0 }
 0x54f   : > { %v4207_v12 = vpop.f32.mrf.mxu0 }
 0x550   : > { %v4192_v6 = vpack.c.bf16 %v1549_v5, %v1549_v5 }
 0x552   : > { %1606 = vrot.lane.b32.xlu1 %v4192_v6, %s3800_s0  ;;  %s3810_s0 = smov 124  }
 0x5c0   : > { %v1557_v7 = vpop.permute.xlu0 %1556 }
 0x5c1   : > { %v1563_v8 = vsel %vm1558_vm13, %v1557_v7, 0 }
 0x5c2   : > { %3506 = vmatpush3.bf16.xpose.msra.mxu0 %v1563_v8 }
 0x5c3   : > { %3511 = vmatprep.subr.bf16.mxu0 %v3798_v41 }
 0x5c4   : > { %v1607_v9 = vpop.permute.xlu1 %1606 }
 0x5c5   : > { %v1612_v10 = vsel %vm1558_vm13, %v1607_v9, 0 }
 0x5c9   : > { %3508 = vmatmul.mubr.msk.bf16.vlgmr.msra.gmra.mxu0 %vm1558_vm13, %v4189_v3 }
 0x5ca   : > { %3512 = vmatpush3.bf16.xpose.msra.mxu0 %v1612_v10  ;;  %3513 = vmatprep.mubr.msk.bf16.mxu0 %vm3799_vm12, %v3798_v41 }
 0x5cb   : > { %3517 = vmatprep.subr.bf16.mxu0 %v3798_v41 }
 0x5d1   : > { %3514 = vmatmul.mubr.msk.bf16.vlgmr.msra.gmra.mxu0 %vm1558_vm13, %v4192_v6 }
 0x5d2   : > { %3519 = vmatprep.mubr.msk.bf16.mxu0 %vm3799_vm12, %v3798_v41 }
 0x689   : > { %v1599_v14 = vpop.f32.mrf.mxu0 }
 0x68a   : > { %v1654_v15 = vmul.f32 0.28867513, %v1599_v14 }
 0x68b   : > { %v3509_v16 = vpop.f32.mrf.mxu0 }
 0x68c   : > { %v1656_v17 = vadd.f32 %v1654_v15, %v4210_v13 }
 0x68d   : > { %v1602_v18 = vpop.f32.mrf.mxu0 }
 0x68e   : > { %v1659_v19 = vsel %vm1658_vm15, %v1656_v17, -inf }
 0x68f   : > { %v3510_v21 = vpop.f32.mrf.mxu0  ;;  %1660 = vmax.xlane.f32.xlu1 %v1659_v19 }
 0x691   : > { %v1648_v22 = vpop.f32.mrf.mxu0 }
 0x692   : > { %v1655_v23 = vmul.f32 0.28867513, %v1648_v22 }
 0x693   : > { %v3515_v24 = vpop.f32.mrf.mxu0 }
 0x694   : > { %v1657_v25 = vadd.f32 %v1655_v23, %v4210_v13 }
 0x695   : > { %v1651_v26 = vpop.f32.mrf.mxu0 }
 0x696   : > { %v1662_v27 = vsel %vm1658_vm15, %v1657_v25, -inf }
 0x697   : > { %v3516_v28 = vpop.f32.mrf.mxu0  ;;  %1663 = vmax.xlane.f32.xlu0 %v1662_v27 }
 0x6a0   : > { %1732 = vrot.lane.b32.xlu1 %v4192_v6, %s3801_s11 }
 0x6a4   : > { %1785 = vrot.lane.b32.xlu1 %v4189_v3, %s3802_s6 }
 0x718   : > { %v1661_v29 = vpop.xlane.xlu1 %1660 }
 0x719   : > { %v1665_v30 = vsub.f32 %v1656_v17, %v1661_v29 }
 0x71b   : > { %v1667_v31 = vmul.f32 1.442695, %v1665_v30 }
 0x71c   : > { %v1733_v32 = vpop.permute.xlu1 %1732 }
 0x71d   : > { %3724 = vpow2.f32 %v1667_v31  ;;  %v1738_v33 = vsel %vm1688_vm0, %v1733_v32, 0 }
 0x71e   : > { %3524 = vmatpush3.bf16.msra.mxu1 %v1738_v33 }
 0x71f   : > { %3535 = vmatprep.subr.bf16.mxu1 %v3798_v41 }
 0x720   : > { %v1664_v34 = vpop.xlane.xlu0 %1663  ;;  %v1786_v44 = vpop.permute.xlu1 %1785 }
 0x721   : > { %v1666_v35 = vsub.f32 %v1657_v25, %v1664_v34  ;;  %v1791_v51 = vsel %vm1558_vm13, %v1786_v44, 0 }
 0x723   : > { %v1669_v36 = vmul.f32 1.442695, %v1666_v35 }
 0x725   : > { %3726 = vpow2.f32 %v1669_v36 }
 0x72a   : > { %v3725_v37 = vpop.eup %3724 }
 0x72b   : > { %v1671_v39 = vsel %vm1658_vm15, %v3725_v37, 0.0 }
 0x72c   : > { %1672 = vadd.xlane.f32.xlu0 %v1671_v39 }
 0x732   : > { %v3727_v40 = vpop.eup %3726 }
 0x733   : > { %v1674_v42 = vsel %vm1658_vm15, %v3727_v40, 0.0 }
 0x734   : > { %1675 = vadd.xlane.f32.xlu1 %v1674_v42 }
 0x742   : > { %1683 = vrot.lane.b32.xlu0 %v4189_v3, %s3801_s11 }
 0x745   : > { %1835 = vrot.lane.b32.xlu1 %v4192_v6, %s3802_s6 }
 0x746   : > { %1783 = vrot.lane.b32.xlu0 %v4189_v3, %s3803_s7 }
 0x749   : > { %1833 = vrot.lane.b32.xlu1 %v4192_v6, %s3803_s7 }
 0x7b5   : > { %v1673_v43 = vpop.xlane.xlu0 %1672 }
 0x7b6   : > { %3728 = vrcp.f32 %v1673_v43 }
 0x7b9   : > { %v1684_v45 = vpop.permute.xlu0 %1683 }
 0x7ba   : > { %v1690_v46 = vsel %vm1688_vm0, %v1684_v45, 0 }
 0x7bb   : > { %3518 = vmatpush3.bf16.msra.mxu0 %v1690_v46 }
 0x7bc   : > { %3529 = vmatprep.subr.bf16.mxu0 %v3798_v41 }
 0x7bd   : > { %v1676_v47 = vpop.xlane.xlu1 %1675  ;;  %v1784_v56 = vpop.permute.xlu0 %1783 }
 0x7be   : > { %3730 = vrcp.f32 %v1676_v47 }
 0x7c1   : > { %v1836_v54 = vpop.permute.xlu1 %1835 }
 0x7c2   : > { %v1841_v57 = vsel %vm1558_vm13, %v1836_v54, 0 }
 0x7c3   : > { %v3729_v48 = vpop.eup %3728 }
 0x7c4   : > { %v1679_v49 = vmul.f32 %v3729_v48, %v3725_v37  ;;  %v3695_v48 = vld [vmem:[%s4006_s24] sm:$0x3f]  }
 0x7c5   : > { %v1834_v58 = vpop.permute.xlu1 %1833 }
 0x7c6   : > { %v1681_v50 = vpack.c.bf16 %v1679_v49, %v1679_v49 }
 0x7c8   : > { %3520 = vmatmul.mubr.msk.bf16.vlgmr.msra.gmra.mxu0 %vm1658_vm15, %v1681_v50 }
 0x7c9   : > { %3530 = vmatpush3.bf16.xpose.msra.mxu0 %v1791_v51  ;;  %3531 = vmatprep.mubr.msk.bf16.mxu0 %vm3799_vm12, %v3798_v41 }
 0x7ca   : > { %3541 = vmatprep.subr.bf16.mxu0 %v3798_v41 }
 0x7cb   : > { %v3731_v52 = vpop.eup %3730 }
 0x7cc   : > { %v1680_v53 = vmul.f32 %v3731_v52, %v3727_v40  ;;  %v2073_v52 = vsel %vm2019_vm1, %v3695_v48, 0 }
 0x7ce   : > { %v1682_v55 = vpack.c.bf16 %v1680_v53, %v1680_v53 }
 0x7d0   : > { %3526 = vmatmul.mubr.msk.bf16.vlgmr.msra.gmra.mxu1 %vm1658_vm15, %v1682_v55  ;;  %3532 = vmatmul.mubr.msk.bf16.vlgmr.msra.gmra.mxu0 %vm1558_vm13, %v1784_v56 }
 0x7d1   : > { %3536 = vmatpush3.bf16.xpose.msra.mxu1 %v1841_v57  ;;  %3537 = vmatprep.mubr.msk.bf16.mxu1 %vm3799_vm12, %v3798_v41  ;;  %v3696_v57 = vld [vmem:[%s4006_s24 + $0x8] sm:$0x3f]  }
 0x7d2   : > { %3547 = vmatprep.subr.bf16.mxu1 %v3798_v41  ;;  %3543 = vmatprep.mubr.msk.bf16.mxu0 %vm3799_vm12, %v3798_v41 }
 0x7d8   : > { %3538 = vmatmul.mubr.msk.bf16.vlgmr.msra.gmra.mxu1 %vm1558_vm13, %v1834_v58  ;;  %v2021_v58 = vsel %vm2019_vm1, %v3696_v57, 0 }
 0x7d9   : > { %3549 = vmatprep.mubr.msk.bf16.mxu1 %vm3799_vm12, %v3798_v41 }
 0x888   : > { %v4244_v59 = vpop.f32.mrf.mxu0 }
 0x88a   : > { %v3521_v63 = vpop.f32.mrf.mxu0 }
 0x88c   : > { %v1729_v0 = vpop.f32.mrf.mxu0 }
 0x88e   : > { %v3522_v1 = vpop.f32.mrf.mxu0 }
 0x890   : > { %v4246_v4 = vpop.f32.mrf.mxu1  ;;  %v1827_v5 = vpop.f32.mrf.mxu0 }
 0x891   : > { %v1780_v7 = vpack.c.bf16 %v4246_v4, %v4244_v59  ;;  %v1883_v8 = vmul.f32 0.28867513, %v1827_v5 }
 0x892   : > { %v3527_v9 = vpop.f32.mrf.mxu1  ;;  %v3533_v10 = vpop.f32.mrf.mxu0 }
 0x893   : > { %v1885_v11 = vadd.f32 %v1883_v8, %v4210_v13 }
 0x894   : > { %v1777_v14 = vpop.f32.mrf.mxu1  ;;  %v1830_v15 = vpop.f32.mrf.mxu0 }
 0x895   : > { %v1887_v16 = vsel %vm1658_vm15, %v1885_v11, -inf }
 0x896   : > { %1888 = vmax.xlane.f32.xlu0 %v1887_v16  ;;  %v3528_v17 = vpop.f32.mrf.mxu1  ;;  %v3534_v18 = vpop.f32.mrf.mxu0 }
 0x898   : > { %v1877_v19 = vpop.f32.mrf.mxu1 }
 0x899   : > { %v1884_v21 = vmul.f32 0.28867513, %v1877_v19 }
 0x89a   : > { %v3539_v22 = vpop.f32.mrf.mxu1 }
 0x89b   : > { %v1886_v23 = vadd.f32 %v1884_v21, %v4210_v13 }
 0x89c   : > { %v1880_v24 = vpop.f32.mrf.mxu1 }
 0x89d   : > { %v1890_v25 = vsel %vm1658_vm15, %v1886_v23, -inf }
 0x89e   : > { %1891 = vmax.xlane.f32.xlu1 %v1890_v25  ;;  %v3540_v26 = vpop.f32.mrf.mxu1 }
 0x89f   : > { %v1473_v26 = vsub.s32 1, %v4170_v60 }
 0x8af   : > { %1959 = vrot.lane.b32.xlu1 %v4192_v6, %s3804_s14 }
 0x8b3   : > { %2118 = vrot.lane.b32.xlu1 %v4189_v3, %s3805_s10 }
 0x8b7   : > { %2168 = vrot.lane.b32.xlu1 %v4192_v6, %s3805_s10  ;;  %s4578_s10 = scalar_lea.vmem %s4510_s18, %s3965_s8 }
 0x8bb   : > { %2166 = vrot.lane.b32.xlu1 %v4192_v6, %s3806_s1 }
 0x91f   : > { %v1889_v27 = vpop.xlane.xlu0 %1888 }
 0x920   : > { %v1893_v28 = vsub.f32 %v1885_v11, %v1889_v27  ;;  %v1474_v27 = vrot.slane %v4178_v62, %v1473_v26 }
 0x922   : > { %v1895_v29 = vmul.f32 1.442695, %v1893_v28  ;;  %v1547_v28 = vadd.f32 %v4187_v2, %v1474_v27 }
 0x924   : > { %3732 = vpow2.f32 %v1895_v29  ;;  %v4308_v29 = vpack.c.bf16 %v1547_v28, %v1547_v28 }
 0x927   : > { %v1892_v30 = vpop.xlane.xlu1 %1891 }
 0x928   : > { %v1894_v31 = vsub.f32 %v1886_v23, %v1892_v30  ;;  %v1551_v30 = vadd.f32 %v4207_v12, %v1474_v27 }
 0x92a   : > { %v1897_v32 = vmul.f32 1.442695, %v1894_v31  ;;  %v4315_v31 = vpack.c.bf16 %v1551_v30, %v1551_v30 }
 0x92b   : > { %v1960_v33 = vpop.permute.xlu1 %1959 }
 0x92c   : > { %3734 = vpow2.f32 %v1897_v32  ;;  %v1965_v34 = vsel %vm1688_vm0, %v1960_v33, 0 }
 0x92d   : > { %3548 = vmatpush3.bf16.msra.mxu1 %v1965_v34 }
 0x92e   : > { %3559 = vmatprep.subr.bf16.mxu1 %v3798_v41 }
 0x92f   : > { %v2119_v53 = vpop.permute.xlu1 %2118 }
 0x930   : > { %v2124_v8 = vsel %vm1558_vm13, %v2119_v53, 0 }
 0x931   : > { %v3733_v35 = vpop.eup %3732 }
 0x932   : > { %v1899_v36 = vsel %vm1658_vm15, %v3733_v35, 0.0 }
 0x933   : > { %1900 = vadd.xlane.f32.xlu0 %v1899_v36  ;;  %v2169_v54 = vpop.permute.xlu1 %2168 }
 0x934   : > { %v2174_v55 = vsel %vm1558_vm13, %v2169_v54, 0 }
 0x937   : > { %v2167_v56 = vpop.permute.xlu1 %2166 }
 0x939   : > { %v3735_v37 = vpop.eup %3734 }
 0x93a   : > { %v1902_v39 = vsel %vm1658_vm15, %v3735_v37, 0.0 }
 0x93b   : > { %1903 = vadd.xlane.f32.xlu0 %v1902_v39 }
 0x951   : > { %1911 = vrot.lane.b32.xlu0 %v4189_v3, %s3804_s14 }
 0x955   : > { %2116 = vrot.lane.b32.xlu0 %v4189_v3, %s3806_s1 }
 0x9bc   : > { %v1901_v40 = vpop.xlane.xlu0 %1900 }
 0x9bd   : > { %3736 = vrcp.f32 %v1901_v40 }
 0x9c4   : > { %v1904_v42 = vpop.xlane.xlu0 %1903 }
 0x9c5   : > { %3738 = vrcp.f32 %v1904_v42 }
 0x9c8   : > { %v1912_v43 = vpop.permute.xlu0 %1911 }
 0x9c9   : > { %v1917_v44 = vsel %vm1688_vm0, %v1912_v43, 0 }
 0x9ca   : > { %v3737_v45 = vpop.eup %3736  ;;  %3542 = vmatpush3.bf16.msra.mxu0 %v1917_v44 }
 0x9cb   : > { %v1907_v46 = vmul.f32 %v3737_v45, %v3733_v35  ;;  %3553 = vmatprep.subr.bf16.mxu0 %v3798_v41 }
 0x9cc   : > { %v2117_v14 = vpop.permute.xlu0 %2116 }
 0x9cd   : > { %v1909_v47 = vpack.c.bf16 %v1907_v46, %v1907_v46 }
 0x9cf   : > { %3544 = vmatmul.mubr.msk.bf16.vlgmr.msra.gmra.mxu0 %vm1658_vm15, %v1909_v47 }
 0x9d0   : > { %3555 = vmatprep.mubr.msk.bf16.mxu0 %vm3799_vm12, %v3798_v41  ;;  %3554 = vmatpush3.bf16.msra.mxu0 %v2021_v58 }
 0x9d1   : > { %3565 = vmatprep.subr.bf16.mxu0 %v3798_v41 }
 0x9d2   : > { %v3739_v49 = vpop.eup %3738 }
 0x9d3   : > { %v1908_v50 = vmul.f32 %v3739_v49, %v3735_v37 }
 0x9d5   : > { %v1910_v51 = vpack.c.bf16 %v1908_v50, %v1908_v50 }
 0x9d7   : > { %3550 = vmatmul.mubr.msk.bf16.vlgmr.msra.gmra.mxu1 %vm1658_vm15, %v1910_v51 }
 0x9d8   : > { %3560 = vmatpush3.bf16.msra.mxu1 %v2073_v52  ;;  %3561 = vmatprep.mubr.msk.bf16.mxu1 %vm3799_vm12, %v3798_v41 }
 0x9d9   : > { %3571 = vmatprep.subr.bf16.mxu1 %v3798_v41 }
 0x9df   : > { %3562 = vmatmul.mubr.msk.bf16.vlgmr.msra.gmra.mxu1 %vm1558_vm13, %v1780_v7 }
 0x9e0   : > { %3572 = vmatpush3.bf16.xpose.msra.mxu1 %v2174_v55  ;;  %3573 = vmatprep.mubr.msk.bf16.mxu1 %vm3799_vm12, %v3798_v41 }
 0x9e1   : > { %3583 = vmatprep.subr.bf16.mxu1 %v3798_v41 }
 0x9e7   : > { %3574 = vmatmul.mubr.msk.bf16.vlgmr.msra.gmra.mxu1 %vm1558_vm13, %v2167_v56 }
 0x9e8   : > { %3585 = vmatprep.mubr.msk.bf16.mxu1 %vm3799_vm12, %v3798_v41 }
 0xa8f   : > { %v1953_v59 = vpop.f32.mrf.mxu0 }
 0xa91   : > { %v3545_v63 = vpop.f32.mrf.mxu0 }
 0xa93   : > { %v1956_v0 = vpop.f32.mrf.mxu0 }
 0xa95   : > { %v3546_v1 = vpop.f32.mrf.mxu0 }
 0xa97   : > { %v2001_v4 = vpop.f32.mrf.mxu1 }
 0xa98   : > { %v2007_v5 = vpack.c.bf16 %v2001_v4, %v1953_v59 }
 0xa99   : > { %v3551_v7 = vpop.f32.mrf.mxu1 }
 0xa9a   : > { %3556 = vmatmul.mubr.msk.bf16.vlgmr.msra.gmra.mxu0 %vm1558_vm13, %v2007_v5 }
 0xa9b   : > { %3566 = vmatpush3.bf16.xpose.msra.mxu0 %v2124_v8  ;;  %v2004_v9 = vpop.f32.mrf.mxu1  ;;  %3567 = vmatprep.mubr.msk.bf16.mxu0 %vm3799_vm12, %v3798_v41  ;;  %v3697_v8 = vld [vmem:[%s4006_s24 + $0x10] sm:$0x3f]  }
 0xa9c   : > { %3577 = vmatprep.subr.bf16.mxu0 %v3798_v41 }
 0xa9d   : > { %v3552_v10 = vpop.f32.mrf.mxu1 }
 0xa9f   : > { %v4294_v11 = vpop.f32.mrf.mxu1 }
 0xaa1   : > { %v3563_v15 = vpop.f32.mrf.mxu1 }
 0xaa2   : > { %3568 = vmatmul.mubr.msk.bf16.vlgmr.msra.gmra.mxu0 %vm1558_vm13, %v2117_v14  ;;  %v2364_v15 = vsel %vm2019_vm1, %v3697_v8, 0 }
 0xaa3   : > { %v4297_v16 = vpop.f32.mrf.mxu1  ;;  %3579 = vmatprep.mubr.msk.bf16.mxu0 %vm3799_vm12, %v3798_v41 }
 0xaa5   : > { %v3564_v17 = vpop.f32.mrf.mxu1 }
 0xaa7   : > { %v2210_v18 = vpop.f32.mrf.mxu1 }
 0xaa8   : > { %v2217_v19 = vmul.f32 0.28867513, %v2210_v18 }
 0xaa9   : > { %v3575_v21 = vpop.f32.mrf.mxu1 }
 0xaaa   : > { %v2219_v22 = vadd.f32 %v2217_v19, %v4210_v13 }
 0xaab   : > { %v2213_v23 = vpop.f32.mrf.mxu1 }
 0xaac   : > { %v2223_v24 = vsel %vm1658_vm15, %v2219_v22, -inf }
 0xaad   : > { %2224 = vmax.xlane.f32.xlu1 %v2223_v24  ;;  %v3576_v25 = vpop.f32.mrf.mxu1 }
 0xabe   : > { %2249 = vrot.lane.b32.xlu1 %v4308_v29, %s3807_s25 }
 0xac2   : > { %2300 = vrot.lane.b32.xlu1 %v4192_v6, %s3807_s25 }
 0xac6   : > { %2302 = vrot.lane.b32.xlu1 %v4315_v31, %s3807_s25 }
 0xaca   : > { %2461 = vrot.lane.b32.xlu1 %v4192_v6, %s3808_s5 }
 0xace   : > { %2459 = vrot.lane.b32.xlu1 %v4192_v6, %s3809_s29 }
 0xb36   : > { %v2225_v62 = vpop.xlane.xlu1 %2224 }
 0xb37   : > { %v2227_v35 = vsub.f32 %v2219_v22, %v2225_v62 }
 0xb39   : > { %v2230_v36 = vmul.f32 1.442695, %v2227_v35 }
 0xb3a   : > { %v2250_v2 = vpop.permute.xlu1 %2249 }
 0xb3b   : > { %3740 = vpow2.f32 %v2230_v36 }
 0xb3e   : > { %v2301_v32 = vpop.permute.xlu1 %2300 }
 0xb42   : > { %v2303_v12 = vpop.permute.xlu1 %2302 }
 0xb43   : > { %v2304_v33 = vsel %vm1658_vm15, %v2301_v32, %v2303_v12 }
 0xb44   : > { %v2309_v34 = vsel %vm1688_vm0, %v2304_v33, 0 }
 0xb45   : > { %3584 = vmatpush3.bf16.msra.mxu1 %v2309_v34 }
 0xb46   : > { %3595 = vmatprep.subr.bf16.mxu1 %v3798_v41  ;;  %v2462_v23 = vpop.permute.xlu1 %2461 }
 0xb47   : > { %v2467_v32 = vsel %vm1558_vm13, %v2462_v23, 0 }
 0xb48   : > { %v3741_v48 = vpop.eup %3740 }
 0xb49   : > { %v2235_v50 = vsel %vm1658_vm15, %v3741_v48, 0.0 }
 0xb4a   : > { %v2460_v36 = vpop.permute.xlu1 %2459 }
 0xb5a   : > { %v4326_v37 = vpop.f32.mrf.mxu0 }
 0xb5c   : > { %v3557_v39 = vpop.f32.mrf.mxu0 }
 0xb5e   : > { %v4328_v40 = vpop.f32.mrf.mxu0 }
 0xb60   : > { %v3558_v6 = vpop.f32.mrf.mxu0 }
 0xb62   : > { %v2160_v42 = vpop.f32.mrf.mxu0 }
 0xb63   : > { %v2216_v43 = vmul.f32 0.28867513, %v2160_v42 }
 0xb64   : > { %v3569_v44 = vpop.f32.mrf.mxu0 }
 0xb65   : > { %v2218_v45 = vadd.f32 %v2216_v43, %v4210_v13 }
 0xb66   : > { %v2163_v46 = vpop.f32.mrf.mxu0 }
 0xb67   : > { %v2220_v47 = vsel %vm1658_vm15, %v2218_v45, -inf }
 0xb68   : > { %2221 = vmax.xlane.f32.xlu0 %v2220_v47  ;;  %v3570_v49 = vpop.f32.mrf.mxu0 }
 0xb69   : > { %v2113_v49 = vadd.f32 %v4297_v16, %v4328_v40 }
 0xb6c   : > { %2236 = vadd.xlane.f32.xlu0 %v2235_v50 }
 0xbf1   : > { %v2222_v51 = vpop.xlane.xlu0 %2221 }
 0xbf2   : > { %v2226_v52 = vsub.f32 %v2218_v45, %v2222_v51  ;;  %v2110_v45 = vadd.f32 %v4294_v11, %v4326_v37 }
 0xbf4   : > { %v2228_v53 = vmul.f32 1.442695, %v2226_v52 }
 0xbf5   : > { %v2237_v54 = vpop.xlane.xlu0 %2236 }
 0xbf6   : > { %3742 = vpow2.f32 %v2228_v53 }
 0xbf7   : > { %3744 = vrcp.f32 %v2237_v54 }
 0xc03   : > { %v3743_v55 = vpop.eup %3742 }
 0xc04   : > { %v3745_v56 = vpop.eup %3744  ;;  %v2232_v57 = vsel %vm1658_vm15, %v3743_v55, 0.0 }
 0xc05   : > { %2233 = vadd.xlane.f32.xlu0 %v2232_v57  ;;  %v2241_v58 = vmul.f32 %v3745_v56, %v3741_v48 }
 0xc07   : > { %v2243_v59 = vpack.c.bf16 %v2241_v58, %v2241_v58 }
 0xc09   : > { %3586 = vmatmul.mubr.msk.bf16.vlgmr.msra.gmra.mxu1 %vm1658_vm15, %v2243_v59 }
 0xc0a   : > { %3597 = vmatprep.mubr.msk.bf16.mxu1 %vm3799_vm12, %v3798_v41 }
 0xc1b   : > { %2247 = vrot.lane.b32.xlu0 %v4189_v3, %s3807_s25 }
 0xc1f   : > { %2411 = vrot.lane.b32.xlu0 %v4189_v3, %s3808_s5  ;;  %s4580_s5 = sld [smem:[#allocation4_spill]] }
 0xc23   : > { %2409 = vrot.lane.b32.xlu0 %v4189_v3, %s3809_s29 }
 0xc25   : > { %p3428_p8 = scmp.ne.s32.totalorder %s4580_s5, 1 }
 0xc26   : > { %s4583_s25 = sld [smem:[#allocation22_spill]] (!%p3428_p8) }
 0xc8e   : > { %v2234_v63 = vpop.xlane.xlu0 %2233 }
 0xc8f   : > { %3746 = vrcp.f32 %v2234_v63 }
 0xc92   : > { %v2248_v0 = vpop.permute.xlu0 %2247 }
 0xc93   : > { %v2252_v1 = vsel %vm1658_vm15, %v2248_v0, %v2250_v2 }
 0xc94   : > { %v2257_v4 = vsel %vm1688_vm0, %v2252_v1, 0 }
 0xc95   : > { %3578 = vmatpush3.bf16.msra.mxu0 %v2257_v4 }
 0xc96   : > { %v2412_v5 = vpop.permute.xlu0 %2411  ;;  %3589 = vmatprep.subr.bf16.mxu0 %v3798_v41 }
 0xc97   : > { %v2417_v7 = vsel %vm1558_vm13, %v2412_v5, 0 }
 0xc98   : > { %3596 = vmatpush3.bf16.xpose.msra.mxu1 %v2417_v7 }
 0xc99   : > { %3607 = vmatprep.subr.bf16.mxu1 %v3798_v41 }
 0xc9a   : > { %v2410_v3 = vpop.permute.xlu0 %2409 }
 0xc9c   : > { %v3747_v9 = vpop.eup %3746 }
 0xc9d   : > { %v2240_v10 = vmul.f32 %v3747_v9, %v3743_v55 }
 0xc9f   : > { %3598 = vmatmul.mubr.msk.bf16.vlgmr.msra.gmra.mxu1 %vm1558_vm13, %v2410_v3  ;;  %v2242_v14 = vpack.c.bf16 %v2240_v10, %v2240_v10 }
 0xca0   : > { %3609 = vmatprep.mubr.msk.bf16.mxu1 %vm3799_vm12, %v3798_v41 }
 0xca1   : > { %3580 = vmatmul.mubr.msk.bf16.vlgmr.msra.gmra.mxu0 %vm1658_vm15, %v2242_v14  ;;  %v3698_v14 = vld [vmem:[%s4006_s24 + $0x18] sm:$0x3f]   ;;  %s4577_s24 = scalar_lea.vmem %s4509_s17, %s3965_s8 }
 0xca2   : > { %3590 = vmatpush3.bf16.msra.mxu0 %v2364_v15  ;;  %3591 = vmatprep.mubr.msk.bf16.mxu0 %vm3799_vm12, %v3798_v41  ;;  %v2646_v15 = vsel %vm2019_vm1, %v3698_v14, 0  ;;  %v3710_v14 = vld [vmem:[%s4037_s16 + $0x28] sm:$0xff]  }
 0xca3   : > { %3601 = vmatprep.subr.bf16.mxu0 %v3798_v41 }
 0xcc9   : > { %v2345_v17 = vpop.f32.mrf.mxu1 }
 0xccb   : > { %v3587_v18 = vpop.f32.mrf.mxu1 }
 0xccd   : > { %v2348_v19 = vpop.f32.mrf.mxu1 }
 0xccf   : > { %v3588_v21 = vpop.f32.mrf.mxu1 }
 0xd5f   : > { %v2453_v22 = vpop.f32.mrf.mxu1 }
 0xd60   : > { %v2509_v24 = vmul.f32 0.28867513, %v2453_v22 }
 0xd61   : > { %v2293_v25 = vpop.f32.mrf.mxu0  ;;  %v3599_v27 = vpop.f32.mrf.mxu1 }
 0xd62   : > { %v2351_v28 = vpack.c.bf16 %v2345_v17, %v2293_v25  ;;  %v2511_v30 = vadd.f32 %v2509_v24, %v4210_v13 }
 0xd63   : > { %v3581_v62 = vpop.f32.mrf.mxu0  ;;  %v2456_v2 = vpop.f32.mrf.mxu1 }
 0xd64   : > { %3592 = vmatmul.mubr.msk.bf16.vlgmr.msra.gmra.mxu0 %vm1558_vm13, %v2351_v28  ;;  %v2513_v12 = vsel %vm1658_vm15, %v2511_v30, -inf  ;;  %v3400_v28 = vld [vmem:[%s4577_s24] ss:$0 sm:$0xff] }
 0xd65   : > { %3602 = vmatpush3.bf16.xpose.msra.mxu0 %v2467_v32  ;;  %v2296_v33 = vpop.f32.mrf.mxu0  ;;  %2514 = vmax.xlane.f32.xlu0 %v2513_v12  ;;  %v3600_v34 = vpop.f32.mrf.mxu1 }
 0xd66   : > { %3603 = vmatprep.mubr.msk.bf16.mxu0 %vm3799_vm12, %v3798_v41  ;;  %3613 = vmatprep.subr.bf16.mxu0 %v3798_v41 }
 0xd67   : > { %v3582_v35 = vpop.f32.mrf.mxu0 }
 0xd6c   : > { %3604 = vmatmul.mubr.msk.bf16.vlgmr.msra.gmra.mxu0 %vm1558_vm13, %v2460_v36 }
 0xd6d   : > { %3615 = vmatprep.mubr.msk.bf16.mxu0 %vm3799_vm12, %v3798_v41 }
 0xdee   : > { %v2515_v39 = vpop.xlane.xlu0 %2514 }
 0xdef   : > { %v2519_v6 = vsub.f32 %v2511_v30, %v2515_v39  ;;  %v3776_v39 = vld [vmem:[#allocation2 + $0x8] sm:$0xff] }
 0xdf1   : > { %v2521_v42 = vmul.f32 1.442695, %v2519_v6 }
 0xdf3   : > { %3748 = vpow2.f32 %v2521_v42 }
 0xe00   : > { %v3749_v43 = vpop.eup %3748 }
 0xe01   : > { %v2525_v44 = vsel %vm1658_vm15, %v3749_v43, 0.0 }
 0xe02   : > { %2526 = vadd.xlane.f32.xlu0 %v2525_v44 }
 0xe24   : > { %v2400_v46 = vpop.f32.mrf.mxu0 }
 0xe25   : > { %v2407_v47 = vadd.f32 %v2400_v46, %v2110_v45 }
 0xe26   : > { %v3593_v48 = vpop.f32.mrf.mxu0 }
 0xe28   : > { %v2403_v50 = vpop.f32.mrf.mxu0 }
 0xe29   : > { %v2408_v51 = vadd.f32 %v2403_v50, %v2113_v49 }
 0xe2a   : > { %v3594_v52 = vpop.f32.mrf.mxu0 }
 0xe2b   : > { %v3701_v52 = vld [vmem:[%s4023_s27 + $0x24] ss:$8 sps:$4 sm:$0xff]  }
 0xe2c   : > { %v2503_v53 = vpop.f32.mrf.mxu0 }
 0xe2d   : > { %v2510_v54 = vmul.f32 0.28867513, %v2503_v53  ;;  %v3699_v53 = vld [vmem:[%s4023_s27 + $0x20] ss:$8 sps:$4 sm:$0xff]  }
 0xe2e   : > { %v3605_v55 = vpop.f32.mrf.mxu0 }
 0xe2f   : > { %v2512_v56 = vadd.f32 %v2510_v54, %v4210_v13  ;;  %v3704_v54 = vld [vmem:[%s4023_s27 + $0x14] ss:$8 sps:$4 sm:$0xff]   ;;  %v3702_v55 = vld [vmem:[%s4023_s27 + $0x10] ss:$8 sps:$4 sm:$0xff]  }
 0xe30   : > { %v2506_v57 = vpop.f32.mrf.mxu0 }
 0xe31   : > { %v2516_v58 = vsel %vm1658_vm15, %v2512_v56, -inf  ;;  %v3705_v57 = vld [vmem:[%s4023_s27] ss:$8 sps:$4 sm:$0xff]  }
 0xe32   : > { %2517 = vmax.xlane.f32.xlu1 %v2516_v58  ;;  %v3606_v59 = vpop.f32.mrf.mxu0 }
 0xe43   : > { %2585 = vrot.lane.b32.xlu1 %v4315_v31, %s3810_s0 }
 0xe8b   : > { %v2527_v13 = vpop.xlane.xlu0 %2526 }
 0xebb   : > { %v2518_v11 = vpop.xlane.xlu1 %2517 }
 0xebc   : > { %v2520_v37 = vsub.f32 %v2512_v56, %v2518_v11  ;;  %v3707_v56 = vld [vmem:[%s4023_s27 + $0x4] ss:$8 sps:$4 sm:$0xff]   ;;  %s4582_s27 = sld [smem:[#allocation21_spill]] (!%p3428_p8) }
 0xebe   : > { %v2523_v63 = vmul.f32 1.442695, %v2520_v37 }
 0xebf   : > { %v2586_v16 = vpop.permute.xlu1 %2585 }
 0xec0   : > { %3750 = vpow2.f32 %v2523_v63  ;;  %v2591_v40 = vsel %vm1688_vm0, %v2586_v16, 0 }
 0xec1   : > { %3614 = vmatpush3.bf16.msra.mxu0 %v2591_v40  ;;  %3752 = vrcp.f32 %v2527_v13 }
 0xec2   : > { %2810 = vmatprep.subr.bf16.mxu0 %v3701_v52 }
 0xecd   : > { %v3751_v0 = vpop.eup %3750 }
 0xece   : > { %v2528_v1 = vsel %vm1658_vm15, %v3751_v0, 0.0  ;;  %v3753_v4 = vpop.eup %3752 }
 0xecf   : > { %2529 = vadd.xlane.f32.xlu0 %v2528_v1  ;;  %v2533_v31 = vmul.f32 %v3753_v4, %v3749_v43  ;;  %v3401_v1 = vld [vmem:[%s4578_s10] ss:$0 sm:$0xff] }
 0xed1   : > { %v2535_v9 = vpack.c.bf16 %v2533_v31, %v2533_v31  ;;  %v3402_v31 = vld [vmem:[%s1015_s26] ss:$0 sm:$0xff] }
 0xee5   : > { %2537 = vrot.lane.b32.xlu0 %v4308_v29, %s3810_s0  ;;  %s4581_s0 = sld [smem:[#allocation23_spill]] (!%p3428_p8) }
 0xf58   : > { %v2530_v5 = vpop.xlane.xlu0 %2529 }
 0xf59   : > { %3754 = vrcp.f32 %v2530_v5 }
 0xf5c   : > { %v2538_v7 = vpop.permute.xlu0 %2537 }
 0xf5d   : > { %v2543_v8 = vsel %vm1688_vm0, %v2538_v7, 0 }
 0xf5e   : > { %3608 = vmatpush3.bf16.msra.mxu1 %v2543_v8 }
 0xf5f   : > { %3619 = vmatprep.subr.bf16.mxu1 %v3798_v41 }
 0xf61   : > { %3610 = vmatmul.mubr.msk.bf16.vlgmr.msra.gmra.mxu1 %vm1658_vm15, %v2535_v9 }
 0xf62   : > { %3621 = vmatprep.mubr.msk.bf16.mxu1 %vm3799_vm12, %v3798_v41  ;;  %3620 = vmatpush3.bf16.msra.mxu1 %v2646_v15  ;;  %v3711_v15 = vld [vmem:[%s4037_s16 + $0x20] sm:$0xff]  }
 0xf63   : > { %2984 = vmatprep.subr.bf16.mxu1 %v3797_v38 }
 0xf66   : > { %v3755_v29 = vpop.eup %3754 }
 0xf67   : > { %v2534_v10 = vmul.f32 %v3755_v29, %v3751_v0 }
 0xf69   : > { %v2536_v3 = vpack.c.bf16 %v2534_v10, %v2534_v10  ;;  %v3708_v10 = vld [vmem:[%s4037_s16 + $0x38] sm:$0xff]  }
 0xf6b   : > { %3616 = vmatmul.mubr.msk.bf16.vlgmr.msra.gmra.mxu0 %vm1658_vm15, %v2536_v3  ;;  %v3709_v3 = vld [vmem:[%s4037_s16 + $0x30] sm:$0xff]  }
 0xf6c   : > { %2832 = vmatprep.mubr.bf16.mxu0 %v3797_v38  ;;  %2811 = vmatpush1.bf16.msra.mxu0 %v3699_v53 }
 0xf6d   : > { %2812 = vmatprep.subr.bf16.mxu0 %v3704_v54 }
 0xf70   : > { %2813 = vmatpush1.bf16.msra.mxu0 %v3702_v55 }
 0xf71   : > { %2814 = vmatprep.subr.bf16.mxu0 %v3707_v56 }
 0xf74   : > { %2815 = vmatpush1.bf16.msra.mxu0 %v3705_v57 }
0x1021   : > { %v2579_v17 = vpop.f32.mrf.mxu1 }
0x1023   : > { %v3611_v18 = vpop.f32.mrf.mxu1 }
0x1024   : > { %v3713_v18 = vld [vmem:[%s4037_s16 + $0x10] sm:$0xff]  }
0x1025   : > { %v2582_v19 = vpop.f32.mrf.mxu1 }
0x1026   : > { %v3714_v19 = vld [vmem:[%s4037_s16 + $0x8] sm:$0xff]  }
0x1027   : > { %v3612_v21 = vpop.f32.mrf.mxu1 }
0x1028   : > { %v3715_v21 = vld [vmem:[%s4037_s16] sm:$0xff]  }
0x102b   : > { %v2627_v22 = vpop.f32.mrf.mxu0 }
0x102c   : > { %v2633_v41 = vpack.c.bf16 %v2627_v22, %v2579_v17  ;;  %v3712_v17 = vld [vmem:[%s4037_s16 + $0x18] sm:$0xff]  }
0x102d   : > { %v3617_v23 = vpop.f32.mrf.mxu0  ;;  %v3716_v22 = vld [vmem:[%s4037_s16 + $0x58] sm:$0xff]  }
0x102e   : > { %3622 = vmatmul.mubr.msk.bf16.vlgmr.msra.gmra.mxu1 %vm1558_vm13, %v2633_v41  ;;  %v3717_v41 = vld [vmem:[%s4037_s16 + $0x50] sm:$0xff]   ;;  %v3718_v23 = vld [vmem:[%s4037_s16 + $0x48] sm:$0xff]  }
0x102f   : > { %v2630_v24 = vpop.f32.mrf.mxu0  ;;  %2985 = vmatpush1.bf16.msra.mxu1 %v3708_v10 }
0x1030   : > { %2986 = vmatprep.subr.bf16.mxu1 %v3797_v38  ;;  %v3719_v24 = vld [vmem:[%s4037_s16 + $0x40] sm:$0xff]  }
0x1031   : > { %v3618_v25 = vpop.f32.mrf.mxu0 }
0x1032   : > { %v2755_v25 = vld [vmem:[%s1024_s2] sm:$0x3]  ;;  %s4579_s2 = scalar_lea.vmem %s4515_s23, %s3965_s8 }
0x1033   : > { %2987 = vmatpush1.bf16.msra.mxu1 %v3709_v3 }
0x1034   : > { %2988 = vmatprep.subr.bf16.mxu1 %v3797_v38 }
0x1037   : > { %2989 = vmatpush1.bf16.msra.mxu1 %v3710_v14 }
0x1038   : > { %2990 = vmatprep.subr.bf16.mxu1 %v3797_v38 }
0x103b   : > { %2991 = vmatpush1.bf16.msra.mxu1 %v3711_v15 }
0x103c   : > { %2992 = vmatprep.subr.bf16.mxu1 %v3797_v38 }
0x103f   : > { %2993 = vmatpush1.bf16.msra.mxu1 %v3712_v17 }
0x1040   : > { %2994 = vmatprep.subr.bf16.mxu1 %v3797_v38 }
0x1043   : > { %2995 = vmatpush1.bf16.msra.mxu1 %v3713_v18 }
0x1044   : > { %2996 = vmatprep.subr.bf16.mxu1 %v3797_v38 }
0x1047   : > { %2997 = vmatpush1.bf16.msra.mxu1 %v3714_v19 }
0x1048   : > { %2998 = vmatprep.subr.bf16.mxu1 %v3797_v38 }
0x104b   : > { %2999 = vmatpush1.bf16.msra.mxu1 %v3715_v21 }
0x104c   : > { %3008 = vmatprep.subr.bf16.mxu1 %v3797_v38 }
0x104f   : > { %3009 = vmatpush2.bf16.msra.mxu1 %v3716_v22 }
0x1050   : > { %3010 = vmatprep.subr.bf16.mxu1 %v3797_v38 }
0x1053   : > { %3011 = vmatpush2.bf16.msra.mxu1 %v3717_v41 }
0x1054   : > { %3012 = vmatprep.subr.bf16.mxu1 %v3797_v38 }
0x1057   : > { %3013 = vmatpush2.bf16.msra.mxu1 %v3718_v23 }
0x1058   : > { %3014 = vmatprep.subr.bf16.mxu1 %v3797_v38 }
0x105b   : > { %3015 = vmatpush2.bf16.msra.mxu1 %v3719_v24 }
0x10ee   : > { %v2682_v27 = vpop.f32.mrf.mxu1 }
0x10ef   : > { %v2689_v30 = vadd.f32 %v2682_v27, %v2407_v47  ;;  %v2760_v27 = vrot.slane %v2755_v25, %v1469_v61 }
0x10f0   : > { %v3623_v62 = vpop.f32.mrf.mxu1 }
0x10f1   : > { %v2698_v2 = vadd.f32 %v3400_v28, %v2689_v30 }
0x10f2   : > { %v2685_v32 = vpop.f32.mrf.mxu1 }
0x10f3   : > { %v4395_v12 = vadd.f32 %v2698_v2, %v4142_v20  ;;  %v2690_v33 = vadd.f32 %v2685_v32, %v2408_v51 }
0x10f4   : > { %v3624_v34 = vpop.f32.mrf.mxu1 }
0x10f5   : > { %2702 = vst.msk [vmem:[#allocation2] sm:$0xff] %vm1414_vm11, %v4395_v12  ;;  %v2699_v35 = vadd.f32 %v3400_v28, %v2690_v33  ;;  %v2706_v36 = vsel %vm1414_vm11, %v4395_v12, 0.0  ;;  %v2764_v28 = vrot.slane %v2755_v25, %v1473_v26 }
0x10f6   : > { %2707 = vadd.xlane.f32.xlu1 %v2706_v36 }
0x10f7   : > { %v4401_v6 = vadd.f32 %v3776_v39, %v2699_v35 }
0x10f9   : > { %2703 = vst.msk [vmem:[#allocation2 + $0x8] sm:$0xff] %vm1414_vm11, %v4401_v6  ;;  %v2709_v20 = vsel %vm1414_vm11, %v4401_v6, 0.0 }
0x10fa   : > { %2710 = vadd.xlane.f32.xlu0 %v2709_v20 }
0x117f   : > { %v2708_v42 = vpop.xlane.xlu1 %2707 }
0x1180   : > { %v2712_v43 = vmul.f32 0.020833334, %v2708_v42 }
0x1182   : > { %v2714_v44 = vsub.f32 %v4395_v12, %v2712_v43 }
0x1183   : > { %v2711_v45 = vpop.xlane.xlu0 %2710 }
0x1184   : > { %v2713_v46 = vmul.f32 0.020833334, %v2711_v45  ;;  %v2716_v47 = vmul.f32 %v2714_v44, %v2714_v44 }
0x1186   : > { %v2715_v48 = vsub.f32 %v4401_v6, %v2713_v46  ;;  %v2718_v49 = vsel %vm1414_vm11, %v2716_v47, 0.0 }
0x1187   : > { %2719 = vadd.xlane.f32.xlu0 %v2718_v49 }
0x1188   : > { %v2717_v50 = vmul.f32 %v2715_v48, %v2715_v48 }
0x118a   : > { %v2721_v51 = vsel %vm1414_vm11, %v2717_v50, 0.0 }
0x118b   : > { %2722 = vadd.xlane.f32.xlu1 %v2721_v51 }
0x1210   : > { %v2720_v58 = vpop.xlane.xlu0 %2719 }
0x1211   : > { %v2724_v59 = vmul.f32 0.020833334, %v2720_v58 }
0x1213   : > { %v2726_v11 = vadd.f32 1e-05, %v2724_v59 }
0x1214   : > { %v2723_v37 = vpop.xlane.xlu1 %2722 }
0x1215   : > { %3756 = vrsqrt.f32 %v2726_v11  ;;  %v2725_v63 = vmul.f32 0.020833334, %v2723_v37 }
0x1217   : > { %v2727_v16 = vadd.f32 1e-05, %v2725_v63  ;;  %v3414_v63 = vld [vmem:[%s4579_s2] ss:$0 sm:$0xff]  ;;  %s4584_s2 = sld [smem:[#allocation24_spill]] (!%p3428_p8) }
0x1219   : > { %3758 = vrsqrt.f32 %v2727_v16 }
0x1222   : > { %v3757_v40 = vpop.eup %3756 }
0x1223   : > { %v2730_v0 = vmul.f32 %v3757_v40, %v2714_v44 }
0x1225   : > { %v2738_v5 = vmul.f32 %v3401_v1, %v2730_v0 }
0x1226   : > { %v3759_v13 = vpop.eup %3758 }
0x1227   : > { %v2731_v4 = vmul.f32 %v3759_v13, %v2715_v48  ;;  %v2746_v8 = vadd.f32 %v3402_v31, %v2738_v5 }
0x1229   : > { %v2739_v7 = vmul.f32 %v3401_v1, %v2731_v4 }
0x122b   : > { %v2747_v9 = vadd.f32 %v3402_v31, %v2739_v7 }
0x122d   : > { %v2748_v29 = vpack.c.bf16 %v2747_v9, %v2746_v8 }
0x122f   : > { %3409 = vmatmul.mubr.msk.bf16.vlgmr.msra.gmra.mxu0 %vm1414_vm11, %v2748_v29 }
0x12ef   : > { %v2834_v30 = vpop.f32.mrf.mxu0 }
0x12f0   : > { %v2835_v62 = vadd.f32 %v2834_v30, %v2760_v27 }
0x12f1   : > { %v2836_v2 = vpop.f32.mrf.mxu0 }
0x12f2   : > { %v3410_v32 = vmul.f32 -1.702, %v2835_v62  ;;  %v2837_v33 = vadd.f32 %v2836_v2, %v2764_v28 }
0x12f3   : > { %v2838_v34 = vpop.f32.mrf.mxu0 }
0x12f4   : > { %v2851_v38 = vmul.f32 1.442695, %v3410_v32  ;;  %v3411_v35 = vmul.f32 -1.702, %v2837_v33  ;;  %v2839_v36 = vadd.f32 %v2838_v34, %v2760_v27 }
0x12f5   : > { %v2840_v39 = vpop.f32.mrf.mxu0 }
0x12f6   : > { %v2853_v20 = vmul.f32 1.442695, %v3411_v35  ;;  %v3412_v42 = vmul.f32 -1.702, %v2839_v36  ;;  %v2841_v43 = vadd.f32 %v2840_v39, %v2764_v28  ;;  %3760 = vpow2.f32 %v2851_v38 }
0x12f8   : > { %3762 = vpow2.f32 %v2853_v20  ;;  %v2855_v44 = vmul.f32 1.442695, %v3412_v42  ;;  %v3413_v61 = vmul.f32 -1.702, %v2841_v43 }
0x12fa   : > { %3764 = vpow2.f32 %v2855_v44  ;;  %v2857_v60 = vmul.f32 1.442695, %v3413_v61 }
0x12fc   : > { %3766 = vpow2.f32 %v2857_v60 }
0x1303   : > { %v3761_v26 = vpop.eup %3760 }
0x1304   : > { %v2859_v48 = vadd.f32 1.0, %v3761_v26 }
0x1305   : > { %v3763_v45 = vpop.eup %3762 }
0x1306   : > { %v2860_v46 = vadd.f32 1.0, %v3763_v45 }
0x1307   : > { %v3765_v47 = vpop.eup %3764 }
0x1308   : > { %v2861_v49 = vadd.f32 1.0, %v3765_v47  ;;  %3768 = vrcp.f32 %v2860_v46 }
0x1309   : > { %v3767_v50 = vpop.eup %3766 }
0x130a   : > { %3770 = vrcp.f32 %v2861_v49  ;;  %v2862_v51 = vadd.f32 1.0, %v3767_v50 }
0x130b   : > { %3772 = vrcp.f32 %v2859_v48 }
0x130c   : > { %3774 = vrcp.f32 %v2862_v51 }
0x1315   : > { %v3769_v52 = vpop.eup %3768 }
0x1316   : > { %v2872_v57 = vmul.f32 %v3769_v52, %v2837_v33 }
0x1317   : > { %v3771_v53 = vpop.eup %3770 }
0x1318   : > { %v3773_v54 = vpop.eup %3772  ;;  %v2873_v56 = vmul.f32 %v3771_v53, %v2839_v36 }
0x1319   : > { %v3775_v55 = vpop.eup %3774  ;;  %v2871_v59 = vmul.f32 %v3773_v54, %v2835_v62 }
0x131a   : > { %v2874_v58 = vmul.f32 %v3775_v55, %v2841_v43 }
0x131b   : > { %v2875_v37 = vpack.c.bf16 %v2873_v56, %v2871_v59 }
0x131c   : > { %v2876_v11 = vpack.c.bf16 %v2874_v58, %v2872_v57 }
0x131e   : > { %3427 = vmatprep.mubr.msk.bf16.mxu1 %vm2980_vm2, %v2876_v11 }
0x131f   : > { %3017 = vmatmul.mubr.bf16.vlgmr.msra.gmra.mxu1 %v2875_v37 }
0x13df   : > { %v3018_v16 = vpop.f32.mrf.mxu1 }
0x13e0   : > { %v3019_v40 = vadd.f32 %v3414_v63, %v3018_v16 }
0x13e1   : > { %v3020_v0 = vpop.f32.mrf.mxu1 }
0x13e2   : > { %v3025_v1 = vadd.f32 %v3019_v40, %v4395_v12 }
0x13e3   : > { %v3021_v13 = vpop.f32.mrf.mxu1 }
0x13e4   : > { %3027 = vst.msk [vmem:[#allocation2] sm:$0xff] %vm1414_vm11, %v3025_v1  ;;  %v3022_v4 = vadd.f32 %v3414_v63, %v3021_v13  ;;  %3032 = sbr.rel (%p3428_p8) target bundleno = 5770 (0x168a), region = 140 }
0x13e5   : > { %v3023_v5 = vpop.f32.mrf.mxu1 }
0x13e6   : > { %v3026_v31 = vadd.f32 %v3022_v4, %v4401_v6 }
0x13e8   : > { %3028 = vst.msk [vmem:[#allocation2 + $0x8] sm:$0xff] %vm1414_vm11, %v3026_v31 }
0x13e9   : > { %vm3039_vm3 = vcmask 1040384   ;;  %vm3043_vm4 = vcmask 386048   ;;  %v3777_v6 = vld [vmem:[%s4581_s0 + $0x10] sm:$0xff]   ;;  %v3811_v18 = vmov 0.0   ;;  %vm3812_vm5 = vmmov 0   ;;  %v3778_v19 = vld [vmem:[%s4581_s0 + $0x8] sm:$0xff]  }
0x13ea   : > { %3625 = vmatprep.subr.bf16.mxu0 %v3811_v18  ;;  %3631 = vmatprep.mubr.msk.bf16.mxu0 %vm3812_vm5, %v3811_v18  ;;  %v3779_v21 = vld [vmem:[%s4581_s0] sm:$0xff]   ;;  %vm3140_vm6 = vcmask 123904  }
0x13eb   : > { %v3033_v7 = vld [vmem:[#allocation2] sm:$0x1]  ;;  %3626 = vmatpush3.bf16.msra.mxu0 %v3777_v6 }
0x13ec   : > { %3627 = vmatprep.subr.bf16.mxu0 %v3811_v18  ;;  %v3429_v25 = vld [vmem:[%s4582_s27] ss:$0 sm:$0xff] }
0x13ed   : > { %v3430_v28 = vld [vmem:[%s4583_s25] ss:$0 sm:$0xff] }
0x13ef   : > { %v3035_v8 = vld [vmem:[#allocation2 + $0x8] sm:$0x1]  ;;  %3628 = vmatpush3.bf16.msra.mxu0 %v3778_v19 }
0x13f0   : > { %v3037_v9 = vrot.slane %v3035_v8, 7  ;;  %3629 = vmatprep.subr.bf16.mxu0 %v3811_v18 }
0x13f2   : > { %v3040_v29 = vsel %vm3039_vm3, %v3033_v7, %v3037_v9 }
0x13f3   : > { %v3044_v10 = vsel %vm3043_vm4, %v3040_v29, 0.0  ;;  %3630 = vmatpush3.bf16.msra.mxu0 %v3779_v21 }
0x13f4   : > { %3045 = vadd.xlane.f32.xlu0 %v3044_v10 }
0x147d   : > { %v3046_v12 = vpop.xlane.xlu0 %3045 }
0x147e   : > { %v3047_v3 = vmul.f32 0.020833334, %v3046_v12 }
0x1480   : > { %v3048_v14 = vsub.f32 %v3040_v29, %v3047_v3 }
0x1482   : > { %v3049_v15 = vmul.f32 %v3048_v14, %v3048_v14 }
0x1484   : > { %v3050_v17 = vsel %vm3043_vm4, %v3049_v15, 0.0 }
0x1485   : > { %3051 = vadd.xlane.f32.xlu0 %v3050_v17 }
0x150e   : > { %v3052_v22 = vpop.xlane.xlu0 %3051 }
0x150f   : > { %v3053_v41 = vmul.f32 0.020833334, %v3052_v22 }
0x1511   : > { %v3054_v23 = vadd.f32 1e-05, %v3053_v41 }
0x1513   : > { %3780 = vrsqrt.f32 %v3054_v23 }
0x1520   : > { %v3781_v24 = vpop.eup %3780 }
0x1521   : > { %v3056_v27 = vmul.f32 %v3781_v24, %v3048_v14 }
0x1523   : > { %v3063_v30 = vmul.f32 %v3429_v25, %v3056_v27 }
0x1525   : > { %v3070_v62 = vadd.f32 %v3430_v28, %v3063_v30 }
0x1527   : > { %v3077_v2 = vpack.c.bf16 %v3070_v62, %v3070_v62 }
0x1529   : > { %3632 = vmatmul.mubr.msk.bf16.vlgmr.msra.gmra.mxu0 %vm1414_vm11, %v3077_v2 }
0x15e9   : > { %v3133_v32 = vpop.f32.mrf.mxu0 }
0x15ea   : > { %v3139_v33 = vmul.f32 %v3133_v32, %v3133_v32 }
0x15eb   : > { %v3633_v34 = vpop.f32.mrf.mxu0 }
0x15ec   : > { %v3141_v38 = vsel %vm3140_vm6, %v3139_v33, 0.0 }
0x15ed   : > { %3142 = vadd.xlane.f32.xlu1 %v3141_v38  ;;  %v3136_v35 = vpop.f32.mrf.mxu0 }
0x15ef   : > { %v3634_v36 = vpop.f32.mrf.mxu0 }
0x1676   : > { %v3143_v39 = vpop.xlane.xlu1 %3142 }
0x1677   : > { %v3144_v20 = vadd.f32 1e-12, %v3143_v39 }
0x1679   : > { %3782 = vrsqrt.f32 %v3144_v20 }
0x1686   : > { %v3783_v42 = vpop.eup %3782 }
0x1687   : > { %v3146_v43 = vmul.f32 %v3783_v42, %v3133_v32 }
0x1689   : > { %3147 = vst.msk [vmem:[%s4584_s2] sm:$0x3] %vm3140_vm6, %v3146_v43 }
0x168a PF: > { %s4585_s5 = sld [smem:[#allocation3_spill]] }
0x1690   : > { %s37_s7 = sadd.s32 1, %s4585_s5  }
0x1691   : > { %p34_p9 = scmp.ge.s32.totalorder %s37_s7, 4  }
0x1693   :  { %36 = sbr.rel (!%p34_p9) target bundleno = 20 (0x14), region = 214 }

</bundles_post_ra>
